<compile_context>
chip_gen: v6e
topology: v6e:2x2x1
jax: 0.10.0
libtpu: 0.0.40
codegen_flags: <defaults>
</compile_context>

<pallas_src>
import jax
import jax.numpy as jnp
from jax.experimental import pallas as pl
from jax.experimental.pallas import tpu as pltpu


VOCAB = 100
HIDDEN = 768
V_SPATIAL = 16          # stand-in for 224 (ResNet surrogate input)
H_L = 64                # rating_decoder hidden size (as in the module)
HP = 128                # lane-padded hidden size for the 64-wide LSTM
GP = 4 * HP             # padded gate width; each gate block is 128-lane aligned


# ------------------------------ Fused kernel --------------------------------

def _fused_kernel(
    # per-sequence data (one batch element per grid step)
    l_ref, vp_ref, a_ref, mask_ref, lab_ref,
    # rating_decoder LSTM(768->64), padded to 128 lanes, + rating_output
    lwih_ref, lbias_ref, lwhh_ref, outw_ref, outb_ref,
    # folded acoustic chain (88->4) and folded visual chain (3->4)
    acw_ref, acb_ref, viw_ref, vib_ref,
    # stacked W_hh of the two H=1 LSTMs (row 0 acoustic, row 1 visual)
    whhav_ref,
    # outputs
    out_ref, loss_ref):
    T = out_ref.shape[2]

    # ---- all-timestep input projections (biases b_ih + b_hh pre-folded) ----
    l = l_ref[0]                                                 # (T, 768)
    xp_l = (jnp.dot(l.astype(jnp.bfloat16), lwih_ref[...],
                    preferred_element_type=jnp.float32)
            + lbias_ref[...])                                    # (T, GP)

    # acoustic chain folded to a single (88,4) matmul
    xp_a = (jnp.dot(a_ref[0], acw_ref[...],
                    preferred_element_type=jnp.float32)
            + acb_ref[...])                                      # (T, 4)

    # visual chain folded to a 3-term VPU broadcast FMA (no MXU, K=3)
    vp = vp_ref[0]                                               # (T, 3)
    viw = viw_ref[...]                                           # (3, 4)
    xp_v = (vp[:, 0:1] * viw[0:1, :]
            + vp[:, 1:2] * viw[1:2, :]
            + vp[:, 2:3] * viw[2:3, :]
            + vib_ref[...])                                      # (T, 4)

    # Fuse the two H=1 LSTM streams along a leading axis: row 0 = acoustic,
    # row 1 = visual.  h @ W_hh for H=1 is a pure VPU broadcast-multiply.
    xp_av = jnp.stack([xp_a, xp_v], axis=0)                      # (2, T, 4)
    whh_av = whhav_ref[...]                                      # (2, 4)

    lwhh = lwhh_ref[...]                                         # (HP, GP) bf16
    outw = outw_ref[...]                                         # (1, HP)
    outb = outb_ref[...]                                         # (1, 1)

    h_l = jnp.zeros((1, HP), jnp.float32)
    c_l = jnp.zeros((1, HP), jnp.float32)
    h_av = jnp.zeros((2, 1), jnp.float32)
    c_av = jnp.zeros((2, 1), jnp.float32)

    out_l_cols, out_av_cols = [], []
    # T is a small static trip count -> fully unrolled recurrence in registers.
    for t in range(T):
        # rating_decoder LSTM, PyTorch gate order i,f,g,o; 128-lane aligned.
        gl = xp_l[t:t + 1, :] + jnp.dot(h_l.astype(jnp.bfloat16), lwhh,
                                        preferred_element_type=jnp.float32)
        i = jax.nn.sigmoid(gl[:, 0 * HP:1 * HP])
        f = jax.nn.sigmoid(gl[:, 1 * HP:2 * HP])
        g = jnp.tanh(gl[:, 2 * HP:3 * HP])
        o = jax.nn.sigmoid(gl[:, 3 * HP:4 * HP])
        c_l = f * c_l + i * g
        h_l = o * jnp.tanh(c_l)
        # rating_output Linear(64,1) as VPU multiply + lane reduction.
        out_l_cols.append(jnp.sum(h_l * outw, axis=-1, keepdims=True) + outb)

        # the two H=1 LSTMs (acoustic + visual), fused over the stream axis.
        gav = xp_av[:, t, :] + h_av * whh_av
        i2 = jax.nn.sigmoid(gav[:, 0:1])
        f2 = jax.nn.sigmoid(gav[:, 1:2])
        g2 = jnp.tanh(gav[:, 2:3])
        o2 = jax.nn.sigmoid(gav[:, 3:4])
        c_av = f2 * c_av + i2 * g2
        h_av = o2 * jnp.tanh(c_av)
        out_av_cols.append(h_av)

    out_l = jnp.concatenate(out_l_cols, axis=1)                  # (1, T)
    out_av = jnp.concatenate(out_av_cols, axis=1)                # (2, T)

    m = mask_ref[0]                                              # (1, T)
    total = (out_l + out_av[0:1, :] + out_av[1:2, :]) * m        # shared mask
    out_ref[...] = total.reshape(1, 1, T)

    # nn.MSELoss(reduction='sum') over this block's positions (labels unmasked,
    # as in the reference); partial sums are reduced in the wrapper.
    d = total - lab_ref[0]
    part = jnp.sum(d * d)
    loss_ref[...] = jnp.zeros((1, 1, 128), jnp.float32) + part


def fused_forward(params, l_decode, v_pool, a_feat, mask3, lab3):
    B, T, _ = l_decode.shape

    def rowmap(b):
        return (b, 0, 0)

    def wmap(b):
        return (0, 0)

    in_specs = [
        pl.BlockSpec((1, T, HIDDEN), rowmap),   # l_decode
        pl.BlockSpec((1, T, 3), rowmap),        # v_pool
        pl.BlockSpec((1, T, 88), rowmap),       # a_feat
        pl.BlockSpec((1, 1, T), rowmap),        # mask
        pl.BlockSpec((1, 1, T), rowmap),        # labels
        pl.BlockSpec((HIDDEN, GP), wmap),       # lstm_l_wih (bf16)
        pl.BlockSpec((1, GP), wmap),            # lstm_l_bias (b_ih + b_hh)
        pl.BlockSpec((HP, GP), wmap),           # lstm_l_whh (bf16)
        pl.BlockSpec((1, HP), wmap),            # out_w
        pl.BlockSpec((1, 1), wmap),             # out_b
        pl.BlockSpec((88, 4), wmap),            # folded acoustic weight
        pl.BlockSpec((1, 4), wmap),             # folded acoustic bias
        pl.BlockSpec((3, 4), wmap),             # folded visual weight
        pl.BlockSpec((1, 4), wmap),             # folded visual bias
        pl.BlockSpec((2, 4), wmap),             # stacked W_hh of H=1 LSTMs
    ]
    out_specs = (pl.BlockSpec((1, 1, T), rowmap),
                 pl.BlockSpec((1, 1, 128), rowmap))
    out_shape = (jax.ShapeDtypeStruct((B, 1, T), jnp.float32),
                 jax.ShapeDtypeStruct((B, 1, 128), jnp.float32))

    # One batch element (sequence) per grid step; weights have constant block
    # indices so they are DMA'd once.  "parallel" shards the batch axis across
    # v7x's two TensorCores (sequential loop on v5e/v6e).
    out3, loss_part = pl.pallas_call(
        _fused_kernel,
        grid=(B,),
        in_specs=in_specs,
        out_specs=out_specs,
        out_shape=out_shape,
        compiler_params=pltpu.CompilerParams(
            dimension_semantics=("parallel",)),
    )(l_decode, v_pool, a_feat, mask3, lab3,
      params["lstm_l_wih"], params["lstm_l_bias"], params["lstm_l_whh"],
      params["out_w"], params["out_b"],
      params["ac_w"], params["ac_b"],
      params["vi_w"], params["vi_b"],
      params["whh_av"])
    return out3, loss_part


# ----------------------------- Model parameters -----------------------------

def init_params(key):
    ks = iter(jax.random.split(key, 32))
    s = 0.02

    def n(shape):
        return jax.random.normal(next(ks), shape, jnp.float32) * s

    def pad_gates(w, h_valid, hp):
        # (in, 4*h_valid) -> (in, 4*hp); each i/f/g/o block zero-padded to hp lanes
        blocks = jnp.split(w, 4, axis=1)
        return jnp.concatenate(
            [jnp.pad(b, ((0, 0), (0, hp - h_valid))) for b in blocks], axis=1)

    p = {}
    # TODO(synk): BERT linguistic encoder weights not reproduced; surrogate
    # embedding table standing in for the pooled 768-d sentence encoding.
    p["l_emb"] = n((VOCAB, HIDDEN))

    # TODO(synk): ResNet50-vggface2 weights not reproduced; surrogate is
    # (global-avg-pool -> Linear(3,2048)); the surrogate Linear, the
    # visual_reducer Linear(2048,768) and rating_decoder_v's input projection
    # are all linear, so they are folded exactly at init (see vi_w / vi_b).
    v_enc_w, v_enc_b = n((3, 2048)), jnp.zeros((1, 2048), jnp.float32)
    vr_w, vr_b = n((2048, HIDDEN)), jnp.zeros((1, HIDDEN), jnp.float32)

    # rating_decoder: LSTM(768, 64) with gates padded to 128 lanes each.
    w_ih, b_ih = n((HIDDEN, 4 * H_L)), n((1, 4 * H_L))
    w_hh, b_hh = n((H_L, 4 * H_L)), n((1, 4 * H_L))
    p["lstm_l_wih"] = pad_gates(w_ih, H_L, HP).astype(jnp.bfloat16)
    p["lstm_l_bias"] = pad_gates(b_ih + b_hh, H_L, HP)           # b_ih+b_hh folded
    whh_pad = jnp.pad(pad_gates(w_hh, H_L, HP), ((0, HP - H_L), (0, 0)))
    p["lstm_l_whh"] = whh_pad.astype(jnp.bfloat16)
    # rating_output: Linear(64, 1) as a padded row vector (VPU reduction in-kernel)
    p["out_w"] = jnp.pad(n((1, H_L)), ((0, 0), (0, HP - H_L)))
    p["out_b"] = jnp.zeros((1, 1), jnp.float32)

    # acoustic_encoder Linear(88,32) + rating_decoder_a LSTM(32,1): input-side
    # chain folded exactly (no activation between the Linears).
    a_enc_w, a_enc_b = n((88, 32)), jnp.zeros((1, 32), jnp.float32)
    a_wih, a_bih = n((32, 4)), n((1, 4))
    a_whh, a_bhh = n((1, 4)), n((1, 4))
    p["ac_w"] = a_enc_w @ a_wih                                   # (88, 4)
    p["ac_b"] = a_enc_b @ a_wih + a_bih + a_bhh                   # (1, 4)

    # rating_decoder_v LSTM(768,1): input-side chain folded with the visual
    # linears: (3->2048->768->4) -> (3,4).
    v_wih, v_bih = n((HIDDEN, 4)), n((1, 4))
    v_whh, v_bhh = n((1, 4)), n((1, 4))
    p["vi_w"] = v_enc_w @ vr_w @ v_wih                            # (3, 4)
    p["vi_b"] = (v_enc_b @ vr_w + vr_b) @ v_wih + v_bih + v_bhh   # (1, 4)

    p["whh_av"] = jnp.concatenate([a_whh, v_whh], axis=0)         # (2, 4)

    # Padded-lane inertness asserts: padded gate columns / W_hh rows / out_w
    # lanes are zero, so with zero-initialized c/h the padded lanes stay zero
    # and never leak into the 64->1 output reduction.
    wih_f = p["lstm_l_wih"].astype(jnp.float32)
    whh_f = p["lstm_l_whh"].astype(jnp.float32)
    for gidx in range(4):
        pc = slice(gidx * HP + H_L, (gidx + 1) * HP)
        assert not bool(jnp.any(wih_f[:, pc] != 0))
        assert not bool(jnp.any(whh_f[:, pc] != 0))
        assert not bool(jnp.any(p["lstm_l_bias"][:, pc] != 0))
    assert not bool(jnp.any(whh_f[H_L:, :] != 0))
    assert not bool(jnp.any(p["out_w"][:, H_L:] != 0))
    return p


# ------------------------------- Forward pass --------------------------------

def forward(params, input_a_feature, input_l_feature, input_l_mask,
            input_l_segment_ids, input_v_feature, train_rating_labels,
            input_mask):
    B, T, L = input_l_feature.shape

    # ---- linguistic encoder (surrogate; gather has no clean Pallas form) ----
    # TODO(synk): full BERT forward not implemented; masked mean of embeddings.
    ids = input_l_feature.reshape(B * T, L)
    emb = params["l_emb"][ids]                               # (B*T, L, 768)
    lm = input_l_mask.reshape(B * T, L, 1).astype(jnp.float32)
    l_decode = (emb * lm).sum(axis=1) / jnp.maximum(lm.sum(axis=1), 1.0)
    l_decode = l_decode.reshape(B, T, HIDDEN)
    del input_l_segment_ids  # token_type_ids unused by the surrogate

    # ---- visual encoder (surrogate preprocessing; linear chain folded) ----
    # TODO(synk): ResNet50 trunk not implemented; NCHW global-avg-pool surrogate.
    v = input_v_feature.reshape(B * T, V_SPATIAL, V_SPATIAL, 3)
    v = jnp.transpose(v, (0, 3, 1, 2))                       # NCHW, as reference
    v_pool = v.mean(axis=(2, 3)).reshape(B, T, 3)

    a_feat = input_a_feature                                  # (B, T, 88)
    mask3 = input_mask.astype(jnp.float32).reshape(B, 1, T)
    lab3 = train_rating_labels.astype(jnp.float32).reshape(B, 1, T)

    out3, loss_part = fused_forward(params, l_decode, v_pool, a_feat, mask3, lab3)
    output = out3[:, 0, :]                                    # (B, T)
    loss = jnp.sum(loss_part[:, 0, 0])                        # MSE(sum) total
    return loss, output


# ---------------------------------- Main -------------------------------------

if __name__ == "__main__":
    key = jax.random.PRNGKey(0)
    kp, k1, k2, k3, k4 = jax.random.split(key, 5)

    B, T, L = 2, 8, 12
    params = init_params(kp)

    input_a_feature = jax.random.normal(k1, (B, T, 88), jnp.float32)
    input_l_feature = jax.random.randint(k2, (B, T, L), 0, VOCAB, jnp.int32)
    input_l_mask = jnp.ones((B, T, L), jnp.int32)
    input_l_segment_ids = jnp.zeros((B, T, L), jnp.int32)
    input_v_feature = jax.random.normal(
        k3, (B, T, V_SPATIAL * V_SPATIAL * 3), jnp.float32)
    train_rating_labels = jax.random.normal(k4, (B, T), jnp.float32)
    input_mask = jnp.ones((B, T), jnp.float32)

    loss, output = jax.jit(forward)(
        params, input_a_feature, input_l_feature, input_l_mask,
        input_l_segment_ids, input_v_feature, train_rating_labels, input_mask)
    jax.block_until_ready((loss, output))
    assert output.shape == (B, T)
    assert loss.shape == ()
    print("KERNEL_OK")
</pallas_src>

<mosaic_0001>
module attributes {stable_mosaic.version = 11 : i64} {
  func.func @_fused_kernel(%arg0: i32, %arg1: memref<1x8x768xf32, #tpu.memory_space<vmem>>, %arg2: memref<1x8x3xf32, #tpu.memory_space<vmem>>, %arg3: memref<1x8x88xf32, #tpu.memory_space<vmem>>, %arg4: memref<1x1x8xf32, #tpu.memory_space<vmem>>, %arg5: memref<1x1x8xf32, #tpu.memory_space<vmem>>, %arg6: memref<768x512xbf16, #tpu.memory_space<vmem>>, %arg7: memref<1x512xf32, #tpu.memory_space<vmem>>, %arg8: memref<128x512xbf16, #tpu.memory_space<vmem>>, %arg9: memref<1x128xf32, #tpu.memory_space<vmem>>, %arg10: memref<1x1xf32, #tpu.memory_space<vmem>>, %arg11: memref<88x4xf32, #tpu.memory_space<vmem>>, %arg12: memref<1x4xf32, #tpu.memory_space<vmem>>, %arg13: memref<3x4xf32, #tpu.memory_space<vmem>>, %arg14: memref<1x4xf32, #tpu.memory_space<vmem>>, %arg15: memref<2x4xf32, #tpu.memory_space<vmem>>, %arg16: memref<1x1x8xf32, #tpu.memory_space<vmem>>, %arg17: memref<1x1x128xf32, #tpu.memory_space<vmem>>) attributes {dimension_semantics = [#tpu.dimension_semantics<parallel>], iteration_bounds = array<i64: 2>, scalar_prefetch = 0 : i64, scratch_operands = 0 : i64, tpu.core_type = #tpu.core_type<tc>, window_params = [{transform_indices = @transform_0, window_bounds = array<i64: 1, 8, 768>}, {transform_indices = @transform_1, window_bounds = array<i64: 1, 8, 3>}, {transform_indices = @transform_2, window_bounds = array<i64: 1, 8, 88>}, {transform_indices = @transform_3, window_bounds = array<i64: 1, 1, 8>}, {transform_indices = @transform_4, window_bounds = array<i64: 1, 1, 8>}, {pipeline_mode = #tpu.pipeline_mode<synchronous>, transform_indices = @transform_5, window_bounds = array<i64: 768, 512>}, {pipeline_mode = #tpu.pipeline_mode<synchronous>, transform_indices = @transform_6, window_bounds = array<i64: 1, 512>}, {pipeline_mode = #tpu.pipeline_mode<synchronous>, transform_indices = @transform_7, window_bounds = array<i64: 128, 512>}, {pipeline_mode = #tpu.pipeline_mode<synchronous>, transform_indices = @transform_8, window_bounds = array<i64: 1, 128>}, {pipeline_mode = #tpu.pipeline_mode<synchronous>, transform_indices = @transform_9, window_bounds = array<i64: 1, 1>}, {pipeline_mode = #tpu.pipeline_mode<synchronous>, transform_indices = @transform_10, window_bounds = array<i64: 88, 4>}, {pipeline_mode = #tpu.pipeline_mode<synchronous>, transform_indices = @transform_11, window_bounds = array<i64: 1, 4>}, {pipeline_mode = #tpu.pipeline_mode<synchronous>, transform_indices = @transform_12, window_bounds = array<i64: 3, 4>}, {pipeline_mode = #tpu.pipeline_mode<synchronous>, transform_indices = @transform_13, window_bounds = array<i64: 1, 4>}, {pipeline_mode = #tpu.pipeline_mode<synchronous>, transform_indices = @transform_14, window_bounds = array<i64: 2, 4>}, {transform_indices = @transform_15, window_bounds = array<i64: 1, 1, 8>}, {transform_indices = @transform_16, window_bounds = array<i64: 1, 1, 128>}]} {
    %c0 = arith.constant 0 : index
    %c0_0 = arith.constant 0 : index
    %c0_1 = arith.constant 0 : index
    %0 = vector.load %arg1[%c0, %c0_0, %c0_1] : memref<1x8x768xf32, #tpu.memory_space<vmem>>, vector<1x8x768xf32>
    %1 = vector.shape_cast %0 : vector<1x8x768xf32> to vector<8x768xf32>
    %2 = arith.truncf %1 : vector<8x768xf32> to vector<8x768xbf16>
    %c0_2 = arith.constant 0 : index
    %c0_3 = arith.constant 0 : index
    %3 = vector.load %arg6[%c0_2, %c0_3] : memref<768x512xbf16, #tpu.memory_space<vmem>>, vector<768x512xbf16>
    %cst = arith.constant dense<0.000000e+00> : vector<8x512xf32>
    %4 = tpu.matmul %2, %3, %cst {dimension_numbers = #tpu.dot_dimension_numbers<[1], [0], [0], [1], [0, 0, 1, 1], [], []>} : vector<8x768xbf16>, vector<768x512xbf16>, vector<8x512xf32> -> vector<8x512xf32>
    %c0_4 = arith.constant 0 : index
    %c0_5 = arith.constant 0 : index
    %5 = vector.load %arg7[%c0_4, %c0_5] : memref<1x512xf32, #tpu.memory_space<vmem>>, vector<1x512xf32>
    %6 = vector.broadcast %5 : vector<1x512xf32> to vector<8x512xf32>
    %7 = arith.addf %4, %6 : vector<8x512xf32>
    %c0_6 = arith.constant 0 : index
    %c0_7 = arith.constant 0 : index
    %c0_8 = arith.constant 0 : index
    %8 = vector.load %arg3[%c0_6, %c0_7, %c0_8] : memref<1x8x88xf32, #tpu.memory_space<vmem>>, vector<1x8x88xf32>
    %9 = vector.shape_cast %8 : vector<1x8x88xf32> to vector<8x88xf32>
    %c0_9 = arith.constant 0 : index
    %c0_10 = arith.constant 0 : index
    %10 = vector.load %arg11[%c0_9, %c0_10] : memref<88x4xf32, #tpu.memory_space<vmem>>, vector<88x4xf32>
    %cst_11 = arith.constant dense<0.000000e+00> : vector<8x4xf32>
    %11 = tpu.matmul %9, %10, %cst_11 {dimension_numbers = #tpu.dot_dimension_numbers<[1], [0], [0], [1], [0, 0, 1, 1], [], []>} : vector<8x88xf32>, vector<88x4xf32>, vector<8x4xf32> -> vector<8x4xf32>
    %c0_12 = arith.constant 0 : index
    %c0_13 = arith.constant 0 : index
    %12 = vector.load %arg12[%c0_12, %c0_13] : memref<1x4xf32, #tpu.memory_space<vmem>>, vector<1x4xf32>
    %13 = vector.broadcast %12 : vector<1x4xf32> to vector<8x4xf32>
    %14 = arith.addf %11, %13 : vector<8x4xf32>
    %c0_14 = arith.constant 0 : index
    %c0_15 = arith.constant 0 : index
    %c0_16 = arith.constant 0 : index
    %15 = vector.load %arg2[%c0_14, %c0_15, %c0_16] : memref<1x8x3xf32, #tpu.memory_space<vmem>>, vector<1x8x3xf32>
    %16 = vector.shape_cast %15 : vector<1x8x3xf32> to vector<8x3xf32>
    %c0_17 = arith.constant 0 : index
    %c0_18 = arith.constant 0 : index
    %17 = vector.load %arg13[%c0_17, %c0_18] : memref<3x4xf32, #tpu.memory_space<vmem>>, vector<3x4xf32>
    %18 = vector.extract_strided_slice %16 {offsets = [0, 0], sizes = [8, 1], strides = [1, 1]} : vector<8x3xf32> to vector<8x1xf32>
    %19 = vector.extract_strided_slice %17 {offsets = [0, 0], sizes = [1, 4], strides = [1, 1]} : vector<3x4xf32> to vector<1x4xf32>
    %20 = vector.broadcast %18 : vector<8x1xf32> to vector<8x4xf32>
    %21 = vector.broadcast %19 : vector<1x4xf32> to vector<8x4xf32>
    %22 = arith.mulf %20, %21 : vector<8x4xf32>
    %23 = vector.extract_strided_slice %16 {offsets = [0, 1], sizes = [8, 1], strides = [1, 1]} : vector<8x3xf32> to vector<8x1xf32>
    %24 = vector.extract_strided_slice %17 {offsets = [1, 0], sizes = [1, 4], strides = [1, 1]} : vector<3x4xf32> to vector<1x4xf32>
    %25 = vector.broadcast %23 : vector<8x1xf32> to vector<8x4xf32>
    %26 = vector.broadcast %24 : vector<1x4xf32> to vector<8x4xf32>
    %27 = arith.mulf %25, %26 : vector<8x4xf32>
    %28 = arith.addf %22, %27 : vector<8x4xf32>
    %29 = vector.extract_strided_slice %16 {offsets = [0, 2], sizes = [8, 1], strides = [1, 1]} : vector<8x3xf32> to vector<8x1xf32>
    %30 = vector.extract_strided_slice %17 {offsets = [2, 0], sizes = [1, 4], strides = [1, 1]} : vector<3x4xf32> to vector<1x4xf32>
    %31 = vector.broadcast %29 : vector<8x1xf32> to vector<8x4xf32>
    %32 = vector.broadcast %30 : vector<1x4xf32> to vector<8x4xf32>
    %33 = arith.mulf %31, %32 : vector<8x4xf32>
    %34 = arith.addf %28, %33 : vector<8x4xf32>
    %c0_19 = arith.constant 0 : index
    %c0_20 = arith.constant 0 : index
    %35 = vector.load %arg14[%c0_19, %c0_20] : memref<1x4xf32, #tpu.memory_space<vmem>>, vector<1x4xf32>
    %36 = vector.broadcast %35 : vector<1x4xf32> to vector<8x4xf32>
    %37 = arith.addf %34, %36 : vector<8x4xf32>
    %38 = vector.shape_cast %14 : vector<8x4xf32> to vector<1x8x4xf32>
    %39 = vector.shape_cast %37 : vector<8x4xf32> to vector<1x8x4xf32>
    %40 = tpu.concatenate %38, %39 in 0 : vector<1x8x4xf32>, vector<1x8x4xf32> -> vector<2x8x4xf32>
    %c0_21 = arith.constant 0 : index
    %c0_22 = arith.constant 0 : index
    %41 = vector.load %arg15[%c0_21, %c0_22] : memref<2x4xf32, #tpu.memory_space<vmem>>, vector<2x4xf32>
    %c0_23 = arith.constant 0 : index
    %c0_24 = arith.constant 0 : index
    %42 = vector.load %arg8[%c0_23, %c0_24] : memref<128x512xbf16, #tpu.memory_space<vmem>>, vector<128x512xbf16>
    %c0_25 = arith.constant 0 : index
    %c0_26 = arith.constant 0 : index
    %43 = vector.load %arg9[%c0_25, %c0_26] : memref<1x128xf32, #tpu.memory_space<vmem>>, vector<1x128xf32>
    %c0_27 = arith.constant 0 : index
    %c0_28 = arith.constant 0 : index
    %44 = vector.load %arg10[%c0_27, %c0_28] : memref<1x1xf32, #tpu.memory_space<vmem>>, vector<1x1xf32>
    %cst_29 = arith.constant 0.000000e+00 : f32
    %45 = vector.broadcast %cst_29 : f32 to vector<1x128xf32>
    %cst_30 = arith.constant 0.000000e+00 : f32
    %46 = vector.broadcast %cst_30 : f32 to vector<1x128xf32>
    %cst_31 = arith.constant 0.000000e+00 : f32
    %47 = vector.broadcast %cst_31 : f32 to vector<2x1xf32>
    %cst_32 = arith.constant 0.000000e+00 : f32
    %48 = vector.broadcast %cst_32 : f32 to vector<2x1xf32>
    %49 = vector.extract_strided_slice %7 {offsets = [0, 0], sizes = [1, 512], strides = [1, 1]} : vector<8x512xf32> to vector<1x512xf32>
    %50 = arith.truncf %45 : vector<1x128xf32> to vector<1x128xbf16>
    %cst_33 = arith.constant dense<0.000000e+00> : vector<1x512xf32>
    %51 = tpu.matmul %50, %42, %cst_33 {dimension_numbers = #tpu.dot_dimension_numbers<[1], [0], [0], [1], [0, 0, 1, 1], [], []>} : vector<1x128xbf16>, vector<128x512xbf16>, vector<1x512xf32> -> vector<1x512xf32>
    %52 = arith.addf %49, %51 : vector<1x512xf32>
    %53 = vector.extract_strided_slice %52 {offsets = [0, 0], sizes = [1, 128], strides = [1, 1]} : vector<1x512xf32> to vector<1x128xf32>
    %54 = arith.negf %53 : vector<1x128xf32>
    %55 = math.exp %54 : vector<1x128xf32>
    %cst_34 = arith.constant 1.000000e+00 : f32
    %56 = vector.broadcast %cst_34 : f32 to vector<1x128xf32>
    %57 = arith.addf %56, %55 : vector<1x128xf32>
    %58 = arith.divf %56, %57 : vector<1x128xf32>
    %59 = vector.extract_strided_slice %52 {offsets = [0, 128], sizes = [1, 128], strides = [1, 1]} : vector<1x512xf32> to vector<1x128xf32>
    %60 = arith.negf %59 : vector<1x128xf32>
    %61 = math.exp %60 : vector<1x128xf32>
    %cst_35 = arith.constant 1.000000e+00 : f32
    %62 = vector.broadcast %cst_35 : f32 to vector<1x128xf32>
    %63 = arith.addf %62, %61 : vector<1x128xf32>
    %64 = arith.divf %62, %63 : vector<1x128xf32>
    %65 = vector.extract_strided_slice %52 {offsets = [0, 256], sizes = [1, 128], strides = [1, 1]} : vector<1x512xf32> to vector<1x128xf32>
    %66 = math.tanh %65 : vector<1x128xf32>
    %67 = vector.extract_strided_slice %52 {offsets = [0, 384], sizes = [1, 128], strides = [1, 1]} : vector<1x512xf32> to vector<1x128xf32>
    %68 = arith.negf %67 : vector<1x128xf32>
    %69 = math.exp %68 : vector<1x128xf32>
    %cst_36 = arith.constant 1.000000e+00 : f32
    %70 = vector.broadcast %cst_36 : f32 to vector<1x128xf32>
    %71 = arith.addf %70, %69 : vector<1x128xf32>
    %72 = arith.divf %70, %71 : vector<1x128xf32>
    %73 = arith.mulf %64, %46 : vector<1x128xf32>
    %74 = arith.mulf %58, %66 : vector<1x128xf32>
    %75 = arith.addf %73, %74 : vector<1x128xf32>
    %76 = math.tanh %75 : vector<1x128xf32>
    %77 = arith.mulf %72, %76 : vector<1x128xf32>
    %78 = arith.mulf %77, %43 : vector<1x128xf32>
    %cst_37 = arith.constant dense<0.000000e+00> : vector<1xf32>
    %79 = vector.multi_reduction <add>, %78, %cst_37 [1] : vector<1x128xf32> to vector<1xf32>
    %80 = vector.shape_cast %79 : vector<1xf32> to vector<1x1xf32>
    %81 = arith.addf %80, %44 : vector<1x1xf32>
    %82 = vector.extract_strided_slice %40 {offsets = [0, 0, 0], sizes = [2, 1, 4], strides = [1, 1, 1]} : vector<2x8x4xf32> to vector<2x1x4xf32>
    %83 = vector.shape_cast %82 : vector<2x1x4xf32> to vector<2x4xf32>
    %84 = vector.broadcast %47 : vector<2x1xf32> to vector<2x4xf32>
    %85 = arith.mulf %84, %41 : vector<2x4xf32>
    %86 = arith.addf %83, %85 : vector<2x4xf32>
    %87 = vector.extract_strided_slice %86 {offsets = [0, 0], sizes = [2, 1], strides = [1, 1]} : vector<2x4xf32> to vector<2x1xf32>
    %88 = arith.negf %87 : vector<2x1xf32>
    %89 = math.exp %88 : vector<2x1xf32>
    %cst_38 = arith.constant 1.000000e+00 : f32
    %90 = vector.broadcast %cst_38 : f32 to vector<2x1xf32>
    %91 = arith.addf %90, %89 : vector<2x1xf32>
    %92 = arith.divf %90, %91 : vector<2x1xf32>
    %93 = vector.extract_strided_slice %86 {offsets = [0, 1], sizes = [2, 1], strides = [1, 1]} : vector<2x4xf32> to vector<2x1xf32>
    %94 = arith.negf %93 : vector<2x1xf32>
    %95 = math.exp %94 : vector<2x1xf32>
    %cst_39 = arith.constant 1.000000e+00 : f32
    %96 = vector.broadcast %cst_39 : f32 to vector<2x1xf32>
    %97 = arith.addf %96, %95 : vector<2x1xf32>
    %98 = arith.divf %96, %97 : vector<2x1xf32>
    %99 = vector.extract_strided_slice %86 {offsets = [0, 2], sizes = [2, 1], strides = [1, 1]} : vector<2x4xf32> to vector<2x1xf32>
    %100 = math.tanh %99 : vector<2x1xf32>
    %101 = vector.extract_strided_slice %86 {offsets = [0, 3], sizes = [2, 1], strides = [1, 1]} : vector<2x4xf32> to vector<2x1xf32>
    %102 = arith.negf %101 : vector<2x1xf32>
    %103 = math.exp %102 : vector<2x1xf32>
    %cst_40 = arith.constant 1.000000e+00 : f32
    %104 = vector.broadcast %cst_40 : f32 to vector<2x1xf32>
    %105 = arith.addf %104, %103 : vector<2x1xf32>
    %106 = arith.divf %104, %105 : vector<2x1xf32>
    %107 = arith.mulf %98, %48 : vector<2x1xf32>
    %108 = arith.mulf %92, %100 : vector<2x1xf32>
    %109 = arith.addf %107, %108 : vector<2x1xf32>
    %110 = math.tanh %109 : vector<2x1xf32>
    %111 = arith.mulf %106, %110 : vector<2x1xf32>
    %112 = vector.extract_strided_slice %7 {offsets = [1, 0], sizes = [1, 512], strides = [1, 1]} : vector<8x512xf32> to vector<1x512xf32>
    %113 = arith.truncf %77 : vector<1x128xf32> to vector<1x128xbf16>
    %cst_41 = arith.constant dense<0.000000e+00> : vector<1x512xf32>
    %114 = tpu.matmul %113, %42, %cst_41 {dimension_numbers = #tpu.dot_dimension_numbers<[1], [0], [0], [1], [0, 0, 1, 1], [], []>} : vector<1x128xbf16>, vector<128x512xbf16>, vector<1x512xf32> -> vector<1x512xf32>
    %115 = arith.addf %112, %114 : vector<1x512xf32>
    %116 = vector.extract_strided_slice %115 {offsets = [0, 0], sizes = [1, 128], strides = [1, 1]} : vector<1x512xf32> to vector<1x128xf32>
    %117 = arith.negf %116 : vector<1x128xf32>
    %118 = math.exp %117 : vector<1x128xf32>
    %cst_42 = arith.constant 1.000000e+00 : f32
    %119 = vector.broadcast %cst_42 : f32 to vector<1x128xf32>
    %120 = arith.addf %119, %118 : vector<1x128xf32>
    %121 = arith.divf %119, %120 : vector<1x128xf32>
    %122 = vector.extract_strided_slice %115 {offsets = [0, 128], sizes = [1, 128], strides = [1, 1]} : vector<1x512xf32> to vector<1x128xf32>
    %123 = arith.negf %122 : vector<1x128xf32>
    %124 = math.exp %123 : vector<1x128xf32>
    %cst_43 = arith.constant 1.000000e+00 : f32
    %125 = vector.broadcast %cst_43 : f32 to vector<1x128xf32>
    %126 = arith.addf %125, %124 : vector<1x128xf32>
    %127 = arith.divf %125, %126 : vector<1x128xf32>
    %128 = vector.extract_strided_slice %115 {offsets = [0, 256], sizes = [1, 128], strides = [1, 1]} : vector<1x512xf32> to vector<1x128xf32>
    %129 = math.tanh %128 : vector<1x128xf32>
    %130 = vector.extract_strided_slice %115 {offsets = [0, 384], sizes = [1, 128], strides = [1, 1]} : vector<1x512xf32> to vector<1x128xf32>
    %131 = arith.negf %130 : vector<1x128xf32>
    %132 = math.exp %131 : vector<1x128xf32>
    %cst_44 = arith.constant 1.000000e+00 : f32
    %133 = vector.broadcast %cst_44 : f32 to vector<1x128xf32>
    %134 = arith.addf %133, %132 : vector<1x128xf32>
    %135 = arith.divf %133, %134 : vector<1x128xf32>
    %136 = arith.mulf %127, %75 : vector<1x128xf32>
    %137 = arith.mulf %121, %129 : vector<1x128xf32>
    %138 = arith.addf %136, %137 : vector<1x128xf32>
    %139 = math.tanh %138 : vector<1x128xf32>
    %140 = arith.mulf %135, %139 : vector<1x128xf32>
    %141 = arith.mulf %140, %43 : vector<1x128xf32>
    %cst_45 = arith.constant dense<0.000000e+00> : vector<1xf32>
    %142 = vector.multi_reduction <add>, %141, %cst_45 [1] : vector<1x128xf32> to vector<1xf32>
    %143 = vector.shape_cast %142 : vector<1xf32> to vector<1x1xf32>
    %144 = arith.addf %143, %44 : vector<1x1xf32>
    %145 = vector.extract_strided_slice %40 {offsets = [0, 1, 0], sizes = [2, 1, 4], strides = [1, 1, 1]} : vector<2x8x4xf32> to vector<2x1x4xf32>
    %146 = vector.shape_cast %145 : vector<2x1x4xf32> to vector<2x4xf32>
    %147 = vector.broadcast %111 : vector<2x1xf32> to vector<2x4xf32>
    %148 = arith.mulf %147, %41 : vector<2x4xf32>
    %149 = arith.addf %146, %148 : vector<2x4xf32>
    %150 = vector.extract_strided_slice %149 {offsets = [0, 0], sizes = [2, 1], strides = [1, 1]} : vector<2x4xf32> to vector<2x1xf32>
    %151 = arith.negf %150 : vector<2x1xf32>
    %152 = math.exp %151 : vector<2x1xf32>
    %cst_46 = arith.constant 1.000000e+00 : f32
    %153 = vector.broadcast %cst_46 : f32 to vector<2x1xf32>
    %154 = arith.addf %153, %152 : vector<2x1xf32>
    %155 = arith.divf %153, %154 : vector<2x1xf32>
    %156 = vector.extract_strided_slice %149 {offsets = [0, 1], sizes = [2, 1], strides = [1, 1]} : vector<2x4xf32> to vector<2x1xf32>
    %157 = arith.negf %156 : vector<2x1xf32>
    %158 = math.exp %157 : vector<2x1xf32>
    %cst_47 = arith.constant 1.000000e+00 : f32
    %159 = vector.broadcast %cst_47 : f32 to vector<2x1xf32>
    %160 = arith.addf %159, %158 : vector<2x1xf32>
    %161 = arith.divf %159, %160 : vector<2x1xf32>
    %162 = vector.extract_strided_slice %149 {offsets = [0, 2], sizes = [2, 1], strides = [1, 1]} : vector<2x4xf32> to vector<2x1xf32>
    %163 = math.tanh %162 : vector<2x1xf32>
    %164 = vector.extract_strided_slice %149 {offsets = [0, 3], sizes = [2, 1], strides = [1, 1]} : vector<2x4xf32> to vector<2x1xf32>
    %165 = arith.negf %164 : vector<2x1xf32>
    %166 = math.exp %165 : vector<2x1xf32>
    %cst_48 = arith.constant 1.000000e+00 : f32
    %167 = vector.broadcast %cst_48 : f32 to vector<2x1xf32>
    %168 = arith.addf %167, %166 : vector<2x1xf32>
    %169 = arith.divf %167, %168 : vector<2x1xf32>
    %170 = arith.mulf %161, %109 : vector<2x1xf32>
    %171 = arith.mulf %155, %163 : vector<2x1xf32>
    %172 = arith.addf %170, %171 : vector<2x1xf32>
    %173 = math.tanh %172 : vector<2x1xf32>
    %174 = arith.mulf %169, %173 : vector<2x1xf32>
    %175 = vector.extract_strided_slice %7 {offsets = [2, 0], sizes = [1, 512], strides = [1, 1]} : vector<8x512xf32> to vector<1x512xf32>
    %176 = arith.truncf %140 : vector<1x128xf32> to vector<1x128xbf16>
    %cst_49 = arith.constant dense<0.000000e+00> : vector<1x512xf32>
    %177 = tpu.matmul %176, %42, %cst_49 {dimension_numbers = #tpu.dot_dimension_numbers<[1], [0], [0], [1], [0, 0, 1, 1], [], []>} : vector<1x128xbf16>, vector<128x512xbf16>, vector<1x512xf32> -> vector<1x512xf32>
    %178 = arith.addf %175, %177 : vector<1x512xf32>
    %179 = vector.extract_strided_slice %178 {offsets = [0, 0], sizes = [1, 128], strides = [1, 1]} : vector<1x512xf32> to vector<1x128xf32>
    %180 = arith.negf %179 : vector<1x128xf32>
    %181 = math.exp %180 : vector<1x128xf32>
    %cst_50 = arith.constant 1.000000e+00 : f32
    %182 = vector.broadcast %cst_50 : f32 to vector<1x128xf32>
    %183 = arith.addf %182, %181 : vector<1x128xf32>
    %184 = arith.divf %182, %183 : vector<1x128xf32>
    %185 = vector.extract_strided_slice %178 {offsets = [0, 128], sizes = [1, 128], strides = [1, 1]} : vector<1x512xf32> to vector<1x128xf32>
    %186 = arith.negf %185 : vector<1x128xf32>
    %187 = math.exp %186 : vector<1x128xf32>
    %cst_51 = arith.constant 1.000000e+00 : f32
    %188 = vector.broadcast %cst_51 : f32 to vector<1x128xf32>
    %189 = arith.addf %188, %187 : vector<1x128xf32>
    %190 = arith.divf %188, %189 : vector<1x128xf32>
    %191 = vector.extract_strided_slice %178 {offsets = [0, 256], sizes = [1, 128], strides = [1, 1]} : vector<1x512xf32> to vector<1x128xf32>
    %192 = math.tanh %191 : vector<1x128xf32>
    %193 = vector.extract_strided_slice %178 {offsets = [0, 384], sizes = [1, 128], strides = [1, 1]} : vector<1x512xf32> to vector<1x128xf32>
    %194 = arith.negf %193 : vector<1x128xf32>
    %195 = math.exp %194 : vector<1x128xf32>
    %cst_52 = arith.constant 1.000000e+00 : f32
    %196 = vector.broadcast %cst_52 : f32 to vector<1x128xf32>
    %197 = arith.addf %196, %195 : vector<1x128xf32>
    %198 = arith.divf %196, %197 : vector<1x128xf32>
    %199 = arith.mulf %190, %138 : vector<1x128xf32>
    %200 = arith.mulf %184, %192 : vector<1x128xf32>
    %201 = arith.addf %199, %200 : vector<1x128xf32>
    %202 = math.tanh %201 : vector<1x128xf32>
    %203 = arith.mulf %198, %202 : vector<1x128xf32>
    %204 = arith.mulf %203, %43 : vector<1x128xf32>
    %cst_53 = arith.constant dense<0.000000e+00> : vector<1xf32>
    %205 = vector.multi_reduction <add>, %204, %cst_53 [1] : vector<1x128xf32> to vector<1xf32>
    %206 = vector.shape_cast %205 : vector<1xf32> to vector<1x1xf32>
    %207 = arith.addf %206, %44 : vector<1x1xf32>
    %208 = vector.extract_strided_slice %40 {offsets = [0, 2, 0], sizes = [2, 1, 4], strides = [1, 1, 1]} : vector<2x8x4xf32> to vector<2x1x4xf32>
    %209 = vector.shape_cast %208 : vector<2x1x4xf32> to vector<2x4xf32>
    %210 = vector.broadcast %174 : vector<2x1xf32> to vector<2x4xf32>
    %211 = arith.mulf %210, %41 : vector<2x4xf32>
    %212 = arith.addf %209, %211 : vector<2x4xf32>
    %213 = vector.extract_strided_slice %212 {offsets = [0, 0], sizes = [2, 1], strides = [1, 1]} : vector<2x4xf32> to vector<2x1xf32>
    %214 = arith.negf %213 : vector<2x1xf32>
    %215 = math.exp %214 : vector<2x1xf32>
    %cst_54 = arith.constant 1.000000e+00 : f32
    %216 = vector.broadcast %cst_54 : f32 to vector<2x1xf32>
    %217 = arith.addf %216, %215 : vector<2x1xf32>
    %218 = arith.divf %216, %217 : vector<2x1xf32>
    %219 = vector.extract_strided_slice %212 {offsets = [0, 1], sizes = [2, 1], strides = [1, 1]} : vector<2x4xf32> to vector<2x1xf32>
    %220 = arith.negf %219 : vector<2x1xf32>
    %221 = math.exp %220 : vector<2x1xf32>
    %cst_55 = arith.constant 1.000000e+00 : f32
    %222 = vector.broadcast %cst_55 : f32 to vector<2x1xf32>
    %223 = arith.addf %222, %221 : vector<2x1xf32>
    %224 = arith.divf %222, %223 : vector<2x1xf32>
    %225 = vector.extract_strided_slice %212 {offsets = [0, 2], sizes = [2, 1], strides = [1, 1]} : vector<2x4xf32> to vector<2x1xf32>
    %226 = math.tanh %225 : vector<2x1xf32>
    %227 = vector.extract_strided_slice %212 {offsets = [0, 3], sizes = [2, 1], strides = [1, 1]} : vector<2x4xf32> to vector<2x1xf32>
    %228 = arith.negf %227 : vector<2x1xf32>
    %229 = math.exp %228 : vector<2x1xf32>
    %cst_56 = arith.constant 1.000000e+00 : f32
    %230 = vector.broadcast %cst_56 : f32 to vector<2x1xf32>
    %231 = arith.addf %230, %229 : vector<2x1xf32>
    %232 = arith.divf %230, %231 : vector<2x1xf32>
    %233 = arith.mulf %224, %172 : vector<2x1xf32>
    %234 = arith.mulf %218, %226 : vector<2x1xf32>
    %235 = arith.addf %233, %234 : vector<2x1xf32>
    %236 = math.tanh %235 : vector<2x1xf32>
    %237 = arith.mulf %232, %236 : vector<2x1xf32>
    %238 = vector.extract_strided_slice %7 {offsets = [3, 0], sizes = [1, 512], strides = [1, 1]} : vector<8x512xf32> to vector<1x512xf32>
    %239 = arith.truncf %203 : vector<1x128xf32> to vector<1x128xbf16>
    %cst_57 = arith.constant dense<0.000000e+00> : vector<1x512xf32>
    %240 = tpu.matmul %239, %42, %cst_57 {dimension_numbers = #tpu.dot_dimension_numbers<[1], [0], [0], [1], [0, 0, 1, 1], [], []>} : vector<1x128xbf16>, vector<128x512xbf16>, vector<1x512xf32> -> vector<1x512xf32>
    %241 = arith.addf %238, %240 : vector<1x512xf32>
    %242 = vector.extract_strided_slice %241 {offsets = [0, 0], sizes = [1, 128], strides = [1, 1]} : vector<1x512xf32> to vector<1x128xf32>
    %243 = arith.negf %242 : vector<1x128xf32>
    %244 = math.exp %243 : vector<1x128xf32>
    %cst_58 = arith.constant 1.000000e+00 : f32
    %245 = vector.broadcast %cst_58 : f32 to vector<1x128xf32>
    %246 = arith.addf %245, %244 : vector<1x128xf32>
    %247 = arith.divf %245, %246 : vector<1x128xf32>
    %248 = vector.extract_strided_slice %241 {offsets = [0, 128], sizes = [1, 128], strides = [1, 1]} : vector<1x512xf32> to vector<1x128xf32>
    %249 = arith.negf %248 : vector<1x128xf32>
    %250 = math.exp %249 : vector<1x128xf32>
    %cst_59 = arith.constant 1.000000e+00 : f32
    %251 = vector.broadcast %cst_59 : f32 to vector<1x128xf32>
    %252 = arith.addf %251, %250 : vector<1x128xf32>
    %253 = arith.divf %251, %252 : vector<1x128xf32>
    %254 = vector.extract_strided_slice %241 {offsets = [0, 256], sizes = [1, 128], strides = [1, 1]} : vector<1x512xf32> to vector<1x128xf32>
    %255 = math.tanh %254 : vector<1x128xf32>
    %256 = vector.extract_strided_slice %241 {offsets = [0, 384], sizes = [1, 128], strides = [1, 1]} : vector<1x512xf32> to vector<1x128xf32>
    %257 = arith.negf %256 : vector<1x128xf32>
    %258 = math.exp %257 : vector<1x128xf32>
    %cst_60 = arith.constant 1.000000e+00 : f32
    %259 = vector.broadcast %cst_60 : f32 to vector<1x128xf32>
    %260 = arith.addf %259, %258 : vector<1x128xf32>
    %261 = arith.divf %259, %260 : vector<1x128xf32>
    %262 = arith.mulf %253, %201 : vector<1x128xf32>
    %263 = arith.mulf %247, %255 : vector<1x128xf32>
    %264 = arith.addf %262, %263 : vector<1x128xf32>
    %265 = math.tanh %264 : vector<1x128xf32>
    %266 = arith.mulf %261, %265 : vector<1x128xf32>
    %267 = arith.mulf %266, %43 : vector<1x128xf32>
    %cst_61 = arith.constant dense<0.000000e+00> : vector<1xf32>
    %268 = vector.multi_reduction <add>, %267, %cst_61 [1] : vector<1x128xf32> to vector<1xf32>
    %269 = vector.shape_cast %268 : vector<1xf32> to vector<1x1xf32>
    %270 = arith.addf %269, %44 : vector<1x1xf32>
    %271 = vector.extract_strided_slice %40 {offsets = [0, 3, 0], sizes = [2, 1, 4], strides = [1, 1, 1]} : vector<2x8x4xf32> to vector<2x1x4xf32>
    %272 = vector.shape_cast %271 : vector<2x1x4xf32> to vector<2x4xf32>
    %273 = vector.broadcast %237 : vector<2x1xf32> to vector<2x4xf32>
    %274 = arith.mulf %273, %41 : vector<2x4xf32>
    %275 = arith.addf %272, %274 : vector<2x4xf32>
    %276 = vector.extract_strided_slice %275 {offsets = [0, 0], sizes = [2, 1], strides = [1, 1]} : vector<2x4xf32> to vector<2x1xf32>
    %277 = arith.negf %276 : vector<2x1xf32>
    %278 = math.exp %277 : vector<2x1xf32>
    %cst_62 = arith.constant 1.000000e+00 : f32
    %279 = vector.broadcast %cst_62 : f32 to vector<2x1xf32>
    %280 = arith.addf %279, %278 : vector<2x1xf32>
    %281 = arith.divf %279, %280 : vector<2x1xf32>
    %282 = vector.extract_strided_slice %275 {offsets = [0, 1], sizes = [2, 1], strides = [1, 1]} : vector<2x4xf32> to vector<2x1xf32>
    %283 = arith.negf %282 : vector<2x1xf32>
    %284 = math.exp %283 : vector<2x1xf32>
    %cst_63 = arith.constant 1.000000e+00 : f32
    %285 = vector.broadcast %cst_63 : f32 to vector<2x1xf32>
    %286 = arith.addf %285, %284 : vector<2x1xf32>
    %287 = arith.divf %285, %286 : vector<2x1xf32>
    %288 = vector.extract_strided_slice %275 {offsets = [0, 2], sizes = [2, 1], strides = [1, 1]} : vector<2x4xf32> to vector<2x1xf32>
    %289 = math.tanh %288 : vector<2x1xf32>
    %290 = vector.extract_strided_slice %275 {offsets = [0, 3], sizes = [2, 1], strides = [1, 1]} : vector<2x4xf32> to vector<2x1xf32>
    %291 = arith.negf %290 : vector<2x1xf32>
    %292 = math.exp %291 : vector<2x1xf32>
    %cst_64 = arith.constant 1.000000e+00 : f32
    %293 = vector.broadcast %cst_64 : f32 to vector<2x1xf32>
    %294 = arith.addf %293, %292 : vector<2x1xf32>
    %295 = arith.divf %293, %294 : vector<2x1xf32>
    %296 = arith.mulf %287, %235 : vector<2x1xf32>
    %297 = arith.mulf %281, %289 : vector<2x1xf32>
    %298 = arith.addf %296, %297 : vector<2x1xf32>
    %299 = math.tanh %298 : vector<2x1xf32>
    %300 = arith.mulf %295, %299 : vector<2x1xf32>
    %301 = vector.extract_strided_slice %7 {offsets = [4, 0], sizes = [1, 512], strides = [1, 1]} : vector<8x512xf32> to vector<1x512xf32>
    %302 = arith.truncf %266 : vector<1x128xf32> to vector<1x128xbf16>
    %cst_65 = arith.constant dense<0.000000e+00> : vector<1x512xf32>
    %303 = tpu.matmul %302, %42, %cst_65 {dimension_numbers = #tpu.dot_dimension_numbers<[1], [0], [0], [1], [0, 0, 1, 1], [], []>} : vector<1x128xbf16>, vector<128x512xbf16>, vector<1x512xf32> -> vector<1x512xf32>
    %304 = arith.addf %301, %303 : vector<1x512xf32>
    %305 = vector.extract_strided_slice %304 {offsets = [0, 0], sizes = [1, 128], strides = [1, 1]} : vector<1x512xf32> to vector<1x128xf32>
    %306 = arith.negf %305 : vector<1x128xf32>
    %307 = math.exp %306 : vector<1x128xf32>
    %cst_66 = arith.constant 1.000000e+00 : f32
    %308 = vector.broadcast %cst_66 : f32 to vector<1x128xf32>
    %309 = arith.addf %308, %307 : vector<1x128xf32>
    %310 = arith.divf %308, %309 : vector<1x128xf32>
    %311 = vector.extract_strided_slice %304 {offsets = [0, 128], sizes = [1, 128], strides = [1, 1]} : vector<1x512xf32> to vector<1x128xf32>
    %312 = arith.negf %311 : vector<1x128xf32>
    %313 = math.exp %312 : vector<1x128xf32>
    %cst_67 = arith.constant 1.000000e+00 : f32
    %314 = vector.broadcast %cst_67 : f32 to vector<1x128xf32>
    %315 = arith.addf %314, %313 : vector<1x128xf32>
    %316 = arith.divf %314, %315 : vector<1x128xf32>
    %317 = vector.extract_strided_slice %304 {offsets = [0, 256], sizes = [1, 128], strides = [1, 1]} : vector<1x512xf32> to vector<1x128xf32>
    %318 = math.tanh %317 : vector<1x128xf32>
    %319 = vector.extract_strided_slice %304 {offsets = [0, 384], sizes = [1, 128], strides = [1, 1]} : vector<1x512xf32> to vector<1x128xf32>
    %320 = arith.negf %319 : vector<1x128xf32>
    %321 = math.exp %320 : vector<1x128xf32>
    %cst_68 = arith.constant 1.000000e+00 : f32
    %322 = vector.broadcast %cst_68 : f32 to vector<1x128xf32>
    %323 = arith.addf %322, %321 : vector<1x128xf32>
    %324 = arith.divf %322, %323 : vector<1x128xf32>
    %325 = arith.mulf %316, %264 : vector<1x128xf32>
    %326 = arith.mulf %310, %318 : vector<1x128xf32>
    %327 = arith.addf %325, %326 : vector<1x128xf32>
    %328 = math.tanh %327 : vector<1x128xf32>
    %329 = arith.mulf %324, %328 : vector<1x128xf32>
    %330 = arith.mulf %329, %43 : vector<1x128xf32>
    %cst_69 = arith.constant dense<0.000000e+00> : vector<1xf32>
    %331 = vector.multi_reduction <add>, %330, %cst_69 [1] : vector<1x128xf32> to vector<1xf32>
    %332 = vector.shape_cast %331 : vector<1xf32> to vector<1x1xf32>
    %333 = arith.addf %332, %44 : vector<1x1xf32>
    %334 = vector.extract_strided_slice %40 {offsets = [0, 4, 0], sizes = [2, 1, 4], strides = [1, 1, 1]} : vector<2x8x4xf32> to vector<2x1x4xf32>
    %335 = vector.shape_cast %334 : vector<2x1x4xf32> to vector<2x4xf32>
    %336 = vector.broadcast %300 : vector<2x1xf32> to vector<2x4xf32>
    %337 = arith.mulf %336, %41 : vector<2x4xf32>
    %338 = arith.addf %335, %337 : vector<2x4xf32>
    %339 = vector.extract_strided_slice %338 {offsets = [0, 0], sizes = [2, 1], strides = [1, 1]} : vector<2x4xf32> to vector<2x1xf32>
    %340 = arith.negf %339 : vector<2x1xf32>
    %341 = math.exp %340 : vector<2x1xf32>
    %cst_70 = arith.constant 1.000000e+00 : f32
    %342 = vector.broadcast %cst_70 : f32 to vector<2x1xf32>
    %343 = arith.addf %342, %341 : vector<2x1xf32>
    %344 = arith.divf %342, %343 : vector<2x1xf32>
    %345 = vector.extract_strided_slice %338 {offsets = [0, 1], sizes = [2, 1], strides = [1, 1]} : vector<2x4xf32> to vector<2x1xf32>
    %346 = arith.negf %345 : vector<2x1xf32>
    %347 = math.exp %346 : vector<2x1xf32>
    %cst_71 = arith.constant 1.000000e+00 : f32
    %348 = vector.broadcast %cst_71 : f32 to vector<2x1xf32>
    %349 = arith.addf %348, %347 : vector<2x1xf32>
    %350 = arith.divf %348, %349 : vector<2x1xf32>
    %351 = vector.extract_strided_slice %338 {offsets = [0, 2], sizes = [2, 1], strides = [1, 1]} : vector<2x4xf32> to vector<2x1xf32>
    %352 = math.tanh %351 : vector<2x1xf32>
    %353 = vector.extract_strided_slice %338 {offsets = [0, 3], sizes = [2, 1], strides = [1, 1]} : vector<2x4xf32> to vector<2x1xf32>
    %354 = arith.negf %353 : vector<2x1xf32>
    %355 = math.exp %354 : vector<2x1xf32>
    %cst_72 = arith.constant 1.000000e+00 : f32
    %356 = vector.broadcast %cst_72 : f32 to vector<2x1xf32>
    %357 = arith.addf %356, %355 : vector<2x1xf32>
    %358 = arith.divf %356, %357 : vector<2x1xf32>
    %359 = arith.mulf %350, %298 : vector<2x1xf32>
    %360 = arith.mulf %344, %352 : vector<2x1xf32>
    %361 = arith.addf %359, %360 : vector<2x1xf32>
    %362 = math.tanh %361 : vector<2x1xf32>
    %363 = arith.mulf %358, %362 : vector<2x1xf32>
    %364 = vector.extract_strided_slice %7 {offsets = [5, 0], sizes = [1, 512], strides = [1, 1]} : vector<8x512xf32> to vector<1x512xf32>
    %365 = arith.truncf %329 : vector<1x128xf32> to vector<1x128xbf16>
    %cst_73 = arith.constant dense<0.000000e+00> : vector<1x512xf32>
    %366 = tpu.matmul %365, %42, %cst_73 {dimension_numbers = #tpu.dot_dimension_numbers<[1], [0], [0], [1], [0, 0, 1, 1], [], []>} : vector<1x128xbf16>, vector<128x512xbf16>, vector<1x512xf32> -> vector<1x512xf32>
    %367 = arith.addf %364, %366 : vector<1x512xf32>
    %368 = vector.extract_strided_slice %367 {offsets = [0, 0], sizes = [1, 128], strides = [1, 1]} : vector<1x512xf32> to vector<1x128xf32>
    %369 = arith.negf %368 : vector<1x128xf32>
    %370 = math.exp %369 : vector<1x128xf32>
    %cst_74 = arith.constant 1.000000e+00 : f32
    %371 = vector.broadcast %cst_74 : f32 to vector<1x128xf32>
    %372 = arith.addf %371, %370 : vector<1x128xf32>
    %373 = arith.divf %371, %372 : vector<1x128xf32>
    %374 = vector.extract_strided_slice %367 {offsets = [0, 128], sizes = [1, 128], strides = [1, 1]} : vector<1x512xf32> to vector<1x128xf32>
    %375 = arith.negf %374 : vector<1x128xf32>
    %376 = math.exp %375 : vector<1x128xf32>
    %cst_75 = arith.constant 1.000000e+00 : f32
    %377 = vector.broadcast %cst_75 : f32 to vector<1x128xf32>
    %378 = arith.addf %377, %376 : vector<1x128xf32>
    %379 = arith.divf %377, %378 : vector<1x128xf32>
    %380 = vector.extract_strided_slice %367 {offsets = [0, 256], sizes = [1, 128], strides = [1, 1]} : vector<1x512xf32> to vector<1x128xf32>
    %381 = math.tanh %380 : vector<1x128xf32>
    %382 = vector.extract_strided_slice %367 {offsets = [0, 384], sizes = [1, 128], strides = [1, 1]} : vector<1x512xf32> to vector<1x128xf32>
    %383 = arith.negf %382 : vector<1x128xf32>
    %384 = math.exp %383 : vector<1x128xf32>
    %cst_76 = arith.constant 1.000000e+00 : f32
    %385 = vector.broadcast %cst_76 : f32 to vector<1x128xf32>
    %386 = arith.addf %385, %384 : vector<1x128xf32>
    %387 = arith.divf %385, %386 : vector<1x128xf32>
    %388 = arith.mulf %379, %327 : vector<1x128xf32>
    %389 = arith.mulf %373, %381 : vector<1x128xf32>
    %390 = arith.addf %388, %389 : vector<1x128xf32>
    %391 = math.tanh %390 : vector<1x128xf32>
    %392 = arith.mulf %387, %391 : vector<1x128xf32>
    %393 = arith.mulf %392, %43 : vector<1x128xf32>
    %cst_77 = arith.constant dense<0.000000e+00> : vector<1xf32>
    %394 = vector.multi_reduction <add>, %393, %cst_77 [1] : vector<1x128xf32> to vector<1xf32>
    %395 = vector.shape_cast %394 : vector<1xf32> to vector<1x1xf32>
    %396 = arith.addf %395, %44 : vector<1x1xf32>
    %397 = vector.extract_strided_slice %40 {offsets = [0, 5, 0], sizes = [2, 1, 4], strides = [1, 1, 1]} : vector<2x8x4xf32> to vector<2x1x4xf32>
    %398 = vector.shape_cast %397 : vector<2x1x4xf32> to vector<2x4xf32>
    %399 = vector.broadcast %363 : vector<2x1xf32> to vector<2x4xf32>
    %400 = arith.mulf %399, %41 : vector<2x4xf32>
    %401 = arith.addf %398, %400 : vector<2x4xf32>
    %402 = vector.extract_strided_slice %401 {offsets = [0, 0], sizes = [2, 1], strides = [1, 1]} : vector<2x4xf32> to vector<2x1xf32>
    %403 = arith.negf %402 : vector<2x1xf32>
    %404 = math.exp %403 : vector<2x1xf32>
    %cst_78 = arith.constant 1.000000e+00 : f32
    %405 = vector.broadcast %cst_78 : f32 to vector<2x1xf32>
    %406 = arith.addf %405, %404 : vector<2x1xf32>
    %407 = arith.divf %405, %406 : vector<2x1xf32>
    %408 = vector.extract_strided_slice %401 {offsets = [0, 1], sizes = [2, 1], strides = [1, 1]} : vector<2x4xf32> to vector<2x1xf32>
    %409 = arith.negf %408 : vector<2x1xf32>
    %410 = math.exp %409 : vector<2x1xf32>
    %cst_79 = arith.constant 1.000000e+00 : f32
    %411 = vector.broadcast %cst_79 : f32 to vector<2x1xf32>
    %412 = arith.addf %411, %410 : vector<2x1xf32>
    %413 = arith.divf %411, %412 : vector<2x1xf32>
    %414 = vector.extract_strided_slice %401 {offsets = [0, 2], sizes = [2, 1], strides = [1, 1]} : vector<2x4xf32> to vector<2x1xf32>
    %415 = math.tanh %414 : vector<2x1xf32>
    %416 = vector.extract_strided_slice %401 {offsets = [0, 3], sizes = [2, 1], strides = [1, 1]} : vector<2x4xf32> to vector<2x1xf32>
    %417 = arith.negf %416 : vector<2x1xf32>
    %418 = math.exp %417 : vector<2x1xf32>
    %cst_80 = arith.constant 1.000000e+00 : f32
    %419 = vector.broadcast %cst_80 : f32 to vector<2x1xf32>
    %420 = arith.addf %419, %418 : vector<2x1xf32>
    %421 = arith.divf %419, %420 : vector<2x1xf32>
    %422 = arith.mulf %413, %361 : vector<2x1xf32>
    %423 = arith.mulf %407, %415 : vector<2x1xf32>
    %424 = arith.addf %422, %423 : vector<2x1xf32>
    %425 = math.tanh %424 : vector<2x1xf32>
    %426 = arith.mulf %421, %425 : vector<2x1xf32>
    %427 = vector.extract_strided_slice %7 {offsets = [6, 0], sizes = [1, 512], strides = [1, 1]} : vector<8x512xf32> to vector<1x512xf32>
    %428 = arith.truncf %392 : vector<1x128xf32> to vector<1x128xbf16>
    %cst_81 = arith.constant dense<0.000000e+00> : vector<1x512xf32>
    %429 = tpu.matmul %428, %42, %cst_81 {dimension_numbers = #tpu.dot_dimension_numbers<[1], [0], [0], [1], [0, 0, 1, 1], [], []>} : vector<1x128xbf16>, vector<128x512xbf16>, vector<1x512xf32> -> vector<1x512xf32>
    %430 = arith.addf %427, %429 : vector<1x512xf32>
    %431 = vector.extract_strided_slice %430 {offsets = [0, 0], sizes = [1, 128], strides = [1, 1]} : vector<1x512xf32> to vector<1x128xf32>
    %432 = arith.negf %431 : vector<1x128xf32>
    %433 = math.exp %432 : vector<1x128xf32>
    %cst_82 = arith.constant 1.000000e+00 : f32
    %434 = vector.broadcast %cst_82 : f32 to vector<1x128xf32>
    %435 = arith.addf %434, %433 : vector<1x128xf32>
    %436 = arith.divf %434, %435 : vector<1x128xf32>
    %437 = vector.extract_strided_slice %430 {offsets = [0, 128], sizes = [1, 128], strides = [1, 1]} : vector<1x512xf32> to vector<1x128xf32>
    %438 = arith.negf %437 : vector<1x128xf32>
    %439 = math.exp %438 : vector<1x128xf32>
    %cst_83 = arith.constant 1.000000e+00 : f32
    %440 = vector.broadcast %cst_83 : f32 to vector<1x128xf32>
    %441 = arith.addf %440, %439 : vector<1x128xf32>
    %442 = arith.divf %440, %441 : vector<1x128xf32>
    %443 = vector.extract_strided_slice %430 {offsets = [0, 256], sizes = [1, 128], strides = [1, 1]} : vector<1x512xf32> to vector<1x128xf32>
    %444 = math.tanh %443 : vector<1x128xf32>
    %445 = vector.extract_strided_slice %430 {offsets = [0, 384], sizes = [1, 128], strides = [1, 1]} : vector<1x512xf32> to vector<1x128xf32>
    %446 = arith.negf %445 : vector<1x128xf32>
    %447 = math.exp %446 : vector<1x128xf32>
    %cst_84 = arith.constant 1.000000e+00 : f32
    %448 = vector.broadcast %cst_84 : f32 to vector<1x128xf32>
    %449 = arith.addf %448, %447 : vector<1x128xf32>
    %450 = arith.divf %448, %449 : vector<1x128xf32>
    %451 = arith.mulf %442, %390 : vector<1x128xf32>
    %452 = arith.mulf %436, %444 : vector<1x128xf32>
    %453 = arith.addf %451, %452 : vector<1x128xf32>
    %454 = math.tanh %453 : vector<1x128xf32>
    %455 = arith.mulf %450, %454 : vector<1x128xf32>
    %456 = arith.mulf %455, %43 : vector<1x128xf32>
    %cst_85 = arith.constant dense<0.000000e+00> : vector<1xf32>
    %457 = vector.multi_reduction <add>, %456, %cst_85 [1] : vector<1x128xf32> to vector<1xf32>
    %458 = vector.shape_cast %457 : vector<1xf32> to vector<1x1xf32>
    %459 = arith.addf %458, %44 : vector<1x1xf32>
    %460 = vector.extract_strided_slice %40 {offsets = [0, 6, 0], sizes = [2, 1, 4], strides = [1, 1, 1]} : vector<2x8x4xf32> to vector<2x1x4xf32>
    %461 = vector.shape_cast %460 : vector<2x1x4xf32> to vector<2x4xf32>
    %462 = vector.broadcast %426 : vector<2x1xf32> to vector<2x4xf32>
    %463 = arith.mulf %462, %41 : vector<2x4xf32>
    %464 = arith.addf %461, %463 : vector<2x4xf32>
    %465 = vector.extract_strided_slice %464 {offsets = [0, 0], sizes = [2, 1], strides = [1, 1]} : vector<2x4xf32> to vector<2x1xf32>
    %466 = arith.negf %465 : vector<2x1xf32>
    %467 = math.exp %466 : vector<2x1xf32>
    %cst_86 = arith.constant 1.000000e+00 : f32
    %468 = vector.broadcast %cst_86 : f32 to vector<2x1xf32>
    %469 = arith.addf %468, %467 : vector<2x1xf32>
    %470 = arith.divf %468, %469 : vector<2x1xf32>
    %471 = vector.extract_strided_slice %464 {offsets = [0, 1], sizes = [2, 1], strides = [1, 1]} : vector<2x4xf32> to vector<2x1xf32>
    %472 = arith.negf %471 : vector<2x1xf32>
    %473 = math.exp %472 : vector<2x1xf32>
    %cst_87 = arith.constant 1.000000e+00 : f32
    %474 = vector.broadcast %cst_87 : f32 to vector<2x1xf32>
    %475 = arith.addf %474, %473 : vector<2x1xf32>
    %476 = arith.divf %474, %475 : vector<2x1xf32>
    %477 = vector.extract_strided_slice %464 {offsets = [0, 2], sizes = [2, 1], strides = [1, 1]} : vector<2x4xf32> to vector<2x1xf32>
    %478 = math.tanh %477 : vector<2x1xf32>
    %479 = vector.extract_strided_slice %464 {offsets = [0, 3], sizes = [2, 1], strides = [1, 1]} : vector<2x4xf32> to vector<2x1xf32>
    %480 = arith.negf %479 : vector<2x1xf32>
    %481 = math.exp %480 : vector<2x1xf32>
    %cst_88 = arith.constant 1.000000e+00 : f32
    %482 = vector.broadcast %cst_88 : f32 to vector<2x1xf32>
    %483 = arith.addf %482, %481 : vector<2x1xf32>
    %484 = arith.divf %482, %483 : vector<2x1xf32>
    %485 = arith.mulf %476, %424 : vector<2x1xf32>
    %486 = arith.mulf %470, %478 : vector<2x1xf32>
    %487 = arith.addf %485, %486 : vector<2x1xf32>
    %488 = math.tanh %487 : vector<2x1xf32>
    %489 = arith.mulf %484, %488 : vector<2x1xf32>
    %490 = vector.extract_strided_slice %7 {offsets = [7, 0], sizes = [1, 512], strides = [1, 1]} : vector<8x512xf32> to vector<1x512xf32>
    %491 = arith.truncf %455 : vector<1x128xf32> to vector<1x128xbf16>
    %cst_89 = arith.constant dense<0.000000e+00> : vector<1x512xf32>
    %492 = tpu.matmul %491, %42, %cst_89 {dimension_numbers = #tpu.dot_dimension_numbers<[1], [0], [0], [1], [0, 0, 1, 1], [], []>} : vector<1x128xbf16>, vector<128x512xbf16>, vector<1x512xf32> -> vector<1x512xf32>
    %493 = arith.addf %490, %492 : vector<1x512xf32>
    %494 = vector.extract_strided_slice %493 {offsets = [0, 0], sizes = [1, 128], strides = [1, 1]} : vector<1x512xf32> to vector<1x128xf32>
    %495 = arith.negf %494 : vector<1x128xf32>
    %496 = math.exp %495 : vector<1x128xf32>
    %cst_90 = arith.constant 1.000000e+00 : f32
    %497 = vector.broadcast %cst_90 : f32 to vector<1x128xf32>
    %498 = arith.addf %497, %496 : vector<1x128xf32>
    %499 = arith.divf %497, %498 : vector<1x128xf32>
    %500 = vector.extract_strided_slice %493 {offsets = [0, 128], sizes = [1, 128], strides = [1, 1]} : vector<1x512xf32> to vector<1x128xf32>
    %501 = arith.negf %500 : vector<1x128xf32>
    %502 = math.exp %501 : vector<1x128xf32>
    %cst_91 = arith.constant 1.000000e+00 : f32
    %503 = vector.broadcast %cst_91 : f32 to vector<1x128xf32>
    %504 = arith.addf %503, %502 : vector<1x128xf32>
    %505 = arith.divf %503, %504 : vector<1x128xf32>
    %506 = vector.extract_strided_slice %493 {offsets = [0, 256], sizes = [1, 128], strides = [1, 1]} : vector<1x512xf32> to vector<1x128xf32>
    %507 = math.tanh %506 : vector<1x128xf32>
    %508 = vector.extract_strided_slice %493 {offsets = [0, 384], sizes = [1, 128], strides = [1, 1]} : vector<1x512xf32> to vector<1x128xf32>
    %509 = arith.negf %508 : vector<1x128xf32>
    %510 = math.exp %509 : vector<1x128xf32>
    %cst_92 = arith.constant 1.000000e+00 : f32
    %511 = vector.broadcast %cst_92 : f32 to vector<1x128xf32>
    %512 = arith.addf %511, %510 : vector<1x128xf32>
    %513 = arith.divf %511, %512 : vector<1x128xf32>
    %514 = arith.mulf %505, %453 : vector<1x128xf32>
    %515 = arith.mulf %499, %507 : vector<1x128xf32>
    %516 = arith.addf %514, %515 : vector<1x128xf32>
    %517 = math.tanh %516 : vector<1x128xf32>
    %518 = arith.mulf %513, %517 : vector<1x128xf32>
    %519 = arith.mulf %518, %43 : vector<1x128xf32>
    %cst_93 = arith.constant dense<0.000000e+00> : vector<1xf32>
    %520 = vector.multi_reduction <add>, %519, %cst_93 [1] : vector<1x128xf32> to vector<1xf32>
    %521 = vector.shape_cast %520 : vector<1xf32> to vector<1x1xf32>
    %522 = arith.addf %521, %44 : vector<1x1xf32>
    %523 = vector.extract_strided_slice %40 {offsets = [0, 7, 0], sizes = [2, 1, 4], strides = [1, 1, 1]} : vector<2x8x4xf32> to vector<2x1x4xf32>
    %524 = vector.shape_cast %523 : vector<2x1x4xf32> to vector<2x4xf32>
    %525 = vector.broadcast %489 : vector<2x1xf32> to vector<2x4xf32>
    %526 = arith.mulf %525, %41 : vector<2x4xf32>
    %527 = arith.addf %524, %526 : vector<2x4xf32>
    %528 = vector.extract_strided_slice %527 {offsets = [0, 0], sizes = [2, 1], strides = [1, 1]} : vector<2x4xf32> to vector<2x1xf32>
    %529 = arith.negf %528 : vector<2x1xf32>
    %530 = math.exp %529 : vector<2x1xf32>
    %cst_94 = arith.constant 1.000000e+00 : f32
    %531 = vector.broadcast %cst_94 : f32 to vector<2x1xf32>
    %532 = arith.addf %531, %530 : vector<2x1xf32>
    %533 = arith.divf %531, %532 : vector<2x1xf32>
    %534 = vector.extract_strided_slice %527 {offsets = [0, 1], sizes = [2, 1], strides = [1, 1]} : vector<2x4xf32> to vector<2x1xf32>
    %535 = arith.negf %534 : vector<2x1xf32>
    %536 = math.exp %535 : vector<2x1xf32>
    %cst_95 = arith.constant 1.000000e+00 : f32
    %537 = vector.broadcast %cst_95 : f32 to vector<2x1xf32>
    %538 = arith.addf %537, %536 : vector<2x1xf32>
    %539 = arith.divf %537, %538 : vector<2x1xf32>
    %540 = vector.extract_strided_slice %527 {offsets = [0, 2], sizes = [2, 1], strides = [1, 1]} : vector<2x4xf32> to vector<2x1xf32>
    %541 = math.tanh %540 : vector<2x1xf32>
    %542 = vector.extract_strided_slice %527 {offsets = [0, 3], sizes = [2, 1], strides = [1, 1]} : vector<2x4xf32> to vector<2x1xf32>
    %543 = arith.negf %542 : vector<2x1xf32>
    %544 = math.exp %543 : vector<2x1xf32>
    %cst_96 = arith.constant 1.000000e+00 : f32
    %545 = vector.broadcast %cst_96 : f32 to vector<2x1xf32>
    %546 = arith.addf %545, %544 : vector<2x1xf32>
    %547 = arith.divf %545, %546 : vector<2x1xf32>
    %548 = arith.mulf %539, %487 : vector<2x1xf32>
    %549 = arith.mulf %533, %541 : vector<2x1xf32>
    %550 = arith.addf %548, %549 : vector<2x1xf32>
    %551 = math.tanh %550 : vector<2x1xf32>
    %552 = arith.mulf %547, %551 : vector<2x1xf32>
    %553 = tpu.concatenate %81, %144, %207, %270, %333, %396, %459, %522 in 1 : vector<1x1xf32>, vector<1x1xf32>, vector<1x1xf32>, vector<1x1xf32>, vector<1x1xf32>, vector<1x1xf32>, vector<1x1xf32>, vector<1x1xf32> -> vector<1x8xf32>
    %554 = tpu.concatenate %111, %174, %237, %300, %363, %426, %489, %552 in 1 : vector<2x1xf32>, vector<2x1xf32>, vector<2x1xf32>, vector<2x1xf32>, vector<2x1xf32>, vector<2x1xf32>, vector<2x1xf32>, vector<2x1xf32> -> vector<2x8xf32>
    %c0_97 = arith.constant 0 : index
    %c0_98 = arith.constant 0 : index
    %c0_99 = arith.constant 0 : index
    %555 = vector.load %arg4[%c0_97, %c0_98, %c0_99] : memref<1x1x8xf32, #tpu.memory_space<vmem>>, vector<1x1x8xf32>
    %556 = vector.shape_cast %555 : vector<1x1x8xf32> to vector<1x8xf32>
    %557 = vector.extract_strided_slice %554 {offsets = [0, 0], sizes = [1, 8], strides = [1, 1]} : vector<2x8xf32> to vector<1x8xf32>
    %558 = arith.addf %553, %557 : vector<1x8xf32>
    %559 = vector.extract_strided_slice %554 {offsets = [1, 0], sizes = [1, 8], strides = [1, 1]} : vector<2x8xf32> to vector<1x8xf32>
    %560 = arith.addf %558, %559 : vector<1x8xf32>
    %561 = arith.mulf %560, %556 : vector<1x8xf32>
    %562 = vector.shape_cast %561 : vector<1x8xf32> to vector<1x1x8xf32>
    %c0_100 = arith.constant 0 : index
    %c0_101 = arith.constant 0 : index
    %c0_102 = arith.constant 0 : index
    %563 = vector.load %arg16[%c0_100, %c0_101, %c0_102] : memref<1x1x8xf32, #tpu.memory_space<vmem>>, vector<1x1x8xf32>
    tpu.vector_store %arg16[%c0_100, %c0_101, %c0_102], %562 {strides = array<i32>} : memref<1x1x8xf32, #tpu.memory_space<vmem>>, vector<1x1x8xf32>,
    %c0_103 = arith.constant 0 : index
    %c0_104 = arith.constant 0 : index
    %c0_105 = arith.constant 0 : index
    %564 = vector.load %arg5[%c0_103, %c0_104, %c0_105] : memref<1x1x8xf32, #tpu.memory_space<vmem>>, vector<1x1x8xf32>
    %565 = vector.shape_cast %564 : vector<1x1x8xf32> to vector<1x8xf32>
    %566 = arith.subf %561, %565 : vector<1x8xf32>
    %567 = arith.mulf %566, %566 : vector<1x8xf32>
    %568 = vector.shape_cast %567 : vector<1x8xf32> to vector<1x1x8xf32>
    %cst_106 = arith.constant dense<0.000000e+00> : vector<1xf32>
    %569 = vector.multi_reduction <add>, %568, %cst_106 [1, 2] : vector<1x1x8xf32> to vector<1xf32>
    %570 = vector.shape_cast %569 : vector<1xf32> to vector<1x1x1xf32>
    %571 = vector.extract %570[0, 0, 0] : f32 from vector<1x1x1xf32>
    %cst_107 = arith.constant 0.000000e+00 : f32
    %572 = vector.broadcast %cst_107 : f32 to vector<1x1x128xf32>
    %573 = vector.broadcast %571 : f32 to vector<1x1x128xf32>
    %574 = arith.addf %572, %573 : vector<1x1x128xf32>
    %c0_108 = arith.constant 0 : index
    %c0_109 = arith.constant 0 : index
    %c0_110 = arith.constant 0 : index
    %575 = vector.load %arg17[%c0_108, %c0_109, %c0_110] : memref<1x1x128xf32, #tpu.memory_space<vmem>>, vector<1x1x128xf32>
    tpu.vector_store %arg17[%c0_108, %c0_109, %c0_110], %574 {strides = array<i32>} : memref<1x1x128xf32, #tpu.memory_space<vmem>>, vector<1x1x128xf32>,
    return
  }
  func.func @transform_0(%arg0: i32) -> (i32, i32, i32) {
    %c0_i32 = arith.constant 0 : i32
    %c0_i32_0 = arith.constant 0 : i32
    %c0_i32_1 = arith.constant 0 : i32
    return %arg0, %c0_i32, %c0_i32_0 : i32, i32, i32
  }
  func.func @transform_1(%arg0: i32) -> (i32, i32, i32) {
    %c0_i32 = arith.constant 0 : i32
    %c0_i32_0 = arith.constant 0 : i32
    %c0_i32_1 = arith.constant 0 : i32
    return %arg0, %c0_i32, %c0_i32_0 : i32, i32, i32
  }
  func.func @transform_2(%arg0: i32) -> (i32, i32, i32) {
    %c0_i32 = arith.constant 0 : i32
    %c0_i32_0 = arith.constant 0 : i32
    %c0_i32_1 = arith.constant 0 : i32
    return %arg0, %c0_i32, %c0_i32_0 : i32, i32, i32
  }
  func.func @transform_3(%arg0: i32) -> (i32, i32, i32) {
    %c0_i32 = arith.constant 0 : i32
    %c0_i32_0 = arith.constant 0 : i32
    %c0_i32_1 = arith.constant 0 : i32
    return %arg0, %c0_i32, %c0_i32_0 : i32, i32, i32
  }
  func.func @transform_4(%arg0: i32) -> (i32, i32, i32) {
    %c0_i32 = arith.constant 0 : i32
    %c0_i32_0 = arith.constant 0 : i32
    %c0_i32_1 = arith.constant 0 : i32
    return %arg0, %c0_i32, %c0_i32_0 : i32, i32, i32
  }
  func.func @transform_5(%arg0: i32) -> (i32, i32) {
    %c0_i32 = arith.constant 0 : i32
    %c0_i32_0 = arith.constant 0 : i32
    %c0_i32_1 = arith.constant 0 : i32
    return %c0_i32, %c0_i32_0 : i32, i32
  }
  func.func @transform_6(%arg0: i32) -> (i32, i32) {
    %c0_i32 = arith.constant 0 : i32
    %c0_i32_0 = arith.constant 0 : i32
    %c0_i32_1 = arith.constant 0 : i32
    return %c0_i32, %c0_i32_0 : i32, i32
  }
  func.func @transform_7(%arg0: i32) -> (i32, i32) {
    %c0_i32 = arith.constant 0 : i32
    %c0_i32_0 = arith.constant 0 : i32
    %c0_i32_1 = arith.constant 0 : i32
    return %c0_i32, %c0_i32_0 : i32, i32
  }
  func.func @transform_8(%arg0: i32) -> (i32, i32) {
    %c0_i32 = arith.constant 0 : i32
    %c0_i32_0 = arith.constant 0 : i32
    %c0_i32_1 = arith.constant 0 : i32
    return %c0_i32, %c0_i32_0 : i32, i32
  }
  func.func @transform_9(%arg0: i32) -> (i32, i32) {
    %c0_i32 = arith.constant 0 : i32
    %c0_i32_0 = arith.constant 0 : i32
    %c0_i32_1 = arith.constant 0 : i32
    return %c0_i32, %c0_i32_0 : i32, i32
  }
  func.func @transform_10(%arg0: i32) -> (i32, i32) {
    %c0_i32 = arith.constant 0 : i32
    %c0_i32_0 = arith.constant 0 : i32
    %c0_i32_1 = arith.constant 0 : i32
    return %c0_i32, %c0_i32_0 : i32, i32
  }
  func.func @transform_11(%arg0: i32) -> (i32, i32) {
    %c0_i32 = arith.constant 0 : i32
    %c0_i32_0 = arith.constant 0 : i32
    %c0_i32_1 = arith.constant 0 : i32
    return %c0_i32, %c0_i32_0 : i32, i32
  }
  func.func @transform_12(%arg0: i32) -> (i32, i32) {
    %c0_i32 = arith.constant 0 : i32
    %c0_i32_0 = arith.constant 0 : i32
    %c0_i32_1 = arith.constant 0 : i32
    return %c0_i32, %c0_i32_0 : i32, i32
  }
  func.func @transform_13(%arg0: i32) -> (i32, i32) {
    %c0_i32 = arith.constant 0 : i32
    %c0_i32_0 = arith.constant 0 : i32
    %c0_i32_1 = arith.constant 0 : i32
    return %c0_i32, %c0_i32_0 : i32, i32
  }
  func.func @transform_14(%arg0: i32) -> (i32, i32) {
    %c0_i32 = arith.constant 0 : i32
    %c0_i32_0 = arith.constant 0 : i32
    %c0_i32_1 = arith.constant 0 : i32
    return %c0_i32, %c0_i32_0 : i32, i32
  }
  func.func @transform_15(%arg0: i32) -> (i32, i32, i32) {
    %c0_i32 = arith.constant 0 : i32
    %c0_i32_0 = arith.constant 0 : i32
    %c0_i32_1 = arith.constant 0 : i32
    return %arg0, %c0_i32, %c0_i32_0 : i32, i32, i32
  }
  func.func @transform_16(%arg0: i32) -> (i32, i32, i32) {
    %c0_i32 = arith.constant 0 : i32
    %c0_i32_0 = arith.constant 0 : i32
    %c0_i32_1 = arith.constant 0 : i32
    return %arg0, %c0_i32, %c0_i32_0 : i32, i32, i32
  }
}

</mosaic_0001>

<bundles_post_ra>
// kernel: forward.1
= control target key start
LH: loop header
LB: loop body
LE: loop exit
PB: predicated region body
PF: predicated region fallthrough
CT: control target
= control target key end

     0   :  { %s7197_s0 = inlined_call_operand.vmem [shape: f32[2,8,768], index: 0, kind: input, shape index: {}]   ;;  %s7198_s1 = inlined_call_operand.vmem [shape: f32[2,8,3], index: 1, kind: input, shape index: {}]   ;;  %s7199_s2 = inlined_call_operand.vmem [shape: f32[2,8,88], index: 2, kind: input, shape index: {}]   ;;  %s7200_s3 = inlined_call_operand.vmem [shape: f32[2,1,8], index: 3, kind: input, shape index: {}]   ;;  %s7201_s4 = inlined_call_operand.vmem [shape: f32[2,1,8], index: 4, kind: input, shape index: {}]   ;;  %s7202_s5 = inlined_call_operand.vmem [shape: bf16[768,512], index: 5, kind: input, shape index: {}]   ;;  %s7203_s6 = inlined_call_operand.vmem [shape: f32[1,512], index: 6, kind: input, shape index: {}]   ;;  %s7204_s7 = inlined_call_operand.vmem [shape: bf16[128,512], index: 7, kind: input, shape index: {}]   ;;  %s7205_s8 = inlined_call_operand.vmem [shape: f32[1,128], index: 8, kind: input, shape index: {}]   ;;  %s7206_s9 = inlined_call_operand.<no memory space> [shape: f32[1,1], index: 9, kind: input, shape index: {}]   ;;  %s7207_s10 = inlined_call_operand.vmem [shape: f32[88,4], index: 10, kind: input, shape index: {}]   ;;  %s7208_s11 = inlined_call_operand.vmem [shape: f32[1,4], index: 11, kind: input, shape index: {}]   ;;  %s7209_s12 = inlined_call_operand.vmem [shape: f32[3,4], index: 12, kind: input, shape index: {}]   ;;  %s7210_s13 = inlined_call_operand.vmem [shape: f32[1,4], index: 13, kind: input, shape index: {}]   ;;  %s7211_s14 = inlined_call_operand.vmem [shape: f32[2,4], index: 14, kind: input, shape index: {}]   ;;  %s7212_s15 = inlined_call_operand.hbm [shape: f32[2,1,8], index: 15, kind: output, shape index: {0}]   ;;  %s7213_s16 = inlined_call_operand.vmem [shape: f32[2,1,128], index: 16, kind: output, shape index: {1}]  }
   0x1   :  { %7227 = sst [smem:[#allocation18_spill]] %s7197_s0  ;;  %v22_v0 = vstv %s7206_s9 }
   0x2   :  { %7228 = sst [smem:[#allocation19_spill]] %s7213_s16  ;;  %23 = vst [vmem:[#allocation2] sm:$0x1] %v22_v0 }
   0x3   :  { %24 = vsyncpa [#allocation4], 0 }
   0x4   :  { %26 = vsyncpa [#allocation4 + $0x1], 0  ;;  %s5448_s23 = smov 0   ;;  %s5450_s24 = smov 0  }
   0x5   :  { %s5452_s25 = smov 0   ;;  %s5454_s26 = smov 0  }
   0x6 LB: > { %7229 = sst [smem:[#allocation6_spill]] %s5329_s23  ;;  %s5469_s9 = sadd.s32 4294967295, %s5341_s26   ;;  %s5341_s26 = sphi %s5454_s26, %s7256_s26   ;;  %s5337_s25 = sphi %s5452_s25, %s7258_s25   ;;  %s5333_s24 = sphi %s5450_s24, %s7260_s24   ;;  %s5329_s23 = sphi %s5448_s23, %s7259_s23  }
   0x7   : > { %7230 = sst [smem:[#allocation7_spill]] %s5337_s25  ;;  %s4279_s27 = sadd.s32 4294967294, %s5341_s26  }
   0x8   : > { %7231 = sst [smem:[#allocation8_spill]] %s5341_s26  ;;  %s5473_s28 = sadd.s32 1, %s5341_s26  }
   0x9   : > { %7232 = sst [smem:[#allocation9_spill]] %s5473_s28  ;;  %s379_s29 = sadd.s32 1, %s5337_s25 }
   0xa   : > { %s376_s30 = ssub.s32 %s5341_s26, %s5473_s28  ;;  %p389_p0 = scmp.ne.s32.totalorder %s5337_s25, %s5333_s24 }
   0xb   : > { %p377_p1 = scmp.eq.s32.totalorder %s376_s30, 0  ;;  %p390_p2 = scmp.eq.s32.totalorder %s5469_s9, 1 }
   0xc   : > { %p395_p3 = scmp.ne.s32.totalorder %s5333_s24, %s5329_s23  ;;  %p396_p4 = scmp.eq.s32.totalorder %s4279_s27, 1 }
   0xd   : > { %s5484_s0 = scalar_select %p377_p1, %s5337_s25, %s379_s29  }
   0xe   : > { %p5486_p5 = por %p390_p2, %p389_p0  ;;  %p5490_p6 = por %p396_p4, %p395_p3 }
   0xf   : > { %7233 = sst [smem:[#allocation10_spill]] %s5484_s0  ;;  %p4282_p7 = scmp.ge.s32.totalorder %s5341_s26, 1 }
  0x10   : > { %s7235_s18 = scalar_select %p5490_p6, 1, 0 }
  0x11   : > { %p504_p8 = scmp.lt.s32.totalorder %s5341_s26, 3 }
  0x12   : > { %7236 = sst [smem:[#allocation11_spill]] %s7235_s18 }
  0x13   : > { %p505_p9 = pnand %p4282_p7, %p504_p8 }
  0x15   : > { %508 = sbr.rel (%p505_p9) target bundleno = 4717 (0x126d), region = 80 }
  0x1a   : > { %v4656_v1 = vld [vmem:[%s7202_s5 + $0xe4] ss:$16 sps:$4 sm:$0xff]   ;;  %v4660_v3 = vld [vmem:[%s7202_s5 + $0xe0] ss:$16 sps:$4 sm:$0xff]   ;;  %p570_p10 = scmp.lt.s32.totalorder %s5469_s9, 1  ;;  %s7237_s26 = sld [smem:[#allocation18_spill]] }
  0x1b   : > { %v4658_v2 = vld [vmem:[%s7202_s5 + $0x2e4] ss:$16 sps:$4 sm:$0xff]   ;;  %1779 = vmatprep.subr.bf16.mxu0 %v4656_v1  ;;  %v4661_v4 = vld [vmem:[%s7202_s5 + $0x2e0] ss:$16 sps:$4 sm:$0xff]   ;;  %vm5347_vm0 = vmmov 0   ;;  %vm2044_vm1 = vcmask 719872  }
  0x1c   : > { %1820 = vmatprep.subr.bf16.mxu1 %v4658_v2  ;;  %v4662_v5 = vld [vmem:[%s7202_s5 + $0xc4] ss:$16 sps:$4 sm:$0xff]   ;;  %1780 = vmatpush1.bf16.msra.mxu0 %v4660_v3  ;;  %v4666_v7 = vld [vmem:[%s7202_s5 + $0xc0] ss:$16 sps:$4 sm:$0xff]   ;;  %s5606_s21 = scalar_select %p570_p10, %s5469_s9, 1  ;;  %vm2657_vm2 = vcmask 1041409  }
  0x1d   : > { %1821 = vmatpush1.bf16.msra.mxu1 %v4661_v4  ;;  %v4664_v6 = vld [vmem:[%s7202_s5 + $0x2c4] ss:$16 sps:$4 sm:$0xff]   ;;  %1781 = vmatprep.subr.bf16.mxu0 %v4662_v5  ;;  %v4667_v8 = vld [vmem:[%s7202_s5 + $0x2c0] ss:$16 sps:$4 sm:$0xff]   ;;  %s5351_s30 = smov 2   ;;  %vm2464_vm3 = vcmask 1040384  }
  0x1e   : > { %1822 = vmatprep.subr.bf16.mxu1 %v4664_v6  ;;  %v4668_v9 = vld [vmem:[%s7202_s5 + $0xa4] ss:$16 sps:$4 sm:$0xff]   ;;  %v4672_v11 = vld [vmem:[%s7202_s5 + $0xa0] ss:$16 sps:$4 sm:$0xff]   ;;  %s4593_s28 = smul.u32 48, %s5606_s21  ;;  %s4284_s23 = sshll.u32 %s5606_s21, 3 }
  0x1f   : > { %v4670_v10 = vld [vmem:[%s7202_s5 + $0x2a4] ss:$16 sps:$4 sm:$0xff]   ;;  %v4673_v12 = vld [vmem:[%s7202_s5 + $0x2a0] ss:$16 sps:$4 sm:$0xff]   ;;  %s578_s19 = scalar_lea.vmem %s7198_s1, %s4284_s23  ;;  %s582_s29 = scalar_lea.vmem %s7199_s2, %s4284_s23  ;;  %vm2877_vm4 = vcmask 1042434   ;;  %vm3088_vm5 = vcmask 1043459  }
  0x20   : > { %1782 = vmatpush1.bf16.msra.mxu0 %v4666_v7  ;;  %v4674_v13 = vld [vmem:[%s7202_s5 + $0x84] ss:$16 sps:$4 sm:$0xff]   ;;  %v4678_v15 = vld [vmem:[%s7202_s5 + $0x80] ss:$16 sps:$4 sm:$0xff]   ;;  %s5636_s16 = scalar_lea.vmem %s7237_s26, %s4593_s28  ;;  %s5349_s28 = smov 1   ;;  %vm3301_vm6 = vcmask 1044484  }
  0x21   : > { %1823 = vmatpush1.bf16.msra.mxu1 %v4667_v8  ;;  %1783 = vmatprep.subr.bf16.mxu0 %v4668_v9  ;;  %v4676_v14 = vld [vmem:[%s7202_s5 + $0x284] ss:$16 sps:$4 sm:$0xff]   ;;  %v4679_v16 = vld [vmem:[%s7202_s5 + $0x280] ss:$16 sps:$4 sm:$0xff]   ;;  %v594_v47 = vld [vmem:[%s5636_s16 + $0x8] sm:$0xff]  ;;  %vm3512_vm7 = vcmask 1045509  }
  0x22   : > { %1824 = vmatprep.subr.bf16.mxu1 %v4670_v10  ;;  %v4680_v17 = vld [vmem:[%s7202_s5 + $0x64] ss:$16 sps:$4 sm:$0xff]   ;;  %v4684_v19 = vld [vmem:[%s7202_s5 + $0x60] ss:$16 sps:$4 sm:$0xff]   ;;  %v5648_v49 = vpack.c.bf16 %v594_v47, %v594_v47  ;;  %v596_v50 = vld [vmem:[%s5636_s16 + $0x18] sm:$0xff]  ;;  %vm3725_vm8 = vcmask 1046534  }
  0x23   : > { %v4682_v18 = vld [vmem:[%s7202_s5 + $0x264] ss:$16 sps:$4 sm:$0xff]   ;;  %v4685_v20 = vld [vmem:[%s7202_s5 + $0x260] ss:$16 sps:$4 sm:$0xff]   ;;  %v5657_v53 = vpack.c.bf16 %v596_v50, %v596_v50  ;;  %v4757_v8 = vld [vmem:[%s7202_s5 + $0xec] ss:$16 sps:$4 sm:$0xff]  }
  0x24   : > { %1784 = vmatpush1.bf16.msra.mxu0 %v4672_v11  ;;  %v4686_v21 = vld [vmem:[%s7202_s5 + $0x44] ss:$16 sps:$4 sm:$0xff]   ;;  %v4690_v23 = vld [vmem:[%s7202_s5 + $0x40] ss:$16 sps:$4 sm:$0xff]   ;;  %1811 = vmatprep.mubr.bf16.mxu0 %v5648_v49  ;;  %v4755_v11 = vld [vmem:[%s7202_s5 + $0xe8] ss:$16 sps:$4 sm:$0xff]  }
  0x25   : > { %1825 = vmatpush1.bf16.msra.mxu1 %v4673_v12  ;;  %1785 = vmatprep.subr.bf16.mxu0 %v4674_v13  ;;  %v4688_v22 = vld [vmem:[%s7202_s5 + $0x244] ss:$16 sps:$4 sm:$0xff]   ;;  %v4691_v24 = vld [vmem:[%s7202_s5 + $0x240] ss:$16 sps:$4 sm:$0xff]   ;;  %vm3936_vm9 = vcmask 1047559   ;;  %s5352_s0 = smov 3  }
  0x26   : > { %1826 = vmatprep.subr.bf16.mxu1 %v4676_v14  ;;  %v4692_v25 = vld [vmem:[%s7202_s5 + $0x24] ss:$16 sps:$4 sm:$0xff]   ;;  %v4696_v27 = vld [vmem:[%s7202_s5 + $0x20] ss:$16 sps:$4 sm:$0xff]   ;;  %1852 = vmatprep.mubr.bf16.mxu1 %v5657_v53  ;;  %v4763_v14 = vld [vmem:[%s7202_s5 + $0xcc] ss:$16 sps:$4 sm:$0xff]  }
  0x27   : > { %v4694_v26 = vld [vmem:[%s7202_s5 + $0x224] ss:$16 sps:$4 sm:$0xff]   ;;  %v4697_v28 = vld [vmem:[%s7202_s5 + $0x220] ss:$16 sps:$4 sm:$0xff]   ;;  %s5353_s26 = smov 4   ;;  %s5354_s25 = smov 5  }
  0x28   : > { %1786 = vmatpush1.bf16.msra.mxu0 %v4678_v15  ;;  %v4698_v29 = vld [vmem:[%s7202_s5 + $0x4] ss:$16 sps:$4 sm:$0xff]   ;;  %v4702_v31 = vld [vmem:[%s7202_s5] ss:$16 sps:$4 sm:$0xff]   ;;  %s5355_s23 = smov 6   ;;  %s5357_s20 = smov 125  }
  0x29   : > { %1827 = vmatpush1.bf16.msra.mxu1 %v4679_v16  ;;  %1787 = vmatprep.subr.bf16.mxu0 %v4680_v17  ;;  %v4700_v30 = vld [vmem:[%s7202_s5 + $0x204] ss:$16 sps:$4 sm:$0xff]   ;;  %v4703_v32 = vld [vmem:[%s7202_s5 + $0x200] ss:$16 sps:$4 sm:$0xff]   ;;  %v4761_v16 = vld [vmem:[%s7202_s5 + $0xc8] ss:$16 sps:$4 sm:$0xff]  }
  0x2a   : > { %1828 = vmatprep.subr.bf16.mxu1 %v4682_v18  ;;  %v4704_v33 = vld [vmem:[%s7202_s5 + $0x1e4] ss:$16 sps:$4 sm:$0xff]   ;;  %v4708_v35 = vld [vmem:[%s7202_s5 + $0x1e0] ss:$16 sps:$4 sm:$0xff]   ;;  %v4769_v18 = vld [vmem:[%s7202_s5 + $0xac] ss:$16 sps:$4 sm:$0xff]  }
  0x2b   : > { %v4706_v34 = vld [vmem:[%s7202_s5 + $0x3e4] ss:$16 sps:$4 sm:$0xff]   ;;  %v4709_v36 = vld [vmem:[%s7202_s5 + $0x3e0] ss:$16 sps:$4 sm:$0xff]   ;;  %s5358_s18 = smov 127   ;;  %vm4052_vm10 = vcmask 7168  }
  0x2c   : > { %1788 = vmatpush1.bf16.msra.mxu0 %v4684_v19  ;;  %v4710_v37 = vld [vmem:[%s7202_s5 + $0x1c4] ss:$16 sps:$4 sm:$0xff]   ;;  %v4714_v39 = vld [vmem:[%s7202_s5 + $0x1c0] ss:$16 sps:$4 sm:$0xff]   ;;  %vm4054_vm11 = vcmask 15360   ;;  %vm4056_vm12 = vcmask 23552  }
  0x2d   : > { %1829 = vmatpush1.bf16.msra.mxu1 %v4685_v20  ;;  %1789 = vmatprep.subr.bf16.mxu0 %v4686_v21  ;;  %v4712_v38 = vld [vmem:[%s7202_s5 + $0x3c4] ss:$16 sps:$4 sm:$0xff]   ;;  %v4715_v40 = vld [vmem:[%s7202_s5 + $0x3c0] ss:$16 sps:$4 sm:$0xff]   ;;  %v4767_v20 = vld [vmem:[%s7202_s5 + $0xa8] ss:$16 sps:$4 sm:$0xff]  }
  0x2e   : > { %1830 = vmatprep.subr.bf16.mxu1 %v4688_v22  ;;  %v4716_v41 = vld [vmem:[%s7202_s5 + $0x1a4] ss:$16 sps:$4 sm:$0xff]   ;;  %v4720_v43 = vld [vmem:[%s7202_s5 + $0x1a0] ss:$16 sps:$4 sm:$0xff]   ;;  %v4775_v22 = vld [vmem:[%s7202_s5 + $0x8c] ss:$16 sps:$4 sm:$0xff]  }
  0x2f   : > { %v4718_v42 = vld [vmem:[%s7202_s5 + $0x3a4] ss:$16 sps:$4 sm:$0xff]   ;;  %v4721_v44 = vld [vmem:[%s7202_s5 + $0x3a0] ss:$16 sps:$4 sm:$0xff]   ;;  %vm4058_vm13 = vcmask 31744   ;;  %vm4060_vm14 = vcmask 39936  }
  0x30   : > { %1790 = vmatpush1.bf16.msra.mxu0 %v4690_v23  ;;  %v4722_v45 = vld [vmem:[%s7202_s5 + $0x184] ss:$16 sps:$4 sm:$0xff]   ;;  %v4726_v48 = vld [vmem:[%s7202_s5 + $0x180] ss:$16 sps:$4 sm:$0xff]   ;;  %vm4062_vm15 = vcmask 48128  }
  0x31   : > { %1831 = vmatpush1.bf16.msra.mxu1 %v4691_v24  ;;  %1791 = vmatprep.subr.bf16.mxu0 %v4692_v25  ;;  %v4724_v46 = vld [vmem:[%s7202_s5 + $0x384] ss:$16 sps:$4 sm:$0xff]   ;;  %v4727_v51 = vld [vmem:[%s7202_s5 + $0x380] ss:$16 sps:$4 sm:$0xff]   ;;  %v4773_v24 = vld [vmem:[%s7202_s5 + $0x88] ss:$16 sps:$4 sm:$0xff]  }
  0x32   : > { %1832 = vmatprep.subr.bf16.mxu1 %v4694_v26  ;;  %v4728_v52 = vld [vmem:[%s7202_s5 + $0x164] ss:$16 sps:$4 sm:$0xff]   ;;  %v4732_v55 = vld [vmem:[%s7202_s5 + $0x160] ss:$16 sps:$4 sm:$0xff]   ;;  %v4781_v26 = vld [vmem:[%s7202_s5 + $0x6c] ss:$16 sps:$4 sm:$0xff]  }
  0x33   : > { %v4730_v54 = vld [vmem:[%s7202_s5 + $0x364] ss:$16 sps:$4 sm:$0xff]   ;;  %v4733_v56 = vld [vmem:[%s7202_s5 + $0x360] ss:$16 sps:$4 sm:$0xff]  }
  0x34   : > { %1792 = vmatpush1.bf16.msra.mxu0 %v4696_v27  ;;  %v4734_v57 = vld [vmem:[%s7202_s5 + $0x144] ss:$16 sps:$4 sm:$0xff]   ;;  %v4738_v59 = vld [vmem:[%s7202_s5 + $0x140] ss:$16 sps:$4 sm:$0xff]  }
  0x35   : > { %1833 = vmatpush1.bf16.msra.mxu1 %v4697_v28  ;;  %1793 = vmatprep.subr.bf16.mxu0 %v4698_v29  ;;  %v4736_v58 = vld [vmem:[%s7202_s5 + $0x344] ss:$16 sps:$4 sm:$0xff]   ;;  %v4739_v60 = vld [vmem:[%s7202_s5 + $0x340] ss:$16 sps:$4 sm:$0xff]   ;;  %v4779_v28 = vld [vmem:[%s7202_s5 + $0x68] ss:$16 sps:$4 sm:$0xff]  }
  0x36   : > { %1834 = vmatprep.subr.bf16.mxu1 %v4700_v30  ;;  %v4740_v61 = vld [vmem:[%s7202_s5 + $0x124] ss:$16 sps:$4 sm:$0xff]   ;;  %v4744_v63 = vld [vmem:[%s7202_s5 + $0x120] ss:$16 sps:$4 sm:$0xff]   ;;  %v4787_v30 = vld [vmem:[%s7202_s5 + $0x4c] ss:$16 sps:$4 sm:$0xff]  }
  0x37   : > { %v4742_v62 = vld [vmem:[%s7202_s5 + $0x324] ss:$16 sps:$4 sm:$0xff]   ;;  %v4745_v0 = vld [vmem:[%s7202_s5 + $0x320] ss:$16 sps:$4 sm:$0xff]  }
  0x38   : > { %1794 = vmatpush1.bf16.msra.mxu0 %v4702_v31  ;;  %v4746_v1 = vld [vmem:[%s7202_s5 + $0x104] ss:$16 sps:$4 sm:$0xff]   ;;  %v4750_v3 = vld [vmem:[%s7202_s5 + $0x100] ss:$16 sps:$4 sm:$0xff]  }
  0x39   : > { %1835 = vmatpush1.bf16.msra.mxu1 %v4703_v32  ;;  %1795 = vmatprep.subr.bf16.mxu0 %v4704_v33  ;;  %v4748_v2 = vld [vmem:[%s7202_s5 + $0x304] ss:$16 sps:$4 sm:$0xff]   ;;  %v4751_v4 = vld [vmem:[%s7202_s5 + $0x300] ss:$16 sps:$4 sm:$0xff]   ;;  %v4785_v32 = vld [vmem:[%s7202_s5 + $0x48] ss:$16 sps:$4 sm:$0xff]  }
  0x3a   : > { %1836 = vmatprep.subr.bf16.mxu1 %v4706_v34  ;;  %v593_v5 = vld [vmem:[%s5636_s16] sm:$0xff]  ;;  %v595_v7 = vld [vmem:[%s5636_s16 + $0x10] sm:$0xff]  ;;  %v4793_v34 = vld [vmem:[%s7202_s5 + $0x2c] ss:$16 sps:$4 sm:$0xff]  }
  0x3b   : > { %v4754_v6 = vld [vmem:[%s7202_s5 + $0x4e4] ss:$16 sps:$4 sm:$0xff]   ;;  %v5714_v9 = vpack.c.bf16 %v593_v5, %v593_v5  ;;  %v4752_v10 = vld [vmem:[%s7202_s5 + $0x4e0] ss:$16 sps:$4 sm:$0xff]   ;;  %v5722_v12 = vpack.c.bf16 %v595_v7, %v595_v7 }
  0x3c   : > { %1796 = vmatpush2.bf16.msra.mxu0 %v4708_v35  ;;  %v4760_v13 = vld [vmem:[%s7202_s5 + $0x4c4] ss:$16 sps:$4 sm:$0xff]   ;;  %v4758_v15 = vld [vmem:[%s7202_s5 + $0x4c0] ss:$16 sps:$4 sm:$0xff]   ;;  %v598_v35 = vld [vmem:[%s5636_s16 + $0x28] sm:$0xff] }
  0x3d   : > { %1837 = vmatpush2.bf16.msra.mxu1 %v4709_v36  ;;  %1797 = vmatprep.subr.bf16.mxu0 %v4710_v37  ;;  %v4766_v17 = vld [vmem:[%s7202_s5 + $0x4a4] ss:$16 sps:$4 sm:$0xff]   ;;  %v4764_v19 = vld [vmem:[%s7202_s5 + $0x4a0] ss:$16 sps:$4 sm:$0xff]   ;;  %v5794_v36 = vpack.c.bf16 %v598_v35, %v598_v35  ;;  %v4875_v35 = vld [vmem:[%s7202_s5 + $0x468] ss:$16 sps:$4 sm:$0xff]  }
  0x3e   : > { %1838 = vmatprep.subr.bf16.mxu1 %v4712_v38  ;;  %v4772_v21 = vld [vmem:[%s7202_s5 + $0x484] ss:$16 sps:$4 sm:$0xff]   ;;  %v4770_v23 = vld [vmem:[%s7202_s5 + $0x480] ss:$16 sps:$4 sm:$0xff]   ;;  %v4791_v38 = vld [vmem:[%s7202_s5 + $0x28] ss:$16 sps:$4 sm:$0xff]  }
  0x3f   : > { %v4778_v25 = vld [vmem:[%s7202_s5 + $0x464] ss:$16 sps:$4 sm:$0xff]   ;;  %v4776_v27 = vld [vmem:[%s7202_s5 + $0x460] ss:$16 sps:$4 sm:$0xff]  }
  0x40   : > { %1798 = vmatpush2.bf16.msra.mxu0 %v4714_v39  ;;  %v4784_v29 = vld [vmem:[%s7202_s5 + $0x444] ss:$16 sps:$4 sm:$0xff]   ;;  %v4782_v31 = vld [vmem:[%s7202_s5 + $0x440] ss:$16 sps:$4 sm:$0xff]  }
  0x41   : > { %1839 = vmatpush2.bf16.msra.mxu1 %v4715_v40  ;;  %1799 = vmatprep.subr.bf16.mxu0 %v4716_v41  ;;  %v4790_v33 = vld [vmem:[%s7202_s5 + $0x424] ss:$16 sps:$4 sm:$0xff]   ;;  %v4788_v37 = vld [vmem:[%s7202_s5 + $0x420] ss:$16 sps:$4 sm:$0xff]   ;;  %v4799_v40 = vld [vmem:[%s7202_s5 + $0xc] ss:$16 sps:$4 sm:$0xff]  }
  0x42   : > { %1840 = vmatprep.subr.bf16.mxu1 %v4718_v42  ;;  %v4796_v39 = vld [vmem:[%s7202_s5 + $0x404] ss:$16 sps:$4 sm:$0xff]   ;;  %v4794_v41 = vld [vmem:[%s7202_s5 + $0x400] ss:$16 sps:$4 sm:$0xff]   ;;  %v4797_v42 = vld [vmem:[%s7202_s5 + $0x8] ss:$16 sps:$4 sm:$0xff]  }
  0x43   : > { %v4808_v47 = vld [vmem:[%s7202_s5 + $0x5c4] ss:$16 sps:$4 sm:$0xff]   ;;  %v4806_v50 = vld [vmem:[%s7202_s5 + $0x5c0] ss:$16 sps:$4 sm:$0xff]  }
  0x44   : > { %1800 = vmatpush2.bf16.msra.mxu0 %v4720_v43  ;;  %v4802_v43 = vld [vmem:[%s7202_s5 + $0x5e4] ss:$16 sps:$4 sm:$0xff]   ;;  %v4836_v7 = vld [vmem:[%s7202_s5 + $0x520] ss:$16 sps:$4 sm:$0xff]  }
  0x45   : > { %1841 = vmatpush2.bf16.msra.mxu1 %v4721_v44  ;;  %1801 = vmatprep.subr.bf16.mxu0 %v4722_v45  ;;  %v4805_v44 = vld [vmem:[%s7202_s5 + $0x1ec] ss:$16 sps:$4 sm:$0xff]   ;;  %v4800_v45 = vld [vmem:[%s7202_s5 + $0x5e0] ss:$16 sps:$4 sm:$0xff]   ;;  %v4838_v5 = vld [vmem:[%s7202_s5 + $0x524] ss:$16 sps:$4 sm:$0xff]  }
  0x46   : > { %1842 = vmatprep.subr.bf16.mxu1 %v4724_v46  ;;  %v4803_v46 = vld [vmem:[%s7202_s5 + $0x1e8] ss:$16 sps:$4 sm:$0xff]  }
  0x48   : > { %1802 = vmatpush2.bf16.msra.mxu0 %v4726_v48  ;;  %v4811_v48 = vld [vmem:[%s7202_s5 + $0x1cc] ss:$16 sps:$4 sm:$0xff]  }
  0x49   : > { %1843 = vmatpush2.bf16.msra.mxu1 %v4727_v51  ;;  %1803 = vmatprep.subr.bf16.mxu0 %v4728_v52  ;;  %v4809_v51 = vld [vmem:[%s7202_s5 + $0x1c8] ss:$16 sps:$4 sm:$0xff]   ;;  %v4814_v52 = vld [vmem:[%s7202_s5 + $0x5a4] ss:$16 sps:$4 sm:$0xff]  }
  0x4a   : > { %1844 = vmatprep.subr.bf16.mxu1 %v4730_v54  ;;  %v4817_v54 = vld [vmem:[%s7202_s5 + $0x1ac] ss:$16 sps:$4 sm:$0xff]  }
  0x4c   : > { %1804 = vmatpush2.bf16.msra.mxu0 %v4732_v55  ;;  %v4812_v55 = vld [vmem:[%s7202_s5 + $0x5a0] ss:$16 sps:$4 sm:$0xff]  }
  0x4d   : > { %1845 = vmatpush2.bf16.msra.mxu1 %v4733_v56  ;;  %1805 = vmatprep.subr.bf16.mxu0 %v4734_v57  ;;  %v4815_v56 = vld [vmem:[%s7202_s5 + $0x1a8] ss:$16 sps:$4 sm:$0xff]   ;;  %v4820_v57 = vld [vmem:[%s7202_s5 + $0x584] ss:$16 sps:$4 sm:$0xff]  }
  0x4e   : > { %1846 = vmatprep.subr.bf16.mxu1 %v4736_v58  ;;  %v4823_v58 = vld [vmem:[%s7202_s5 + $0x18c] ss:$16 sps:$4 sm:$0xff]  }
  0x50   : > { %1806 = vmatpush2.bf16.msra.mxu0 %v4738_v59  ;;  %v4818_v59 = vld [vmem:[%s7202_s5 + $0x580] ss:$16 sps:$4 sm:$0xff]  }
  0x51   : > { %1847 = vmatpush2.bf16.msra.mxu1 %v4739_v60  ;;  %1807 = vmatprep.subr.bf16.mxu0 %v4740_v61  ;;  %v4821_v60 = vld [vmem:[%s7202_s5 + $0x188] ss:$16 sps:$4 sm:$0xff]   ;;  %v4826_v61 = vld [vmem:[%s7202_s5 + $0x564] ss:$16 sps:$4 sm:$0xff]  }
  0x52   : > { %1848 = vmatprep.subr.bf16.mxu1 %v4742_v62  ;;  %v4829_v62 = vld [vmem:[%s7202_s5 + $0x16c] ss:$16 sps:$4 sm:$0xff]  }
  0x54   : > { %1808 = vmatpush2.bf16.msra.mxu0 %v4744_v63  ;;  %v4824_v63 = vld [vmem:[%s7202_s5 + $0x560] ss:$16 sps:$4 sm:$0xff]  }
  0x55   : > { %1849 = vmatpush2.bf16.msra.mxu1 %v4745_v0  ;;  %1809 = vmatprep.subr.bf16.mxu0 %v4746_v1  ;;  %v4827_v0 = vld [vmem:[%s7202_s5 + $0x168] ss:$16 sps:$4 sm:$0xff]   ;;  %v4832_v1 = vld [vmem:[%s7202_s5 + $0x544] ss:$16 sps:$4 sm:$0xff]  }
  0x56   : > { %1850 = vmatprep.subr.bf16.mxu1 %v4748_v2  ;;  %v4835_v2 = vld [vmem:[%s7202_s5 + $0x14c] ss:$16 sps:$4 sm:$0xff]  }
  0x58   : > { %1810 = vmatpush2.bf16.msra.mxu0 %v4750_v3  ;;  %v4830_v3 = vld [vmem:[%s7202_s5 + $0x540] ss:$16 sps:$4 sm:$0xff]  }
  0x59   : > { %1851 = vmatpush2.bf16.msra.mxu1 %v4751_v4  ;;  %1861 = vmatprep.subr.bf16.mxu0 %v4754_v6  ;;  %v4833_v4 = vld [vmem:[%s7202_s5 + $0x148] ss:$16 sps:$4 sm:$0xff]   ;;  %v4841_v6 = vld [vmem:[%s7202_s5 + $0x12c] ss:$16 sps:$4 sm:$0xff]  }
  0x5a   : > { %1902 = vmatprep.subr.bf16.mxu1 %v4757_v8  ;;  %v4839_v8 = vld [vmem:[%s7202_s5 + $0x128] ss:$16 sps:$4 sm:$0xff]  }
  0x5b   : > { %1812 = vmatmul.mubr.bf16.vlgmr.msra.gmra.mxu0 %v5714_v9 }
  0x5c   : > { %1853 = vmatmul.mubr.bf16.vlgmr.msra.gmra.mxu1 %v5722_v12  ;;  %1862 = vmatpush1.bf16.msra.mxu0 %v4752_v10  ;;  %v4844_v10 = vld [vmem:[%s7202_s5 + $0x504] ss:$16 sps:$4 sm:$0xff]  }
  0x5d   : > { %1903 = vmatpush1.bf16.msra.mxu1 %v4755_v11  ;;  %1863 = vmatprep.subr.bf16.mxu0 %v4760_v13  ;;  %v4847_v11 = vld [vmem:[%s7202_s5 + $0x10c] ss:$16 sps:$4 sm:$0xff]   ;;  %v4842_v13 = vld [vmem:[%s7202_s5 + $0x500] ss:$16 sps:$4 sm:$0xff]  }
  0x5e   : > { %1904 = vmatprep.subr.bf16.mxu1 %v4763_v14  ;;  %1934 = vmatprep.mubr.bf16.mxu1 %v5648_v49  ;;  %v7220_v49 = vmov 0   ;;  %v4845_v14 = vld [vmem:[%s7202_s5 + $0x108] ss:$16 sps:$4 sm:$0xff]  }
  0x5f   : > { %1893 = vmatprep.mubr.bf16.mxu0 %v5794_v36  ;;  %4651 = vset.pattern.permute.xlu0 %v7220_v49 }
  0x60   : > { %1864 = vmatpush1.bf16.msra.mxu0 %v4758_v15  ;;  %v597_v15 = vld [vmem:[%s5636_s16 + $0x20] sm:$0xff]  ;;  %s5348_s16 = smov 126  }
  0x61   : > { %1905 = vmatpush1.bf16.msra.mxu1 %v4761_v16  ;;  %1865 = vmatprep.subr.bf16.mxu0 %v4766_v17  ;;  %v4850_v16 = vld [vmem:[%s7202_s5 + $0x2ec] ss:$16 sps:$4 sm:$0xff]  }
  0x62   : > { %1906 = vmatprep.subr.bf16.mxu1 %v4769_v18  ;;  %v4853_v17 = vld [vmem:[%s7202_s5 + $0x4ec] ss:$16 sps:$4 sm:$0xff]   ;;  %v5919_v18 = vpack.c.bf16 %v597_v15, %v597_v15 }
  0x63   : > { %v4937_v15 = vld [vmem:[%s7202_s5 + $0x52c] ss:$16 sps:$4 sm:$0xff]  }
  0x64   : > { %1866 = vmatpush1.bf16.msra.mxu0 %v4764_v19  ;;  %v4848_v19 = vld [vmem:[%s7202_s5 + $0x2e8] ss:$16 sps:$4 sm:$0xff]  }
  0x65   : > { %1907 = vmatpush1.bf16.msra.mxu1 %v4767_v20  ;;  %1867 = vmatprep.subr.bf16.mxu0 %v4772_v21  ;;  %v4851_v20 = vld [vmem:[%s7202_s5 + $0x4e8] ss:$16 sps:$4 sm:$0xff]   ;;  %v4856_v21 = vld [vmem:[%s7202_s5 + $0x2cc] ss:$16 sps:$4 sm:$0xff]  }
  0x66   : > { %1908 = vmatprep.subr.bf16.mxu1 %v4775_v22  ;;  %v4859_v22 = vld [vmem:[%s7202_s5 + $0x4cc] ss:$16 sps:$4 sm:$0xff]  }
  0x68   : > { %1868 = vmatpush1.bf16.msra.mxu0 %v4770_v23  ;;  %v4854_v23 = vld [vmem:[%s7202_s5 + $0x2c8] ss:$16 sps:$4 sm:$0xff]  }
  0x69   : > { %1909 = vmatpush1.bf16.msra.mxu1 %v4773_v24  ;;  %1869 = vmatprep.subr.bf16.mxu0 %v4778_v25  ;;  %v4857_v24 = vld [vmem:[%s7202_s5 + $0x4c8] ss:$16 sps:$4 sm:$0xff]   ;;  %v4862_v25 = vld [vmem:[%s7202_s5 + $0x2ac] ss:$16 sps:$4 sm:$0xff]  }
  0x6a   : > { %1910 = vmatprep.subr.bf16.mxu1 %v4781_v26  ;;  %v4860_v26 = vld [vmem:[%s7202_s5 + $0x2a8] ss:$16 sps:$4 sm:$0xff]  }
  0x6c   : > { %1870 = vmatpush1.bf16.msra.mxu0 %v4776_v27  ;;  %v4863_v27 = vld [vmem:[%s7202_s5 + $0x4a8] ss:$16 sps:$4 sm:$0xff]  }
  0x6d   : > { %1911 = vmatpush1.bf16.msra.mxu1 %v4779_v28  ;;  %1871 = vmatprep.subr.bf16.mxu0 %v4784_v29  ;;  %v4868_v28 = vld [vmem:[%s7202_s5 + $0x28c] ss:$16 sps:$4 sm:$0xff]   ;;  %v5344_v29 = vmov 2  }
  0x6e   : > { %1912 = vmatprep.subr.bf16.mxu1 %v4787_v30  ;;  %4653 = vset.pattern.permute.xlu1 %v5344_v29  ;;  %v4866_v30 = vld [vmem:[%s7202_s5 + $0x288] ss:$16 sps:$4 sm:$0xff]   ;;  %v6168_v29 = vld [vmem:[%s7204_s7 + $0xa0] ss:$16 sps:$4 sm:$0xff]  }
  0x70   : > { %1872 = vmatpush1.bf16.msra.mxu0 %v4782_v31  ;;  %v4869_v31 = vld [vmem:[%s7202_s5 + $0x488] ss:$16 sps:$4 sm:$0xff]  }
  0x71   : > { %1913 = vmatpush1.bf16.msra.mxu1 %v4785_v32  ;;  %1873 = vmatprep.subr.bf16.mxu0 %v4790_v33  ;;  %v4874_v32 = vld [vmem:[%s7202_s5 + $0x26c] ss:$16 sps:$4 sm:$0xff]  }
  0x72   : > { %1914 = vmatprep.subr.bf16.mxu1 %v4793_v34  ;;  %v4877_v33 = vld [vmem:[%s7202_s5 + $0x46c] ss:$16 sps:$4 sm:$0xff]   ;;  %v4872_v34 = vld [vmem:[%s7202_s5 + $0x268] ss:$16 sps:$4 sm:$0xff]  }
  0x74   : > { %1874 = vmatpush1.bf16.msra.mxu0 %v4788_v37  ;;  %v4883_v37 = vld [vmem:[%s7202_s5 + $0x44c] ss:$16 sps:$4 sm:$0xff]  }
  0x75   : > { %1915 = vmatpush1.bf16.msra.mxu1 %v4791_v38  ;;  %1875 = vmatprep.subr.bf16.mxu0 %v4796_v39  ;;  %v4878_v38 = vld [vmem:[%s7202_s5 + $0x248] ss:$16 sps:$4 sm:$0xff]  }
  0x76   : > { %1916 = vmatprep.subr.bf16.mxu1 %v4799_v40  ;;  %v4881_v39 = vld [vmem:[%s7202_s5 + $0x448] ss:$16 sps:$4 sm:$0xff]   ;;  %v4886_v40 = vld [vmem:[%s7202_s5 + $0x22c] ss:$16 sps:$4 sm:$0xff]  }
  0x78   : > { %1876 = vmatpush1.bf16.msra.mxu0 %v4794_v41  ;;  %v4889_v41 = vld [vmem:[%s7202_s5 + $0x42c] ss:$16 sps:$4 sm:$0xff]  }
  0x79   : > { %1917 = vmatpush1.bf16.msra.mxu1 %v4797_v42  ;;  %1877 = vmatprep.subr.bf16.mxu0 %v4802_v43  ;;  %v4884_v42 = vld [vmem:[%s7202_s5 + $0x228] ss:$16 sps:$4 sm:$0xff]  }
  0x7a   : > { %1918 = vmatprep.subr.bf16.mxu1 %v4805_v44  ;;  %v4887_v43 = vld [vmem:[%s7202_s5 + $0x428] ss:$16 sps:$4 sm:$0xff]   ;;  %v4892_v44 = vld [vmem:[%s7202_s5 + $0x20c] ss:$16 sps:$4 sm:$0xff]  }
  0x7c   : > { %1878 = vmatpush2.bf16.msra.mxu0 %v4800_v45  ;;  %v4895_v45 = vld [vmem:[%s7202_s5 + $0x40c] ss:$16 sps:$4 sm:$0xff]  }
  0x7d   : > { %1919 = vmatpush2.bf16.msra.mxu1 %v4803_v46  ;;  %1879 = vmatprep.subr.bf16.mxu0 %v4808_v47  ;;  %v4890_v46 = vld [vmem:[%s7202_s5 + $0x208] ss:$16 sps:$4 sm:$0xff]  }
  0x7e   : > { %1920 = vmatprep.subr.bf16.mxu1 %v4811_v48  ;;  %v4893_v47 = vld [vmem:[%s7202_s5 + $0x408] ss:$16 sps:$4 sm:$0xff]   ;;  %v2118_v48 = vld [vmem:[%s578_s19] sm:$0xff]  ;;  %s5356_s19 = smov 7  }
  0x7f   : > { %2122 = vperm.xlu0 %4651, %v2118_v48   ;;  %2141 = vperm.xlu1 %4653, %v2118_v48  }
  0x80   : > { %1880 = vmatpush2.bf16.msra.mxu0 %v4806_v50  ;;  %v4898_v50 = vld [vmem:[%s7202_s5 + $0x3ec] ss:$16 sps:$4 sm:$0xff]  }
  0x81   : > { %1921 = vmatpush2.bf16.msra.mxu1 %v4809_v51  ;;  %1881 = vmatprep.subr.bf16.mxu0 %v4814_v52  ;;  %v4901_v51 = vld [vmem:[%s7202_s5 + $0x5ec] ss:$16 sps:$4 sm:$0xff]   ;;  %v4896_v52 = vld [vmem:[%s7202_s5 + $0x3e8] ss:$16 sps:$4 sm:$0xff]  }
  0x82   : > { %1922 = vmatprep.subr.bf16.mxu1 %v4817_v54  ;;  %v4899_v54 = vld [vmem:[%s7202_s5 + $0x5e8] ss:$16 sps:$4 sm:$0xff]  }
  0x84   : > { %1882 = vmatpush2.bf16.msra.mxu0 %v4812_v55  ;;  %v4904_v55 = vld [vmem:[%s7202_s5 + $0x3cc] ss:$16 sps:$4 sm:$0xff]  }
  0x85   : > { %1923 = vmatpush2.bf16.msra.mxu1 %v4815_v56  ;;  %1883 = vmatprep.subr.bf16.mxu0 %v4820_v57  ;;  %v4907_v56 = vld [vmem:[%s7202_s5 + $0x5cc] ss:$16 sps:$4 sm:$0xff]   ;;  %v5345_v57 = vmov 1  }
  0x86   : > { %1924 = vmatprep.subr.bf16.mxu1 %v4823_v58  ;;  %4652 = vset.pattern.permute.xlu0 %v5345_v57  ;;  %v4902_v58 = vld [vmem:[%s7202_s5 + $0x3c8] ss:$16 sps:$4 sm:$0xff]  }
  0x87   : > { %2131 = vperm.xlu0 %4652, %v2118_v48   ;;  %v6265_v48 = vld [vmem:[%s7204_s7 + $0x20] ss:$16 sps:$4 sm:$0xff]   ;;  %v6312_v57 = vld [vmem:[%s7204_s7 + $0x88] ss:$16 sps:$4 sm:$0xff]  }
  0x88   : > { %1884 = vmatpush2.bf16.msra.mxu0 %v4818_v59  ;;  %v4905_v59 = vld [vmem:[%s7202_s5 + $0x5c8] ss:$16 sps:$4 sm:$0xff]  }
  0x89   : > { %1925 = vmatpush2.bf16.msra.mxu1 %v4821_v60  ;;  %1885 = vmatprep.subr.bf16.mxu0 %v4826_v61  ;;  %v4910_v60 = vld [vmem:[%s7202_s5 + $0x3ac] ss:$16 sps:$4 sm:$0xff]  }
  0x8a   : > { %1926 = vmatprep.subr.bf16.mxu1 %v4829_v62  ;;  %v4913_v61 = vld [vmem:[%s7202_s5 + $0x5ac] ss:$16 sps:$4 sm:$0xff]   ;;  %v4908_v62 = vld [vmem:[%s7202_s5 + $0x3a8] ss:$16 sps:$4 sm:$0xff]  }
  0x8c   : > { %1886 = vmatpush2.bf16.msra.mxu0 %v4824_v63  ;;  %v4911_v63 = vld [vmem:[%s7202_s5 + $0x5a8] ss:$16 sps:$4 sm:$0xff]  }
  0x8d   : > { %1927 = vmatpush2.bf16.msra.mxu1 %v4827_v0  ;;  %1887 = vmatprep.subr.bf16.mxu0 %v4832_v1  ;;  %v4916_v0 = vld [vmem:[%s7202_s5 + $0x38c] ss:$16 sps:$4 sm:$0xff]  }
  0x8e   : > { %1928 = vmatprep.subr.bf16.mxu1 %v4835_v2  ;;  %v4919_v1 = vld [vmem:[%s7202_s5 + $0x58c] ss:$16 sps:$4 sm:$0xff]   ;;  %v4914_v2 = vld [vmem:[%s7202_s5 + $0x388] ss:$16 sps:$4 sm:$0xff]  }
  0x90   : > { %1888 = vmatpush2.bf16.msra.mxu0 %v4830_v3  ;;  %v4917_v3 = vld [vmem:[%s7202_s5 + $0x588] ss:$16 sps:$4 sm:$0xff]  }
  0x91   : > { %1929 = vmatpush2.bf16.msra.mxu1 %v4833_v4  ;;  %1889 = vmatprep.subr.bf16.mxu0 %v4838_v5  ;;  %v4922_v4 = vld [vmem:[%s7202_s5 + $0x36c] ss:$16 sps:$4 sm:$0xff]  }
  0x92   : > { %1930 = vmatprep.subr.bf16.mxu1 %v4841_v6  ;;  %v4925_v5 = vld [vmem:[%s7202_s5 + $0x56c] ss:$16 sps:$4 sm:$0xff]   ;;  %v4920_v6 = vld [vmem:[%s7202_s5 + $0x368] ss:$16 sps:$4 sm:$0xff]  }
  0x94   : > { %1890 = vmatpush2.bf16.msra.mxu0 %v4836_v7  ;;  %v4923_v7 = vld [vmem:[%s7202_s5 + $0x568] ss:$16 sps:$4 sm:$0xff]  }
  0x95   : > { %1931 = vmatpush2.bf16.msra.mxu1 %v4839_v8  ;;  %1891 = vmatprep.subr.bf16.mxu0 %v4844_v10  ;;  %v4928_v8 = vld [vmem:[%s7202_s5 + $0x34c] ss:$16 sps:$4 sm:$0xff]  }
  0x96   : > { %1932 = vmatprep.subr.bf16.mxu1 %v4847_v11  ;;  %v4931_v10 = vld [vmem:[%s7202_s5 + $0x54c] ss:$16 sps:$4 sm:$0xff]   ;;  %v4926_v11 = vld [vmem:[%s7202_s5 + $0x348] ss:$16 sps:$4 sm:$0xff]  }
  0x98   : > { %1892 = vmatpush2.bf16.msra.mxu0 %v4842_v13  ;;  %v4929_v13 = vld [vmem:[%s7202_s5 + $0x548] ss:$16 sps:$4 sm:$0xff]  }
  0x99   : > { %1933 = vmatpush2.bf16.msra.mxu1 %v4845_v14  ;;  %1943 = vmatprep.subr.bf16.mxu0 %v4850_v16  ;;  %v4934_v14 = vld [vmem:[%s7202_s5 + $0x32c] ss:$16 sps:$4 sm:$0xff]   ;;  %v4932_v16 = vld [vmem:[%s7202_s5 + $0x328] ss:$16 sps:$4 sm:$0xff]  }
  0x9a   : > { %1984 = vmatprep.subr.bf16.mxu1 %v4853_v17  ;;  %v4935_v17 = vld [vmem:[%s7202_s5 + $0x528] ss:$16 sps:$4 sm:$0xff]  }
  0x9b   : > { %1894 = vmatmul.mubr.bf16.vlgmr.msra.gmra.mxu0 %v5919_v18 }
  0x9c   : > { %1935 = vmatmul.mubr.bf16.vlgmr.msra.gmra.mxu1 %v5714_v9  ;;  %1944 = vmatpush1.bf16.msra.mxu0 %v4848_v19  ;;  %v4865_v9 = vld [vmem:[%s7202_s5 + $0x4ac] ss:$16 sps:$4 sm:$0xff]  }
  0x9d   : > { %1985 = vmatpush1.bf16.msra.mxu1 %v4851_v20  ;;  %1945 = vmatprep.subr.bf16.mxu0 %v4856_v21  ;;  %v4940_v19 = vld [vmem:[%s7202_s5 + $0x30c] ss:$16 sps:$4 sm:$0xff]   ;;  %v4938_v21 = vld [vmem:[%s7202_s5 + $0x308] ss:$16 sps:$4 sm:$0xff]  }
  0x9e   : > { %1986 = vmatprep.subr.bf16.mxu1 %v4859_v22  ;;  %1975 = vmatprep.mubr.bf16.mxu0 %v5657_v53  ;;  %v4871_v53 = vld [vmem:[%s7202_s5 + $0x48c] ss:$16 sps:$4 sm:$0xff]   ;;  %v4941_v22 = vld [vmem:[%s7202_s5 + $0x508] ss:$16 sps:$4 sm:$0xff]  }
  0x9f   : > { %2016 = vmatprep.mubr.bf16.mxu1 %v5794_v36  ;;  %v4880_v36 = vld [vmem:[%s7202_s5 + $0x24c] ss:$16 sps:$4 sm:$0xff]  }
  0xa0   : > { %1946 = vmatpush1.bf16.msra.mxu0 %v4854_v23  ;;  %v4943_v20 = vld [vmem:[%s7202_s5 + $0x50c] ss:$16 sps:$4 sm:$0xff]   ;;  %v6120_v23 = vld [vmem:[%s7204_s7 + $0xe4] ss:$16 sps:$4 sm:$0xff]  }
  0xa1   : > { %1987 = vmatpush1.bf16.msra.mxu1 %v4857_v24  ;;  %1947 = vmatprep.subr.bf16.mxu0 %v4862_v25  ;;  %v6125_v24 = vld [vmem:[%s7204_s7 + $0xe0] ss:$16 sps:$4 sm:$0xff]   ;;  %v5346_v25 = vmov 0.0  }
  0xa2   : > { %1988 = vmatprep.subr.bf16.mxu1 %v4865_v9  ;;  %v2036_v9 = vld [vmem:[%s7207_s10 + $0x50] sm:$0xff] }
  0xa4   : > { %1948 = vmatpush1.bf16.msra.mxu0 %v4860_v26  ;;  %v6135_v26 = vld [vmem:[%s7204_s7 + $0xc4] ss:$16 sps:$4 sm:$0xff]  }
  0xa5   : > { %1989 = vmatpush1.bf16.msra.mxu1 %v4863_v27  ;;  %1949 = vmatprep.subr.bf16.mxu0 %v4868_v28  ;;  %v2035_v27 = vld [vmem:[%s7207_s10 + $0x48] sm:$0xff]  ;;  %v6146_v28 = vld [vmem:[%s7204_s7 + $0xc0] ss:$16 sps:$4 sm:$0xff]  }
  0xa6   : > { %1990 = vmatprep.subr.bf16.mxu1 %v4871_v53  ;;  %v2033_v53 = vld [vmem:[%s7207_s10 + $0x38] sm:$0xff] }
  0xa8   : > { %1950 = vmatpush1.bf16.msra.mxu0 %v4866_v30  ;;  %v2032_v30 = vld [vmem:[%s7207_s10 + $0x30] sm:$0xff] }
  0xa9   : > { %1991 = vmatpush1.bf16.msra.mxu1 %v4869_v31  ;;  %1951 = vmatprep.subr.bf16.mxu0 %v4874_v32  ;;  %v6178_v31 = vld [vmem:[%s7204_s7 + $0x84] ss:$16 sps:$4 sm:$0xff]   ;;  %v2031_v32 = vld [vmem:[%s7207_s10 + $0x28] sm:$0xff] }
  0xaa   : > { %1992 = vmatprep.subr.bf16.mxu1 %v4877_v33  ;;  %v6188_v33 = vld [vmem:[%s7204_s7 + $0x80] ss:$16 sps:$4 sm:$0xff]  }
  0xac   : > { %1952 = vmatpush1.bf16.msra.mxu0 %v4872_v34  ;;  %v2030_v34 = vld [vmem:[%s7207_s10 + $0x20] sm:$0xff] }
  0xad   : > { %1993 = vmatpush1.bf16.msra.mxu1 %v4875_v35  ;;  %1953 = vmatprep.subr.bf16.mxu0 %v4880_v36  ;;  %v6198_v35 = vld [vmem:[%s7204_s7 + $0x64] ss:$16 sps:$4 sm:$0xff]   ;;  %v2029_v36 = vld [vmem:[%s7207_s10 + $0x18] sm:$0xff] }
  0xae   : > { %1994 = vmatprep.subr.bf16.mxu1 %v4883_v37  ;;  %v6208_v37 = vld [vmem:[%s7204_s7 + $0x60] ss:$16 sps:$4 sm:$0xff]  }
  0xb0   : > { %1954 = vmatpush1.bf16.msra.mxu0 %v4878_v38  ;;  %v2028_v38 = vld [vmem:[%s7207_s10 + $0x10] sm:$0xff] }
  0xb1   : > { %1995 = vmatpush1.bf16.msra.mxu1 %v4881_v39  ;;  %1955 = vmatprep.subr.bf16.mxu0 %v4886_v40  ;;  %v6218_v39 = vld [vmem:[%s7204_s7 + $0x44] ss:$16 sps:$4 sm:$0xff]   ;;  %v2027_v40 = vld [vmem:[%s7207_s10 + $0x8] sm:$0xff] }
  0xb2   : > { %1996 = vmatprep.subr.bf16.mxu1 %v4889_v41  ;;  %v6233_v41 = vld [vmem:[%s7204_s7 + $0x40] ss:$16 sps:$4 sm:$0xff]  }
  0xb4   : > { %1956 = vmatpush1.bf16.msra.mxu0 %v4884_v42  ;;  %v2026_v42 = vld [vmem:[%s7207_s10] sm:$0xff] }
  0xb5   : > { %1997 = vmatpush1.bf16.msra.mxu1 %v4887_v43  ;;  %1957 = vmatprep.subr.bf16.mxu0 %v4892_v44  ;;  %v6243_v43 = vld [vmem:[%s7204_s7 + $0xec] ss:$16 sps:$4 sm:$0xff]   ;;  %v2025_v44 = vld [vmem:[%s582_s29] sm:$0xff]  ;;  %s588_s29 = scalar_lea.vmem %s7201_s4, %s5606_s21 }
  0xb6   : > { %1998 = vmatprep.subr.bf16.mxu1 %v4895_v45  ;;  %v6248_v45 = vld [vmem:[%s7204_s7 + $0xe8] ss:$16 sps:$4 sm:$0xff]  }
  0xb8   : > { %1958 = vmatpush1.bf16.msra.mxu0 %v4890_v46  ;;  %v6253_v46 = vld [vmem:[%s7204_s7 + $0x24] ss:$16 sps:$4 sm:$0xff]  }
  0xb9   : > { %1999 = vmatpush1.bf16.msra.mxu1 %v4893_v47  ;;  %1959 = vmatprep.subr.bf16.mxu0 %v4898_v50  ;;  %v6259_v47 = vld [vmem:[%s7204_s7 + $0xcc] ss:$16 sps:$4 sm:$0xff]   ;;  %v6271_v50 = vld [vmem:[%s7204_s7 + $0x4] ss:$16 sps:$4 sm:$0xff]  }
  0xba   : > { %2000 = vmatprep.subr.bf16.mxu1 %v4901_v51  ;;  %v6278_v51 = vld [vmem:[%s7204_s7 + $0xc8] ss:$16 sps:$4 sm:$0xff]  }
  0xbc   : > { %1960 = vmatpush2.bf16.msra.mxu0 %v4896_v52  ;;  %v6284_v52 = vld [vmem:[%s7204_s7 + $0xac] ss:$16 sps:$4 sm:$0xff]  }
  0xbd   : > { %2001 = vmatpush2.bf16.msra.mxu1 %v4899_v54  ;;  %1961 = vmatprep.subr.bf16.mxu0 %v4904_v55  ;;  %v6291_v54 = vld [vmem:[%s7204_s7] ss:$16 sps:$4 sm:$0xff]   ;;  %v6298_v55 = vld [vmem:[%s7204_s7 + $0xa8] ss:$16 sps:$4 sm:$0xff]  }
  0xbe   : > { %2002 = vmatprep.subr.bf16.mxu1 %v4907_v56  ;;  %v6304_v56 = vld [vmem:[%s7204_s7 + $0x8c] ss:$16 sps:$4 sm:$0xff]  }
  0xc0   : > { %1962 = vmatpush2.bf16.msra.mxu0 %v4902_v58  ;;  %v6319_v58 = vld [vmem:[%s7204_s7 + $0x6c] ss:$16 sps:$4 sm:$0xff]  }
  0xc1   : > { %2003 = vmatpush2.bf16.msra.mxu1 %v4905_v59  ;;  %1963 = vmatprep.subr.bf16.mxu0 %v4910_v60  ;;  %v6328_v59 = vld [vmem:[%s7204_s7 + $0x68] ss:$16 sps:$4 sm:$0xff]   ;;  %v6334_v60 = vld [vmem:[%s7204_s7 + $0x4c] ss:$16 sps:$4 sm:$0xff]  }
  0xc2   : > { %2004 = vmatprep.subr.bf16.mxu1 %v4913_v61  ;;  %v6342_v61 = vld [vmem:[%s7204_s7 + $0x48] ss:$16 sps:$4 sm:$0xff]  }
  0xc4   : > { %1964 = vmatpush2.bf16.msra.mxu0 %v4908_v62  ;;  %v6348_v62 = vld [vmem:[%s7204_s7 + $0x2c] ss:$16 sps:$4 sm:$0xff]  }
  0xc5   : > { %2005 = vmatpush2.bf16.msra.mxu1 %v4911_v63  ;;  %1965 = vmatprep.subr.bf16.mxu0 %v4916_v0  ;;  %v6356_v63 = vld [vmem:[%s7204_s7 + $0x28] ss:$16 sps:$4 sm:$0xff]   ;;  %v6362_v0 = vld [vmem:[%s7204_s7 + $0xc] ss:$16 sps:$4 sm:$0xff]  }
  0xc6   : > { %2006 = vmatprep.subr.bf16.mxu1 %v4919_v1  ;;  %v6370_v1 = vld [vmem:[%s7204_s7 + $0x8] ss:$16 sps:$4 sm:$0xff]  }
  0xc8   : > { %1966 = vmatpush2.bf16.msra.mxu0 %v4914_v2  ;;  %v799_v2 = vlaneseq }
  0xc9   : > { %2007 = vmatpush2.bf16.msra.mxu1 %v4917_v3  ;;  %1967 = vmatprep.subr.bf16.mxu0 %v4922_v4 }
  0xca   : > { %2008 = vmatprep.subr.bf16.mxu1 %v4925_v5  ;;  %v6377_v3 = vshrl.u32 %v799_v2, 7  ;;  %v6392_v5 = vld [vmem:[%s7203_s6] sm:$0xf] }
  0xcc   : > { %1968 = vmatpush2.bf16.msra.mxu0 %v4920_v6  ;;  %v6386_v4 = vsub.s32 0, %v6377_v3  ;;  %v805_v6 = vsub.s32 1, %v6377_v3 }
  0xcd   : > { %2009 = vmatpush2.bf16.msra.mxu1 %v4923_v7  ;;  %1969 = vmatprep.subr.bf16.mxu0 %v4928_v8 }
  0xce   : > { %2010 = vmatprep.subr.bf16.mxu1 %v4931_v10  ;;  %v802_v7 = vrot.slane %v6392_v5, %v6386_v4  ;;  %v806_v8 = vrot.slane %v6392_v5, %v805_v6 }
  0xd0   : > { %1970 = vmatpush2.bf16.msra.mxu0 %v4926_v11 }
  0xd1   : > { %2011 = vmatpush2.bf16.msra.mxu1 %v4929_v13  ;;  %1971 = vmatprep.subr.bf16.mxu0 %v4934_v14 }
  0xd2   : > { %2012 = vmatprep.subr.bf16.mxu1 %v4937_v15 }
  0xd4   : > { %1972 = vmatpush2.bf16.msra.mxu0 %v4932_v16 }
  0xd5   : > { %2013 = vmatpush2.bf16.msra.mxu1 %v4935_v17  ;;  %1973 = vmatprep.subr.bf16.mxu0 %v4940_v19 }
  0xd6   : > { %2014 = vmatprep.subr.bf16.mxu1 %v4943_v20 }
  0xd8   : > { %1974 = vmatpush2.bf16.msra.mxu0 %v4938_v21 }
  0xd9   : > { %2015 = vmatpush2.bf16.msra.mxu1 %v4941_v22  ;;  %4568 = vmatprep.subr.mxu0 %v5346_v25 }
  0xda   : > { %2353 = vmatprep.subr.bf16.mxu1 %v6120_v23 }
  0xdb   : > { %1976 = vmatmul.mubr.bf16.vlgmr.msra.gmra.mxu0 %v5722_v12  ;;  %v2034_v12 = vld [vmem:[%s7207_s10 + $0x40] sm:$0xff] }
  0xdc   : > { %2017 = vmatmul.mubr.bf16.vlgmr.msra.gmra.mxu1 %v5919_v18  ;;  %4569 = vmatpush3.msra.mxu0 %v2036_v9  ;;  %v6156_v18 = vld [vmem:[%s7204_s7 + $0xa4] ss:$16 sps:$4 sm:$0xff]  }
  0xdd   : > { %2354 = vmatpush1.bf16.msra.mxu1 %v6125_v24  ;;  %4570 = vmatprep.subr.mxu0 %v5346_v25 }
  0xde   : > { %2355 = vmatprep.subr.bf16.mxu1 %v6135_v26  ;;  %4571 = vmatpush3.msra.mxu0 %v2035_v27 }
  0xdf   : > { %4590 = vmatprep.mubr.msk.f32.mxu0 %vm5347_vm0, %v5346_v25  ;;  %4572 = vmatprep.subr.mxu0 %v5346_v25  ;;  %vm4064_vm0 = vcmask 56320  }
  0xe0   : > { %2385 = vmatprep.mubr.bf16.mxu1 %v7220_v49  ;;  %4573 = vmatpush3.msra.mxu0 %v2034_v12 }
  0xe1   : > { %2356 = vmatpush1.bf16.msra.mxu1 %v6146_v28  ;;  %4574 = vmatprep.subr.mxu0 %v5346_v25 }
  0xe2   : > { %2357 = vmatprep.subr.bf16.mxu1 %v6156_v18  ;;  %4575 = vmatpush3.msra.mxu0 %v2033_v53 }
  0xe3   : > { %4576 = vmatprep.subr.mxu0 %v5346_v25 }
  0xe4   : > { %4577 = vmatpush3.msra.mxu0 %v2032_v30 }
  0xe5   : > { %2358 = vmatpush1.bf16.msra.mxu1 %v6168_v29  ;;  %4578 = vmatprep.subr.mxu0 %v5346_v25 }
  0xe6   : > { %2359 = vmatprep.subr.bf16.mxu1 %v6178_v31  ;;  %4579 = vmatpush3.msra.mxu0 %v2031_v32 }
  0xe7   : > { %4580 = vmatprep.subr.mxu0 %v5346_v25 }
  0xe8   : > { %4581 = vmatpush3.msra.mxu0 %v2030_v34 }
  0xe9   : > { %2360 = vmatpush1.bf16.msra.mxu1 %v6188_v33  ;;  %4582 = vmatprep.subr.mxu0 %v5346_v25 }
  0xea   : > { %2361 = vmatprep.subr.bf16.mxu1 %v6198_v35  ;;  %4583 = vmatpush3.msra.mxu0 %v2029_v36 }
  0xeb   : > { %4584 = vmatprep.subr.mxu0 %v5346_v25 }
  0xec   : > { %4585 = vmatpush3.msra.mxu0 %v2028_v38 }
  0xed   : > { %2362 = vmatpush1.bf16.msra.mxu1 %v6208_v37  ;;  %4586 = vmatprep.subr.mxu0 %v5346_v25 }
  0xee   : > { %2363 = vmatprep.subr.bf16.mxu1 %v6218_v39  ;;  %4587 = vmatpush3.msra.mxu0 %v2027_v40 }
  0xef   : > { %4588 = vmatprep.subr.mxu0 %v5346_v25 }
  0xf0   : > { %4589 = vmatpush3.msra.mxu0 %v2026_v42 }
  0xf1   : > { %2364 = vmatpush1.bf16.msra.mxu1 %v6233_v41  ;;  %4591 = vmatmul.mubr.msk.f32.vlgmr.msra.gmra.mxu0 %vm2044_vm1, %v2025_v44  ;;  %vm4126_vm1 = vcmask 57344  }
  0xf2   : > { %2394 = vmatprep.subr.bf16.mxu0 %v6243_v43  ;;  %2365 = vmatprep.subr.bf16.mxu1 %v6253_v46 }
  0xf3   : > { %2395 = vmatpush1.bf16.msra.mxu0 %v6248_v45  ;;  %2426 = vmatprep.mubr.bf16.mxu0 %v7220_v49 }
  0xf4   : > { %2396 = vmatprep.subr.bf16.mxu0 %v6259_v47 }
  0xf5   : > { %2366 = vmatpush1.bf16.msra.mxu1 %v6265_v48 }
  0xf6   : > { %2367 = vmatprep.subr.bf16.mxu1 %v6271_v50 }
  0xf7   : > { %2397 = vmatpush1.bf16.msra.mxu0 %v6278_v51 }
  0xf8   : > { %2398 = vmatprep.subr.bf16.mxu0 %v6284_v52 }
  0xf9   : > { %2368 = vmatpush1.bf16.msra.mxu1 %v6291_v54 }
  0xfa   : > { %2525 = vmatprep.subr.bf16.mxu1 %v6120_v23  ;;  %v2123_v2 = vpop.permute.xlu0 %2122 }
  0xfb   : > { %2399 = vmatpush1.bf16.msra.mxu0 %v6298_v55 }
  0xfc   : > { %2386 = vmatmul.mubr.bf16.vlgmr.msra.gmra.mxu1 %v7220_v49  ;;  %2400 = vmatprep.subr.bf16.mxu0 %v6304_v56 }
  0xfd   : > { %2526 = vmatpush1.bf16.msra.mxu1 %v6125_v24  ;;  %2557 = vmatprep.mubr.bf16.mxu1 %v7220_v49 }
  0xfe   : > { %2527 = vmatprep.subr.bf16.mxu1 %v6135_v26 }
  0xff   : > { %2401 = vmatpush1.bf16.msra.mxu0 %v6312_v57 }
 0x100   : > { %2402 = vmatprep.subr.bf16.mxu0 %v6319_v58 }
 0x101   : > { %2528 = vmatpush1.bf16.msra.mxu1 %v6146_v28 }
 0x102   : > { %2529 = vmatprep.subr.bf16.mxu1 %v6156_v18 }
 0x103   : > { %2403 = vmatpush1.bf16.msra.mxu0 %v6328_v59 }
 0x104   : > { %2404 = vmatprep.subr.bf16.mxu0 %v6334_v60 }
 0x105   : > { %2530 = vmatpush1.bf16.msra.mxu1 %v6168_v29 }
 0x106   : > { %2531 = vmatprep.subr.bf16.mxu1 %v6178_v31 }
 0x107   : > { %2405 = vmatpush1.bf16.msra.mxu0 %v6342_v61 }
 0x108   : > { %2406 = vmatprep.subr.bf16.mxu0 %v6348_v62 }
 0x109   : > { %2532 = vmatpush1.bf16.msra.mxu1 %v6188_v33 }
 0x10a   : > { %2533 = vmatprep.subr.bf16.mxu1 %v6198_v35 }
 0x10b   : > { %2407 = vmatpush1.bf16.msra.mxu0 %v6356_v63 }
 0x10c   : > { %2408 = vmatprep.subr.bf16.mxu0 %v6362_v0 }
 0x10d   : > { %2534 = vmatpush1.bf16.msra.mxu1 %v6208_v37 }
 0x10e   : > { %2535 = vmatprep.subr.bf16.mxu1 %v6218_v39 }
 0x10f   : > { %2409 = vmatpush1.bf16.msra.mxu0 %v6370_v1 }
 0x110   : > { %2566 = vmatprep.subr.bf16.mxu0 %v6243_v43 }
 0x111   : > { %2536 = vmatpush1.bf16.msra.mxu1 %v6233_v41 }
 0x112   : > { %2427 = vmatmul.mubr.bf16.vlgmr.msra.gmra.mxu0 %v7220_v49  ;;  %2537 = vmatprep.subr.bf16.mxu1 %v6253_v46 }
 0x113   : > { %2567 = vmatpush1.bf16.msra.mxu0 %v6248_v45  ;;  %2598 = vmatprep.mubr.bf16.mxu0 %v7220_v49 }
 0x114   : > { %2568 = vmatprep.subr.bf16.mxu0 %v6259_v47 }
 0x115   : > { %2538 = vmatpush1.bf16.msra.mxu1 %v6265_v48 }
 0x116   : > { %2539 = vmatprep.subr.bf16.mxu1 %v6271_v50 }
 0x117   : > { %2569 = vmatpush1.bf16.msra.mxu0 %v6278_v51 }
 0x118   : > { %2570 = vmatprep.subr.bf16.mxu0 %v6284_v52 }
 0x119   : > { %2540 = vmatpush1.bf16.msra.mxu1 %v6291_v54 }
 0x11a   : > { %2751 = vmatprep.subr.bf16.mxu1 %v6120_v23 }
 0x11b   : > { %2571 = vmatpush1.bf16.msra.mxu0 %v6298_v55  ;;  %v1813_v10 = vpop.f32.mrf.mxu0 }
 0x11c   : > { %v1854_v11 = vpop.f32.mrf.mxu1  ;;  %2572 = vmatprep.subr.bf16.mxu0 %v6304_v56  ;;  %v1814_v13 = vadd.f32 %v1813_v10, %v802_v7 }
 0x11d   : > { %v1815_v14 = vpop.f32.mrf.mxu0 }
 0x11e   : > { %v1856_v15 = vpop.f32.mrf.mxu1  ;;  %v1816_v16 = vadd.f32 %v1815_v14, %v806_v8  ;;  %v1855_v17 = vadd.f32 %v1854_v11, %v1814_v13  ;;  %v2119_v11 = vld [vmem:[%s7209_s12] sm:$0x7] }
 0x11f   : > { %2573 = vmatpush1.bf16.msra.mxu0 %v6312_v57  ;;  %v1817_v19 = vpop.f32.mrf.mxu0 }
 0x120   : > { %v1858_v20 = vpop.f32.mrf.mxu1  ;;  %2574 = vmatprep.subr.bf16.mxu0 %v6319_v58  ;;  %v1857_v21 = vadd.f32 %v1856_v15, %v1816_v16  ;;  %v2128_v16 = vrot.slane %v2119_v11, %v6386_v4  ;;  %v2132_v19 = vpop.permute.xlu0 %2131 }
 0x121   : > { %v1818_v22 = vpop.f32.mrf.mxu0  ;;  %v809_v20 = vsub.s32 2, %v6377_v3 }
 0x122   : > { %v1859_v25 = vpop.f32.mrf.mxu1 }
 0x123   : > { %2575 = vmatpush1.bf16.msra.mxu0 %v6328_v59  ;;  %v2147_v25 = vrot.slane %v2119_v11, %v809_v20 }
 0x124   : > { %2576 = vmatprep.subr.bf16.mxu0 %v6334_v60 }
 0x127   : > { %2577 = vmatpush1.bf16.msra.mxu0 %v6342_v61 }
 0x128   : > { %2578 = vmatprep.subr.bf16.mxu0 %v6348_v62 }
 0x12b   : > { %2579 = vmatpush1.bf16.msra.mxu0 %v6356_v63 }
 0x12c   : > { %2580 = vmatprep.subr.bf16.mxu0 %v6362_v0 }
 0x12f   : > { %2581 = vmatpush1.bf16.msra.mxu0 %v6370_v1 }
 0x130   : > { %2792 = vmatprep.subr.bf16.mxu0 %v6243_v43 }
 0x15b   : > { %v1895_v9 = vpop.f32.mrf.mxu0 }
 0x15c   : > { %v1936_v27 = vpop.f32.mrf.mxu1  ;;  %v6415_v12 = vadd.f32 %v1895_v9, %v1855_v17  ;;  %v2137_v17 = vrot.slane %v2119_v11, %v805_v6  ;;  %v2142_v9 = vpop.permute.xlu1 %2141  ;;  %v4480_v6 = vld [vmem:[%s7210_s13] ss:$0 sm:$0xff] }
 0x15d   : > { %v1897_v53 = vpop.f32.mrf.mxu0 }
 0x15e   : > { %v1938_v30 = vpop.f32.mrf.mxu1  ;;  %v6417_v32 = vadd.f32 %v1897_v53, %v1857_v21  ;;  %v2129_v21 = vmul.f32 %v2128_v16, %v2123_v2  ;;  %v2138_v22 = vmul.f32 %v2137_v17, %v2132_v19  ;;  %v4478_v2 = vld [vmem:[%s7208_s11] ss:$0 sm:$0xff] }
 0x15f   : > { %v1899_v34 = vpop.f32.mrf.mxu0 }
 0x160   : > { %v1940_v36 = vpop.f32.mrf.mxu1  ;;  %v2139_v53 = vadd.f32 %v2138_v22, %v2129_v21  ;;  %v2148_v34 = vmul.f32 %v2147_v25, %v2142_v9 }
 0x161   : > { %v1900_v38 = vpop.f32.mrf.mxu0  ;;  %v6427_v36 = vld [vmem:[%s7211_s14] sm:$0x3] }
 0x162   : > { %v1941_v40 = vpop.f32.mrf.mxu1  ;;  %v2149_v38 = vadd.f32 %v2148_v34, %v2139_v53 }
 0x163   : > { %v2469_v40 = vmul.f32 0.0, %v6427_v36 }
 0x164   : > { %v6436_v11 = vadd.f32 %v4480_v6, %v2149_v38 }
 0x19b   : > { %v1977_v42 = vpop.f32.mrf.mxu0 }
 0x19c   : > { %v2018_v44 = vpop.f32.mrf.mxu1 }
 0x19d   : > { %v1979_v7 = vpop.f32.mrf.mxu0 }
 0x19e   : > { %v2020_v8 = vpop.f32.mrf.mxu1 }
 0x19f   : > { %v1981_v10 = vpop.f32.mrf.mxu0 }
 0x1a0   : > { %v2022_v13 = vpop.f32.mrf.mxu1 }
 0x1a1   : > { %v1982_v14 = vpop.f32.mrf.mxu0 }
 0x1a2   : > { %v2023_v15 = vpop.f32.mrf.mxu1  ;;  %v2471_v14 = vrot.slane %v2469_v40, 1 }
 0x1a4   : > { %v6445_v17 = vadd.f32 %v2471_v14, %v6436_v11 }
 0x1b1   : > { %v2114_v10 = vpop.f32.mrf.mxu0 }
 0x1b2   : > { %v6438_v13 = vadd.f32 %v4478_v2, %v2114_v10  ;;  %v810_v2 = vrot.slane %v6392_v5, %v809_v20 }
 0x1b3   : > { %v4592_v15 = vpop.f32.mrf.mxu0 }
 0x1b4   : > { %v6441_v16 = vadd.f32 %v2469_v40, %v6438_v13  ;;  %v813_v40 = vsub.s32 3, %v6377_v3  ;;  %v1937_v15 = vadd.f32 %v1936_v27, %v810_v2 }
 0x1b6   : > { %4992 = vtanh.f32 %v6441_v16  ;;  %v814_v10 = vrot.slane %v6392_v5, %v813_v40 }
 0x1b7   : > { %4994 = vtanh.f32 %v6445_v17 }
 0x1bc   : > { %v2387_v19 = vpop.f32.mrf.mxu1 }
 0x1bd   : > { %v2435_v21 = vadd.f32 %v2387_v19, %v6415_v12  ;;  %v1939_v19 = vadd.f32 %v1938_v30, %v814_v10 }
 0x1be   : > { %v2389_v22 = vpop.f32.mrf.mxu1 }
 0x1bf   : > { %v4513_v25 = vmul.f32 -1.442695, %v2435_v21  ;;  %v2436_v9 = vadd.f32 %v2389_v22, %v6417_v32  ;;  %v1978_v21 = vadd.f32 %v1977_v42, %v1937_v15 }
 0x1c0   : > { %v2391_v53 = vpop.f32.mrf.mxu1 }
 0x1c1   : > { %4996 = vpow2.f32 %v4513_v25  ;;  %v4514_v34 = vmul.f32 -1.442695, %v2436_v9  ;;  %v1980_v25 = vadd.f32 %v1979_v7, %v1939_v19  ;;  %v6455_v3 = vadd.f32 %v2018_v44, %v1978_v21 }
 0x1c2   : > { %v2392_v38 = vpop.f32.mrf.mxu1 }
 0x1c3   : > { %4998 = vpow2.f32 %v4514_v34  ;;  %v4993_v6 = vpop.eup %4992  ;;  %v6457_v20 = vadd.f32 %v2020_v8, %v1980_v25 }
 0x1c4   : > { %2494 = vrot.lane.b32.xlu1 %v4993_v6, %s5348_s16  ;;  %v4995_v14 = vpop.eup %4994 }
 0x1c8   : > { %2496 = vrot.lane.b32.xlu1 %v4995_v14, %s5348_s16 }
 0x1ce   : > { %v4997_v22 = vpop.eup %4996 }
 0x1cf   : > { %v2442_v53 = vadd.f32 1.0, %v4997_v22 }
 0x1d0   : > { %v4999_v9 = vpop.eup %4998 }
 0x1d1   : > { %v2448_v34 = vadd.f32 1.0, %v4999_v9 }
 0x1d2   : > { %v2428_v38 = vpop.f32.mrf.mxu0 }
 0x1d3   : > { %5000 = vrcp.f32 %v2448_v34  ;;  %v2437_v6 = vadd.f32 %v2428_v38, %v6455_v3  ;;  %v4517_v34 = vmul.f32 -1.442695, %v6445_v17 }
 0x1d4   : > { %5002 = vrcp.f32 %v2442_v53  ;;  %v2430_v5 = vpop.f32.mrf.mxu0  ;;  %v4516_v53 = vmul.f32 -1.442695, %v6441_v16 }
 0x1d5   : > { %5004 = vtanh.f32 %v2437_v6  ;;  %v2438_v27 = vadd.f32 %v2430_v5, %v6457_v20 }
 0x1d6   : > { %v2432_v30 = vpop.f32.mrf.mxu0 }
 0x1d7   : > { %v4515_v42 = vmul.f32 -1.442695, %v2438_v27 }
 0x1d8   : > { %v2433_v40 = vpop.f32.mrf.mxu0 }
 0x1d9   : > { %5006 = vpow2.f32 %v4515_v42 }
 0x1e0   : > { %v5001_v7 = vpop.eup %5000 }
 0x1e1   : > { %v5003_v2 = vpop.eup %5002  ;;  %v2458_v10 = vmul.f32 0.0, %v5001_v7 }
 0x1e2   : > { %v5005_v44 = vpop.eup %5004 }
 0x1e3   : > { %v2459_v14 = vmul.f32 %v5005_v44, %v5003_v2 }
 0x1e5   : > { %v6461_v15 = vadd.f32 %v2459_v14, %v2458_v10 }
 0x1e6   : > { %v5007_v8 = vpop.eup %5006 }
 0x1e7   : > { %v2455_v19 = vadd.f32 1.0, %v5007_v8  ;;  %5008 = vtanh.f32 %v6461_v15 }
 0x1e9   : > { %5010 = vrcp.f32 %v2455_v19 }
 0x1ea   : > { %5012 = vpow2.f32 %v4516_v53 }
 0x1eb   : > { %5014 = vpow2.f32 %v4517_v34 }
 0x1f4   : > { %v5009_v21 = vpop.eup %5008 }
 0x1f6   : > { %v5011_v22 = vpop.eup %5010 }
 0x1f7   : > { %v6464_v25 = vmul.f32 %v5011_v22, %v5009_v21  ;;  %v5013_v16 = vpop.eup %5012  ;;  %v5350_v21 = vmov 3  }
 0x1f8   : > { %v2482_v38 = vadd.f32 1.0, %v5013_v16  ;;  %v5015_v6 = vpop.eup %5014  ;;  %4654 = vset.pattern.permute.xlu0 %v5350_v21  ;;  %4655 = vset.pattern.permute.xlu1 %v5350_v21 }
 0x1f9   : > { %7238 = vst [vmem:[#allocation12_spill] sm:$0xff] %v6464_v25  ;;  %v2524_v9 = vpack.c.bf16 %v6464_v25, %v6464_v25  ;;  %v2483_v5 = vadd.f32 1.0, %v5015_v6 }
 0x1fa   : > { %5016 = vrcp.f32 %v2482_v38 }
 0x1fb   : > { %2558 = vmatmul.mubr.bf16.vlgmr.msra.gmra.mxu1 %v2524_v9  ;;  %2599 = vmatmul.mubr.bf16.vlgmr.msra.gmra.mxu0 %v2524_v9  ;;  %5018 = vrcp.f32 %v2483_v5 }
 0x1fc   : > { %2752 = vmatpush1.bf16.msra.mxu1 %v6125_v24  ;;  %2793 = vmatpush1.bf16.msra.mxu0 %v6248_v45 }
 0x1fd   : > { %2753 = vmatprep.subr.bf16.mxu1 %v6135_v26  ;;  %2794 = vmatprep.subr.bf16.mxu0 %v6259_v47 }
 0x1fe   : > { %2783 = vmatprep.mubr.bf16.mxu1 %v7220_v49  ;;  %2824 = vmatprep.mubr.bf16.mxu0 %v7220_v49 }
 0x200   : > { %2754 = vmatpush1.bf16.msra.mxu1 %v6146_v28  ;;  %2795 = vmatpush1.bf16.msra.mxu0 %v6278_v51 }
 0x201   : > { %2755 = vmatprep.subr.bf16.mxu1 %v6156_v18  ;;  %2796 = vmatprep.subr.bf16.mxu0 %v6284_v52 }
 0x204   : > { %2756 = vmatpush1.bf16.msra.mxu1 %v6168_v29  ;;  %2797 = vmatpush1.bf16.msra.mxu0 %v6298_v55 }
 0x205   : > { %2757 = vmatprep.subr.bf16.mxu1 %v6178_v31  ;;  %2798 = vmatprep.subr.bf16.mxu0 %v6304_v56 }
 0x207   : > { %v6504_v27 = vpop.eup %5016 }
 0x208   : > { %2758 = vmatpush1.bf16.msra.mxu1 %v6188_v33  ;;  %2799 = vmatpush1.bf16.msra.mxu0 %v6312_v57  ;;  %v6508_v42 = vpop.eup %5018  ;;  %v2490_v2 = vmul.f32 0.0, %v6504_v27 }
 0x209   : > { %2759 = vmatprep.subr.bf16.mxu1 %v6198_v35  ;;  %2800 = vmatprep.subr.bf16.mxu0 %v6319_v58  ;;  %v2491_v14 = vmul.f32 0.0, %v6508_v42 }
 0x20c   : > { %2760 = vmatpush1.bf16.msra.mxu1 %v6208_v37  ;;  %2801 = vmatpush1.bf16.msra.mxu0 %v6328_v59 }
 0x20d   : > { %2761 = vmatprep.subr.bf16.mxu1 %v6218_v39  ;;  %2802 = vmatprep.subr.bf16.mxu0 %v6334_v60 }
 0x210   : > { %2762 = vmatpush1.bf16.msra.mxu1 %v6233_v41  ;;  %2803 = vmatpush1.bf16.msra.mxu0 %v6342_v61 }
 0x211   : > { %2763 = vmatprep.subr.bf16.mxu1 %v6253_v46  ;;  %2804 = vmatprep.subr.bf16.mxu0 %v6348_v62 }
 0x214   : > { %2764 = vmatpush1.bf16.msra.mxu1 %v6265_v48  ;;  %2805 = vmatpush1.bf16.msra.mxu0 %v6356_v63 }
 0x215   : > { %2765 = vmatprep.subr.bf16.mxu1 %v6271_v50  ;;  %2806 = vmatprep.subr.bf16.mxu0 %v6362_v0 }
 0x218   : > { %2766 = vmatpush1.bf16.msra.mxu1 %v6291_v54  ;;  %2807 = vmatpush1.bf16.msra.mxu0 %v6370_v1 }
 0x219   : > { %2962 = vmatprep.subr.bf16.mxu1 %v6120_v23  ;;  %3003 = vmatprep.subr.bf16.mxu0 %v6243_v43 }
 0x236   : > { %v2495_v30 = vpop.permute.xlu1 %2494 }
 0x237   : > { %v2500_v17 = vmul.f32 %v6504_v27, %v2495_v30 }
 0x239   : > { %2504 = vrot.lane.b32.xlu0 %v2500_v17, %s5349_s28 }
 0x23a   : > { %v2497_v40 = vpop.permute.xlu1 %2496 }
 0x23b   : > { %v2501_v7 = vmul.f32 %v6508_v42, %v2497_v40 }
 0x23d   : > { %2506 = vrot.lane.b32.xlu1 %v2501_v7, %s5349_s28 }
 0x2ab   : > { %v2505_v44 = vpop.permute.xlu0 %2504 }
 0x2ac   : > { %v6513_v10 = vadd.f32 %v2505_v44, %v2490_v2 }
 0x2ae   : > { %5020 = vtanh.f32 %v6513_v10 }
 0x2af   : > { %v2507_v8 = vpop.permute.xlu1 %2506 }
 0x2b0   : > { %v6517_v19 = vadd.f32 %v2507_v8, %v2491_v14 }
 0x2b2   : > { %5022 = vtanh.f32 %v6517_v19 }
 0x2bb   : > { %v2559_v22 = vpop.f32.mrf.mxu1  ;;  %v2600_v9 = vpop.f32.mrf.mxu0 }
 0x2bc   : > { %v5021_v53 = vpop.eup %5020  ;;  %v2611_v34 = vrot.slane %v2559_v22, 7 }
 0x2bd   : > { %2516 = vrot.lane.b32.xlu0 %v5021_v53, %s5351_s30  ;;  %v2561_v16 = vpop.f32.mrf.mxu1  ;;  %v2602_v38 = vpop.f32.mrf.mxu0  ;;  %v2613_v53 = vrot.slane %v2600_v9, 7 }
 0x2be   : > { %v2619_v6 = vadd.f32 %v2611_v34, %v6415_v12  ;;  %v2612_v5 = vrot.slane %v2561_v16, 7  ;;  %v2614_v21 = vrot.slane %v2602_v38, 7 }
 0x2bf   : > { %v2563_v30 = vpop.f32.mrf.mxu1  ;;  %v2604_v17 = vpop.f32.mrf.mxu0  ;;  %v2621_v16 = vadd.f32 %v2613_v53, %v6455_v3 }
 0x2c0   : > { %v5023_v40 = vpop.eup %5022  ;;  %v4518_v7 = vmul.f32 -1.442695, %v2619_v6  ;;  %v2620_v2 = vadd.f32 %v2612_v5, %v6417_v32  ;;  %v2622_v22 = vadd.f32 %v2614_v21, %v6457_v20 }
 0x2c1   : > { %2518 = vrot.lane.b32.xlu1 %v5023_v40, %s5351_s30  ;;  %v2564_v44 = vpop.f32.mrf.mxu1  ;;  %v2605_v14 = vpop.f32.mrf.mxu0 }
 0x2c2   : > { %5024 = vpow2.f32 %v4518_v7  ;;  %v4519_v8 = vmul.f32 -1.442695, %v2620_v2  ;;  %v4520_v49 = vmul.f32 -1.442695, %v2622_v22  ;;  %v2643_v2 = vrot.slane %v6461_v15, 7 }
 0x2c3   : > { %v7239_v15 = vmov 0  }
 0x2c4   : > { %5026 = vpow2.f32 %v4519_v8 }
 0x2c5   : > { %5028 = vpow2.f32 %v4520_v49 }
 0x2cf   : > { %v5025_v34 = vpop.eup %5024 }
 0x2d0   : > { %v2626_v30 = vadd.f32 1.0, %v5025_v34 }
 0x2d1   : > { %v5027_v17 = vpop.eup %5026 }
 0x2d2   : > { %5030 = vrcp.f32 %v2626_v30  ;;  %v2632_v6 = vadd.f32 1.0, %v5027_v17  ;;  %v5029_v5 = vpop.eup %5028 }
 0x2d3   : > { %5032 = vtanh.f32 %v2621_v16  ;;  %v2639_v44 = vadd.f32 1.0, %v5029_v5 }
 0x2d4   : > { %5034 = vrcp.f32 %v2632_v6 }
 0x2d5   : > { %5036 = vrcp.f32 %v2639_v44 }
 0x2df   : > { %v5031_v40 = vpop.eup %5030 }
 0x2e0   : > { %v5033_v7 = vpop.eup %5032 }
 0x2e1   : > { %v5035_v38 = vpop.eup %5034  ;;  %v2646_v14 = vmul.f32 %v5033_v7, %v5031_v40 }
 0x2e2   : > { %v2645_v9 = vmul.f32 %v5035_v38, %v2643_v2  ;;  %v5037_v21 = vpop.eup %5036 }
 0x2e4   : > { %v6527_v8 = vadd.f32 %v2646_v14, %v2645_v9 }
 0x2e6   : > { %5038 = vtanh.f32 %v6527_v8 }
 0x2f3   : > { %v5039_v49 = vpop.eup %5038 }
 0x2f4   : > { %v6530_v22 = vmul.f32 %v5039_v49, %v5037_v21 }
 0x2f6   : > { %v2746_v53 = vpack.c.bf16 %v6530_v22, %v6530_v22 }
 0x2f8   : > { %v2748_v34 = vshrl.u32 %v2746_v53, 16 }
 0x2fa   : > { %2784 = vmatmul.mubr.bf16.vlgmr.msra.gmra.mxu1 %v2748_v34  ;;  %2825 = vmatmul.mubr.bf16.vlgmr.msra.gmra.mxu0 %v2748_v34 }
 0x2fb   : > { %2963 = vmatpush1.bf16.msra.mxu1 %v6125_v24  ;;  %3004 = vmatpush1.bf16.msra.mxu0 %v6248_v45 }
 0x2fc   : > { %2964 = vmatprep.subr.bf16.mxu1 %v6135_v26  ;;  %3005 = vmatprep.subr.bf16.mxu0 %v6259_v47 }
 0x2fd   : > { %2994 = vmatprep.mubr.bf16.mxu1 %v7239_v15  ;;  %3035 = vmatprep.mubr.bf16.mxu0 %v7239_v15 }
 0x2ff   : > { %2965 = vmatpush1.bf16.msra.mxu1 %v6146_v28  ;;  %3006 = vmatpush1.bf16.msra.mxu0 %v6278_v51 }
 0x300   : > { %2966 = vmatprep.subr.bf16.mxu1 %v6156_v18  ;;  %3007 = vmatprep.subr.bf16.mxu0 %v6284_v52 }
 0x303   : > { %2967 = vmatpush1.bf16.msra.mxu1 %v6168_v29  ;;  %3008 = vmatpush1.bf16.msra.mxu0 %v6298_v55 }
 0x304   : > { %2968 = vmatprep.subr.bf16.mxu1 %v6178_v31  ;;  %3009 = vmatprep.subr.bf16.mxu0 %v6304_v56 }
 0x307   : > { %2969 = vmatpush1.bf16.msra.mxu1 %v6188_v33  ;;  %3010 = vmatpush1.bf16.msra.mxu0 %v6312_v57 }
 0x308   : > { %2970 = vmatprep.subr.bf16.mxu1 %v6198_v35  ;;  %3011 = vmatprep.subr.bf16.mxu0 %v6319_v58 }
 0x30b   : > { %2971 = vmatpush1.bf16.msra.mxu1 %v6208_v37  ;;  %3012 = vmatpush1.bf16.msra.mxu0 %v6328_v59 }
 0x30c   : > { %2972 = vmatprep.subr.bf16.mxu1 %v6218_v39  ;;  %3013 = vmatprep.subr.bf16.mxu0 %v6334_v60 }
 0x30f   : > { %2973 = vmatpush1.bf16.msra.mxu1 %v6233_v41  ;;  %3014 = vmatpush1.bf16.msra.mxu0 %v6342_v61 }
 0x310   : > { %2974 = vmatprep.subr.bf16.mxu1 %v6253_v46  ;;  %3015 = vmatprep.subr.bf16.mxu0 %v6348_v62 }
 0x313   : > { %2975 = vmatpush1.bf16.msra.mxu1 %v6265_v48  ;;  %3016 = vmatpush1.bf16.msra.mxu0 %v6356_v63 }
 0x314   : > { %2976 = vmatprep.subr.bf16.mxu1 %v6271_v50  ;;  %3017 = vmatprep.subr.bf16.mxu0 %v6362_v0 }
 0x317   : > { %2977 = vmatpush1.bf16.msra.mxu1 %v6291_v54  ;;  %3018 = vmatpush1.bf16.msra.mxu0 %v6370_v1 }
 0x318   : > { %3175 = vmatprep.subr.bf16.mxu1 %v6120_v23  ;;  %3216 = vmatprep.subr.bf16.mxu0 %v6243_v43  ;;  %v2679_v23 = vrot.slane %v6427_v36, 1 }
 0x32f   : > { %v2517_v16 = vpop.permute.xlu0 %2516 }
 0x330   : > { %v2522_v30 = vmul.f32 %v6504_v27, %v2517_v16 }
 0x332   : > { %2670 = vperm.xlu0 %4654, %v2522_v30  }
 0x333   : > { %v2519_v17 = vpop.permute.xlu1 %2518 }
 0x334   : > { %v2523_v6 = vmul.f32 %v6508_v42, %v2519_v17 }
 0x336   : > { %v4066_v5 = vrot.slane %v2523_v6, 7  ;;  %2675 = vperm.xlu1 %4655, %v2523_v6  }
 0x338   : > { %v6571_v40 = vsel %vm2657_vm2, %v4066_v5, %v2522_v30 }
 0x339   : > { %7240 = vst [vmem:[#allocation13_spill] sm:$0xff] %v6571_v40 }
 0x3ad   : > { %v2671_v7 = vpop.permute.xlu0 %2670 }
 0x3ae   : > { %v2682_v2 = vmul.f32 %v2671_v7, %v6427_v36 }
 0x3b0   : > { %v2686_v38 = vrot.slane %v2682_v2, 7 }
 0x3b1   : > { %v2676_v44 = vpop.permute.xlu1 %2675 }
 0x3b2   : > { %v6576_v14 = vadd.f32 %v2686_v38, %v6438_v13  ;;  %v2683_v27 = vmul.f32 %v2679_v23, %v2676_v44 }
 0x3b4   : > { %5040 = vtanh.f32 %v6576_v14  ;;  %v2687_v42 = vrot.slane %v2683_v27, 7 }
 0x3b6   : > { %v6580_v9 = vadd.f32 %v2687_v42, %v6436_v11 }
 0x3b8   : > { %5042 = vtanh.f32 %v6580_v9 }
 0x3ba   : > { %v2785_v21 = vpop.f32.mrf.mxu1  ;;  %v2826_v49 = vpop.f32.mrf.mxu0 }
 0x3bb   : > { %v2837_v53 = vrot.slane %v2785_v21, 6 }
 0x3bc   : > { %v2787_v34 = vpop.f32.mrf.mxu1  ;;  %v2828_v16 = vpop.f32.mrf.mxu0 }
 0x3bd   : > { %v2845_v30 = vadd.f32 %v2837_v53, %v6415_v12  ;;  %v2838_v17 = vrot.slane %v2787_v34, 6  ;;  %v2840_v42 = vrot.slane %v2828_v16, 6  ;;  %v2839_v34 = vrot.slane %v2826_v49, 6 }
 0x3be   : > { %v2789_v6 = vpop.f32.mrf.mxu1  ;;  %v2830_v5 = vpop.f32.mrf.mxu0 }
 0x3bf   : > { %v4523_v7 = vmul.f32 -1.442695, %v2845_v30  ;;  %v2846_v2 = vadd.f32 %v2838_v17, %v6417_v32  ;;  %v2848_v53 = vadd.f32 %v2840_v42, %v6457_v20  ;;  %v2847_v30 = vadd.f32 %v2839_v34, %v6455_v3 }
 0x3c0   : > { %v2790_v23 = vpop.f32.mrf.mxu1  ;;  %v2831_v38 = vpop.f32.mrf.mxu0 }
 0x3c1   : > { %v5041_v44 = vpop.eup %5040  ;;  %5044 = vpow2.f32 %v4523_v7  ;;  %v4524_v27 = vmul.f32 -1.442695, %v2846_v2  ;;  %v4525_v6 = vmul.f32 -1.442695, %v2848_v53 }
 0x3c2   : > { %2716 = vrot.lane.b32.xlu1 %v5041_v44, %s5348_s16  ;;  %v2869_v44 = vrot.slane %v6527_v8, 7 }
 0x3c3   : > { %5046 = vpow2.f32 %v4524_v27 }
 0x3c4   : > { %5048 = vpow2.f32 %v4525_v6 }
 0x3c5   : > { %v5043_v21 = vpop.eup %5042 }
 0x3c6   : > { %2718 = vrot.lane.b32.xlu0 %v5043_v21, %s5348_s16 }
 0x3ce   : > { %v5045_v5 = vpop.eup %5044 }
 0x3cf   : > { %v2852_v17 = vadd.f32 1.0, %v5045_v5 }
 0x3d0   : > { %v5047_v23 = vpop.eup %5046 }
 0x3d1   : > { %5050 = vrcp.f32 %v2852_v17  ;;  %v2858_v7 = vadd.f32 1.0, %v5047_v23  ;;  %v5049_v2 = vpop.eup %5048 }
 0x3d2   : > { %5052 = vtanh.f32 %v2847_v30  ;;  %v2865_v21 = vadd.f32 1.0, %v5049_v2 }
 0x3d3   : > { %5054 = vrcp.f32 %v2858_v7 }
 0x3d4   : > { %5056 = vrcp.f32 %v2865_v21 }
 0x3de   : > { %v5051_v38 = vpop.eup %5050 }
 0x3df   : > { %v5053_v16 = vpop.eup %5052 }
 0x3e0   : > { %v5055_v27 = vpop.eup %5054  ;;  %v2872_v42 = vmul.f32 %v5053_v16, %v5051_v38 }
 0x3e1   : > { %v2871_v49 = vmul.f32 %v5055_v27, %v2869_v44  ;;  %v5057_v34 = vpop.eup %5056 }
 0x3e3   : > { %v6590_v53 = vadd.f32 %v2872_v42, %v2871_v49 }
 0x3e5   : > { %5058 = vtanh.f32 %v6590_v53 }
 0x3f2   : > { %v5059_v6 = vpop.eup %5058 }
 0x3f3   : > { %v6593_v5 = vmul.f32 %v5059_v6, %v5057_v34 }
 0x3f5   : > { %7241 = vst [vmem:[#allocation14_spill] sm:$0xff] %v6593_v5  ;;  %v2958_v30 = vpack.c.bf16 %v6593_v5, %v6593_v5 }
 0x3f7   : > { %v2960_v17 = vrot.slane %v2958_v30, 1 }
 0x3f9   : > { %2995 = vmatmul.mubr.bf16.vlgmr.msra.gmra.mxu1 %v2960_v17  ;;  %3036 = vmatmul.mubr.bf16.vlgmr.msra.gmra.mxu0 %v2960_v17  ;;  %v3080_v17 = vrot.slane %v6590_v53, 7  ;;  %v6673_v53 = vld [vmem:[%s7204_s7 + $0xe0] ss:$16 sps:$4 sm:$0xff]  }
 0x3fa   : > { %3176 = vmatpush1.bf16.msra.mxu1 %v6125_v24  ;;  %3217 = vmatpush1.bf16.msra.mxu0 %v6248_v45  ;;  %v4521_v24 = vmul.f32 -1.442695, %v6576_v14 }
 0x3fb   : > { %3177 = vmatprep.subr.bf16.mxu1 %v6135_v26  ;;  %3218 = vmatprep.subr.bf16.mxu0 %v6259_v47  ;;  %v4522_v26 = vmul.f32 -1.442695, %v6580_v9 }
 0x3fc   : > { %3207 = vmatprep.mubr.bf16.mxu1 %v7239_v15  ;;  %3248 = vmatprep.mubr.bf16.mxu0 %v7239_v15  ;;  %5060 = vpow2.f32 %v4521_v24 }
 0x3fd   : > { %5062 = vpow2.f32 %v4522_v26 }
 0x3fe   : > { %3178 = vmatpush1.bf16.msra.mxu1 %v6146_v28  ;;  %3219 = vmatpush1.bf16.msra.mxu0 %v6278_v51  ;;  %v6634_v28 = vld [vmem:[%s7204_s7 + $0xe4] ss:$16 sps:$4 sm:$0xff]  }
 0x3ff   : > { %3179 = vmatprep.subr.bf16.mxu1 %v6156_v18  ;;  %3220 = vmatprep.subr.bf16.mxu0 %v6284_v52 }
 0x402   : > { %3180 = vmatpush1.bf16.msra.mxu1 %v6168_v29  ;;  %3221 = vmatpush1.bf16.msra.mxu0 %v6298_v55 }
 0x403   : > { %3181 = vmatprep.subr.bf16.mxu1 %v6178_v31  ;;  %3222 = vmatprep.subr.bf16.mxu0 %v6304_v56 }
 0x406   : > { %3182 = vmatpush1.bf16.msra.mxu1 %v6188_v33  ;;  %3223 = vmatpush1.bf16.msra.mxu0 %v6312_v57 }
 0x407   : > { %3183 = vmatprep.subr.bf16.mxu1 %v6198_v35  ;;  %3224 = vmatprep.subr.bf16.mxu0 %v6319_v58 }
 0x409   : > { %v5061_v18 = vpop.eup %5060 }
 0x40a   : > { %3184 = vmatpush1.bf16.msra.mxu1 %v6208_v37  ;;  %3225 = vmatpush1.bf16.msra.mxu0 %v6328_v59  ;;  %v2698_v29 = vadd.f32 1.0, %v5061_v18  ;;  %v5063_v31 = vpop.eup %5062 }
 0x40b   : > { %3185 = vmatprep.subr.bf16.mxu1 %v6218_v39  ;;  %3226 = vmatprep.subr.bf16.mxu0 %v6334_v60  ;;  %v2699_v33 = vadd.f32 1.0, %v5063_v31 }
 0x40c   : > { %5064 = vrcp.f32 %v2698_v29 }
 0x40d   : > { %5066 = vrcp.f32 %v2699_v33 }
 0x40e   : > { %3186 = vmatpush1.bf16.msra.mxu1 %v6233_v41  ;;  %3227 = vmatpush1.bf16.msra.mxu0 %v6342_v61 }
 0x40f   : > { %3187 = vmatprep.subr.bf16.mxu1 %v6253_v46  ;;  %3228 = vmatprep.subr.bf16.mxu0 %v6348_v62 }
 0x412   : > { %3188 = vmatpush1.bf16.msra.mxu1 %v6265_v48  ;;  %3229 = vmatpush1.bf16.msra.mxu0 %v6356_v63 }
 0x413   : > { %3189 = vmatprep.subr.bf16.mxu1 %v6271_v50  ;;  %3230 = vmatprep.subr.bf16.mxu0 %v6362_v0  ;;  %v2709_v50 = vrot.slane %v6517_v19, 7 }
 0x416   : > { %3190 = vmatpush1.bf16.msra.mxu1 %v6291_v54  ;;  %3231 = vmatpush1.bf16.msra.mxu0 %v6370_v1 }
 0x417   : > { %3386 = vmatprep.subr.bf16.mxu1 %v6634_v28  ;;  %3427 = vmatprep.subr.bf16.mxu0 %v6243_v43  ;;  %v2708_v43 = vrot.slane %v6513_v10, 7 }
 0x419   : > { %v6638_v35 = vpop.eup %5064 }
 0x41a   : > { %v6642_v41 = vpop.eup %5066  ;;  %v2712_v47 = vmul.f32 %v6638_v35, %v2708_v43 }
 0x41b   : > { %v2713_v52 = vmul.f32 %v6642_v41, %v2709_v50  ;;  %v6691_v50 = vld [vmem:[%s7204_s7 + $0xcc] ss:$16 sps:$4 sm:$0xff]  }
 0x434   : > { %v2717_v37 = vpop.permute.xlu1 %2716 }
 0x435   : > { %v2722_v39 = vmul.f32 %v6638_v35, %v2717_v37 }
 0x437   : > { %2726 = vrot.lane.b32.xlu1 %v2722_v39, %s5349_s28 }
 0x438   : > { %v2719_v45 = vpop.permute.xlu0 %2718 }
 0x439   : > { %v2723_v46 = vmul.f32 %v6642_v41, %v2719_v45 }
 0x43b   : > { %2728 = vrot.lane.b32.xlu0 %v2723_v46, %s5349_s28 }
 0x4a9   : > { %v2727_v48 = vpop.permute.xlu1 %2726 }
 0x4aa   : > { %v6649_v51 = vadd.f32 %v2727_v48, %v2712_v47  ;;  %v6679_v47 = vld [vmem:[%s7204_s7 + $0xe8] ss:$16 sps:$4 sm:$0xff]   ;;  %v6685_v48 = vld [vmem:[%s7204_s7 + $0xc4] ss:$16 sps:$4 sm:$0xff]  }
 0x4ac   : > { %5068 = vtanh.f32 %v6649_v51 }
 0x4ad   : > { %v2729_v54 = vpop.permute.xlu0 %2728 }
 0x4ae   : > { %v6653_v55 = vadd.f32 %v2729_v54, %v2713_v52  ;;  %v6699_v52 = vld [vmem:[%s7204_s7 + $0xc0] ss:$16 sps:$4 sm:$0xff]   ;;  %v6705_v54 = vld [vmem:[%s7204_s7 + $0xc8] ss:$16 sps:$4 sm:$0xff]  }
 0x4b0   : > { %5070 = vtanh.f32 %v6653_v55 }
 0x4b9   : > { %v5069_v56 = vpop.eup %5068  ;;  %v2996_v57 = vpop.f32.mrf.mxu1 }
 0x4ba   : > { %v3037_v58 = vpop.f32.mrf.mxu0  ;;  %v3048_v59 = vrot.slane %v2996_v57, 5  ;;  %2738 = vrot.lane.b32.xlu1 %v5069_v56, %s5351_s30  ;;  %v6711_v56 = vld [vmem:[%s7204_s7 + $0xa4] ss:$16 sps:$4 sm:$0xff]   ;;  %v6717_v57 = vld [vmem:[%s7204_s7 + $0xac] ss:$16 sps:$4 sm:$0xff]  }
 0x4bb   : > { %v2998_v60 = vpop.f32.mrf.mxu1  ;;  %v3050_v38 = vrot.slane %v3037_v58, 5  ;;  %v6723_v58 = vld [vmem:[%s7204_s7 + $0xa0] ss:$16 sps:$4 sm:$0xff]  }
 0x4bc   : > { %v3039_v61 = vpop.f32.mrf.mxu0  ;;  %v3056_v62 = vadd.f32 %v3048_v59, %v6415_v12  ;;  %v3049_v63 = vrot.slane %v2998_v60, 5  ;;  %v6729_v59 = vld [vmem:[%s7204_s7 + $0xa8] ss:$16 sps:$4 sm:$0xff]   ;;  %v6735_v60 = vld [vmem:[%s7204_s7 + $0x84] ss:$16 sps:$4 sm:$0xff]  }
 0x4bd   : > { %v5071_v0 = vpop.eup %5070  ;;  %v3000_v1 = vpop.f32.mrf.mxu1  ;;  %v3051_v7 = vrot.slane %v3039_v61, 5  ;;  %v3058_v27 = vadd.f32 %v3050_v38, %v6455_v3  ;;  %v6741_v61 = vld [vmem:[%s7204_s7 + $0x8c] ss:$16 sps:$4 sm:$0xff]   ;;  %v6819_v38 = vld [vmem:[%s7204_s7 + $0x20] ss:$16 sps:$4 sm:$0xff]  }
 0x4be   : > { %v3041_v10 = vpop.f32.mrf.mxu0  ;;  %v4528_v19 = vmul.f32 -1.442695, %v3056_v62  ;;  %v3057_v8 = vadd.f32 %v3049_v63, %v6417_v32  ;;  %2740 = vrot.lane.b32.xlu0 %v5071_v0, %s5351_s30  ;;  %v6747_v62 = vld [vmem:[%s7204_s7 + $0x80] ss:$16 sps:$4 sm:$0xff]   ;;  %v6753_v63 = vld [vmem:[%s7204_s7 + $0x88] ss:$16 sps:$4 sm:$0xff]  }
 0x4bf   : > { %v3001_v14 = vpop.f32.mrf.mxu1  ;;  %v3059_v2 = vadd.f32 %v3051_v7, %v6457_v20  ;;  %v6759_v0 = vld [vmem:[%s7204_s7 + $0x64] ss:$16 sps:$4 sm:$0xff]   ;;  %v6765_v1 = vld [vmem:[%s7204_s7 + $0x6c] ss:$16 sps:$4 sm:$0xff]   ;;  %v6771_v10 = vld [vmem:[%s7204_s7 + $0x60] ss:$16 sps:$4 sm:$0xff]  }
 0x4c0   : > { %v3042_v9 = vpop.f32.mrf.mxu0  ;;  %5072 = vpow2.f32 %v4528_v19  ;;  %v4529_v23 = vmul.f32 -1.442695, %v3057_v8  ;;  %v6777_v19 = vld [vmem:[%s7204_s7 + $0x68] ss:$16 sps:$4 sm:$0xff]   ;;  %v6783_v8 = vld [vmem:[%s7204_s7 + $0x44] ss:$16 sps:$4 sm:$0xff]  }
 0x4c1   : > { %v4530_v16 = vmul.f32 -1.442695, %v3059_v2  ;;  %v6789_v14 = vld [vmem:[%s7204_s7 + $0x4c] ss:$16 sps:$4 sm:$0xff]   ;;  %v6795_v9 = vld [vmem:[%s7204_s7 + $0x40] ss:$16 sps:$4 sm:$0xff]  }
 0x4c2   : > { %5074 = vpow2.f32 %v4529_v23  ;;  %v6801_v23 = vld [vmem:[%s7204_s7 + $0x48] ss:$16 sps:$4 sm:$0xff]   ;;  %v6807_v7 = vld [vmem:[%s7204_s7 + $0x24] ss:$16 sps:$4 sm:$0xff]   ;;  %v6813_v2 = vld [vmem:[%s7204_s7 + $0x2c] ss:$16 sps:$4 sm:$0xff]  }
 0x4c3   : > { %5076 = vpow2.f32 %v4530_v16  ;;  %v6825_v16 = vld [vmem:[%s7204_s7 + $0x28] ss:$16 sps:$4 sm:$0xff]  }
 0x4cd   : > { %v5073_v44 = vpop.eup %5072 }
 0x4ce   : > { %v3063_v21 = vadd.f32 1.0, %v5073_v44  ;;  %v6831_v44 = vld [vmem:[%s7204_s7 + $0x4] ss:$16 sps:$4 sm:$0xff]  }
 0x4cf   : > { %v5075_v42 = vpop.eup %5074 }
 0x4d0   : > { %5078 = vrcp.f32 %v3063_v21  ;;  %v3069_v49 = vadd.f32 1.0, %v5075_v42  ;;  %v5077_v34 = vpop.eup %5076  ;;  %v6843_v21 = vld [vmem:[%s7204_s7] ss:$16 sps:$4 sm:$0xff]   ;;  %v6849_v42 = vld [vmem:[%s7204_s7 + $0x8] ss:$16 sps:$4 sm:$0xff]  }
 0x4d1   : > { %5080 = vtanh.f32 %v3058_v27  ;;  %v3076_v26 = vadd.f32 1.0, %v5077_v34  ;;  %v6837_v27 = vld [vmem:[%s7204_s7 + $0xc] ss:$16 sps:$4 sm:$0xff]  }
 0x4d2   : > { %5082 = vrcp.f32 %v3069_v49  ;;  %v6856_v49 = vld [vmem:[%s7204_s7 + $0xec] ss:$16 sps:$4 sm:$0xff]  }
 0x4d3   : > { %5084 = vrcp.f32 %v3076_v26 }
 0x4dd   : > { %v5079_v6 = vpop.eup %5078 }
 0x4de   : > { %v5081_v30 = vpop.eup %5080 }
 0x4df   : > { %v5083_v24 = vpop.eup %5082  ;;  %v3083_v18 = vmul.f32 %v5081_v30, %v5079_v6 }
 0x4e0   : > { %v3082_v29 = vmul.f32 %v5083_v24, %v3080_v17  ;;  %v5085_v33 = vpop.eup %5084 }
 0x4e2   : > { %v6663_v31 = vadd.f32 %v3083_v18, %v3082_v29  ;;  %v7222_v18 = vrot.slane %v6427_v36, 7 }
 0x4e4   : > { %5086 = vtanh.f32 %v6663_v31 }
 0x4f1   : > { %v5087_v37 = vpop.eup %5086 }
 0x4f2   : > { %v6666_v39 = vmul.f32 %v5087_v37, %v5085_v33 }
 0x4f4   : > { %7242 = vst [vmem:[#allocation15_spill] sm:$0xff] %v6666_v39  ;;  %v3169_v45 = vpack.c.bf16 %v6666_v39, %v6666_v39 }
 0x4f6   : > { %v3171_v46 = vshrl.u32 %v3169_v45, 16 }
 0x4f8   : > { %v3173_v43 = vrot.slane %v3171_v46, 1 }
 0x4fa   : > { %3208 = vmatmul.mubr.bf16.vlgmr.msra.gmra.mxu1 %v3173_v43  ;;  %3249 = vmatmul.mubr.bf16.vlgmr.msra.gmra.mxu0 %v3173_v43 }
 0x4fb   : > { %3387 = vmatpush1.bf16.msra.mxu1 %v6673_v53  ;;  %3428 = vmatpush1.bf16.msra.mxu0 %v6679_v47 }
 0x4fc   : > { %3388 = vmatprep.subr.bf16.mxu1 %v6685_v48  ;;  %3429 = vmatprep.subr.bf16.mxu0 %v6691_v50 }
 0x4fd   : > { %3418 = vmatprep.mubr.bf16.mxu1 %v7239_v15  ;;  %3459 = vmatprep.mubr.bf16.mxu0 %v7239_v15 }
 0x4ff   : > { %3389 = vmatpush1.bf16.msra.mxu1 %v6699_v52  ;;  %3430 = vmatpush1.bf16.msra.mxu0 %v6705_v54 }
 0x500   : > { %3390 = vmatprep.subr.bf16.mxu1 %v6711_v56  ;;  %3431 = vmatprep.subr.bf16.mxu0 %v6717_v57 }
 0x503   : > { %3391 = vmatpush1.bf16.msra.mxu1 %v6723_v58  ;;  %3432 = vmatpush1.bf16.msra.mxu0 %v6729_v59 }
 0x504   : > { %3392 = vmatprep.subr.bf16.mxu1 %v6735_v60  ;;  %3433 = vmatprep.subr.bf16.mxu0 %v6741_v61 }
 0x507   : > { %3393 = vmatpush1.bf16.msra.mxu1 %v6747_v62  ;;  %3434 = vmatpush1.bf16.msra.mxu0 %v6753_v63 }
 0x508   : > { %3394 = vmatprep.subr.bf16.mxu1 %v6759_v0  ;;  %3435 = vmatprep.subr.bf16.mxu0 %v6765_v1 }
 0x50b   : > { %3395 = vmatpush1.bf16.msra.mxu1 %v6771_v10  ;;  %3436 = vmatpush1.bf16.msra.mxu0 %v6777_v19 }
 0x50c   : > { %3396 = vmatprep.subr.bf16.mxu1 %v6783_v8  ;;  %3437 = vmatprep.subr.bf16.mxu0 %v6789_v14 }
 0x50f   : > { %3397 = vmatpush1.bf16.msra.mxu1 %v6795_v9  ;;  %3438 = vmatpush1.bf16.msra.mxu0 %v6801_v23 }
 0x510   : > { %3398 = vmatprep.subr.bf16.mxu1 %v6807_v7  ;;  %3439 = vmatprep.subr.bf16.mxu0 %v6813_v2 }
 0x513   : > { %3399 = vmatpush1.bf16.msra.mxu1 %v6819_v38  ;;  %3440 = vmatpush1.bf16.msra.mxu0 %v6825_v16 }
 0x514   : > { %3400 = vmatprep.subr.bf16.mxu1 %v6831_v44  ;;  %3441 = vmatprep.subr.bf16.mxu0 %v6837_v27 }
 0x517   : > { %3401 = vmatpush1.bf16.msra.mxu1 %v6843_v21  ;;  %3442 = vmatpush1.bf16.msra.mxu0 %v6849_v42 }
 0x518   : > { %3599 = vmatprep.subr.bf16.mxu1 %v6634_v28  ;;  %3640 = vmatprep.subr.bf16.mxu0 %v6856_v49 }
 0x52c   : > { %v2739_v34 = vpop.permute.xlu1 %2738 }
 0x52d   : > { %v2744_v6 = vmul.f32 %v6638_v35, %v2739_v34 }
 0x52f   : > { %2884 = vperm.xlu1 %4655, %v2744_v6   ;;  %v4071_v17 = vrot.slane %v2744_v6, 1 }
 0x530   : > { %v2741_v30 = vpop.permute.xlu0 %2740 }
 0x531   : > { %v2745_v24 = vmul.f32 %v6642_v41, %v2741_v30 }
 0x533   : > { %2889 = vperm.xlu0 %4654, %v2745_v24   ;;  %v6862_v26 = vsel %vm2657_vm2, %v2745_v24, %v4071_v17 }
 0x534   : > { %7243 = vst [vmem:[#allocation16_spill] sm:$0xff] %v6862_v26 }
 0x5aa   : > { %v2885_v29 = vpop.permute.xlu1 %2884 }
 0x5ab   : > { %v2894_v33 = vmul.f32 %v7222_v18, %v2885_v29 }
 0x5ad   : > { %v2898_v37 = vrot.slane %v2894_v33, 7 }
 0x5ae   : > { %v2890_v45 = vpop.permute.xlu0 %2889 }
 0x5af   : > { %v6868_v46 = vadd.f32 %v2898_v37, %v6438_v13  ;;  %v2895_v35 = vmul.f32 %v2890_v45, %v6427_v36 }
 0x5b1   : > { %5088 = vtanh.f32 %v6868_v46  ;;  %v2899_v41 = vrot.slane %v2895_v35, 7 }
 0x5b3   : > { %v6873_v43 = vadd.f32 %v2899_v41, %v6436_v11 }
 0x5b5   : > { %5090 = vtanh.f32 %v6873_v43 }
 0x5ba   : > { %v3209_v34 = vpop.f32.mrf.mxu1  ;;  %v3250_v6 = vpop.f32.mrf.mxu0 }
 0x5bb   : > { %v3261_v30 = vrot.slane %v3209_v34, 4 }
 0x5bc   : > { %v3211_v17 = vpop.f32.mrf.mxu1  ;;  %v3252_v24 = vpop.f32.mrf.mxu0 }
 0x5bd   : > { %v3269_v29 = vadd.f32 %v3261_v30, %v6415_v12  ;;  %v3262_v33 = vrot.slane %v3211_v17, 4  ;;  %v3264_v34 = vrot.slane %v3252_v24, 4  ;;  %v3263_v17 = vrot.slane %v3250_v6, 4 }
 0x5be   : > { %v5089_v37 = vpop.eup %5088  ;;  %v3213_v18 = vpop.f32.mrf.mxu1 }
 0x5bf   : > { %v3254_v26 = vpop.f32.mrf.mxu0  ;;  %v4533_v45 = vmul.f32 -1.442695, %v3269_v29  ;;  %v3270_v40 = vadd.f32 %v3262_v33, %v6417_v32  ;;  %2928 = vrot.lane.b32.xlu1 %v5089_v37, %s5348_s16  ;;  %v3272_v30 = vadd.f32 %v3264_v34, %v6457_v20  ;;  %v3271_v29 = vadd.f32 %v3263_v17, %v6455_v3 }
 0x5c0   : > { %v3214_v35 = vpop.f32.mrf.mxu1 }
 0x5c1   : > { %v3255_v41 = vpop.f32.mrf.mxu0  ;;  %5092 = vpow2.f32 %v4533_v45  ;;  %v4534_v39 = vmul.f32 -1.442695, %v3270_v40  ;;  %v4535_v25 = vmul.f32 -1.442695, %v3272_v30 }
 0x5c2   : > { %v5091_v5 = vpop.eup %5090 }
 0x5c3   : > { %2930 = vrot.lane.b32.xlu0 %v5091_v5, %s5348_s16  ;;  %5094 = vpow2.f32 %v4534_v39  ;;  %v3293_v5 = vrot.slane %v6663_v31, 7  ;;  %v4526_v31 = vmul.f32 -1.442695, %v6868_v46 }
 0x5c4   : > { %5096 = vpow2.f32 %v4535_v25 }
 0x5ce   : > { %v5093_v18 = vpop.eup %5092 }
 0x5cf   : > { %v3276_v26 = vadd.f32 1.0, %v5093_v18 }
 0x5d0   : > { %v5095_v33 = vpop.eup %5094 }
 0x5d1   : > { %5098 = vrcp.f32 %v3276_v26  ;;  %v3282_v37 = vadd.f32 1.0, %v5095_v33  ;;  %v5097_v40 = vpop.eup %5096 }
 0x5d2   : > { %5100 = vtanh.f32 %v3271_v29  ;;  %v3289_v24 = vadd.f32 1.0, %v5097_v40  ;;  %v4527_v29 = vmul.f32 -1.442695, %v6873_v43 }
 0x5d3   : > { %5102 = vrcp.f32 %v3282_v37 }
 0x5d4   : > { %5104 = vrcp.f32 %v3289_v24 }
 0x5de   : > { %v5099_v45 = vpop.eup %5098 }
 0x5df   : > { %v5101_v35 = vpop.eup %5100 }
 0x5e0   : > { %v5103_v39 = vpop.eup %5102  ;;  %v3296_v41 = vmul.f32 %v5101_v35, %v5099_v45 }
 0x5e1   : > { %v3295_v6 = vmul.f32 %v5103_v39, %v3293_v5  ;;  %v5105_v30 = vpop.eup %5104 }
 0x5e3   : > { %v6883_v34 = vadd.f32 %v3296_v41, %v3295_v6  ;;  %v2921_v6 = vrot.slane %v6653_v55, 7 }
 0x5e5   : > { %5106 = vtanh.f32 %v6883_v34 }
 0x5e6   : > { %5108 = vpow2.f32 %v4526_v31 }
 0x5e7   : > { %5110 = vpow2.f32 %v4527_v29 }
 0x5f2   : > { %v5107_v25 = vpop.eup %5106 }
 0x5f3   : > { %v6886_v17 = vmul.f32 %v5107_v25, %v5105_v30  ;;  %v5109_v46 = vpop.eup %5108 }
 0x5f4   : > { %v2910_v43 = vadd.f32 1.0, %v5109_v46  ;;  %v5111_v33 = vpop.eup %5110 }
 0x5f5   : > { %7244 = vst [vmem:[#allocation17_spill] sm:$0xff] %v6886_v17  ;;  %v3382_v18 = vpack.c.bf16 %v6886_v17, %v6886_v17  ;;  %v2911_v37 = vadd.f32 1.0, %v5111_v33 }
 0x5f6   : > { %5112 = vrcp.f32 %v2910_v43 }
 0x5f7   : > { %v3384_v26 = vrot.slane %v3382_v18, 2  ;;  %5114 = vrcp.f32 %v2911_v37 }
 0x5f9   : > { %3419 = vmatmul.mubr.bf16.vlgmr.msra.gmra.mxu1 %v3384_v26  ;;  %3460 = vmatmul.mubr.bf16.vlgmr.msra.gmra.mxu0 %v3384_v26 }
 0x5fa   : > { %3600 = vmatpush1.bf16.msra.mxu1 %v6673_v53  ;;  %3641 = vmatpush1.bf16.msra.mxu0 %v6679_v47 }
 0x5fb   : > { %3601 = vmatprep.subr.bf16.mxu1 %v6685_v48  ;;  %3642 = vmatprep.subr.bf16.mxu0 %v6691_v50 }
 0x5fc   : > { %3631 = vmatprep.mubr.bf16.mxu1 %v7239_v15  ;;  %3672 = vmatprep.mubr.bf16.mxu0 %v7239_v15 }
 0x5fe   : > { %3602 = vmatpush1.bf16.msra.mxu1 %v6699_v52  ;;  %3643 = vmatpush1.bf16.msra.mxu0 %v6705_v54 }
 0x5ff   : > { %3603 = vmatprep.subr.bf16.mxu1 %v6711_v56  ;;  %3644 = vmatprep.subr.bf16.mxu0 %v6717_v57 }
 0x602   : > { %3604 = vmatpush1.bf16.msra.mxu1 %v6723_v58  ;;  %3645 = vmatpush1.bf16.msra.mxu0 %v6729_v59 }
 0x603   : > { %3605 = vmatprep.subr.bf16.mxu1 %v6735_v60  ;;  %3646 = vmatprep.subr.bf16.mxu0 %v6741_v61  ;;  %v6926_v40 = vpop.eup %5112 }
 0x604   : > { %v6930_v5 = vpop.eup %5114 }
 0x605   : > { %v2925_v25 = vmul.f32 %v6930_v5, %v2921_v6 }
 0x606   : > { %3606 = vmatpush1.bf16.msra.mxu1 %v6747_v62  ;;  %3647 = vmatpush1.bf16.msra.mxu0 %v6753_v63 }
 0x607   : > { %3607 = vmatprep.subr.bf16.mxu1 %v6759_v0  ;;  %3648 = vmatprep.subr.bf16.mxu0 %v6765_v1 }
 0x60a   : > { %3608 = vmatpush1.bf16.msra.mxu1 %v6771_v10  ;;  %3649 = vmatpush1.bf16.msra.mxu0 %v6777_v19 }
 0x60b   : > { %3609 = vmatprep.subr.bf16.mxu1 %v6783_v8  ;;  %3650 = vmatprep.subr.bf16.mxu0 %v6789_v14 }
 0x60e   : > { %3610 = vmatpush1.bf16.msra.mxu1 %v6795_v9  ;;  %3651 = vmatpush1.bf16.msra.mxu0 %v6801_v23 }
 0x60f   : > { %3611 = vmatprep.subr.bf16.mxu1 %v6807_v7  ;;  %3652 = vmatprep.subr.bf16.mxu0 %v6813_v2 }
 0x612   : > { %3612 = vmatpush1.bf16.msra.mxu1 %v6819_v38  ;;  %3653 = vmatpush1.bf16.msra.mxu0 %v6825_v16 }
 0x613   : > { %3613 = vmatprep.subr.bf16.mxu1 %v6831_v44  ;;  %3654 = vmatprep.subr.bf16.mxu0 %v6837_v27 }
 0x616   : > { %3614 = vmatpush1.bf16.msra.mxu1 %v6843_v21  ;;  %3655 = vmatpush1.bf16.msra.mxu0 %v6849_v42 }
 0x617   : > { %3810 = vmatprep.subr.bf16.mxu1 %v6634_v28  ;;  %3851 = vmatprep.subr.bf16.mxu0 %v6856_v49  ;;  %v2920_v49 = vrot.slane %v6649_v51, 7 }
 0x619   : > { %v2924_v24 = vmul.f32 %v6926_v40, %v2920_v49 }
 0x631   : > { %v2929_v45 = vpop.permute.xlu1 %2928 }
 0x632   : > { %v2934_v35 = vmul.f32 %v6926_v40, %v2929_v45 }
 0x634   : > { %2938 = vrot.lane.b32.xlu1 %v2934_v35, %s5349_s28 }
 0x635   : > { %v2931_v39 = vpop.permute.xlu0 %2930 }
 0x636   : > { %v2935_v28 = vmul.f32 %v6930_v5, %v2931_v39 }
 0x638   : > { %2940 = vrot.lane.b32.xlu0 %v2935_v28, %s5349_s28 }
 0x6a6   : > { %v2939_v41 = vpop.permute.xlu1 %2938 }
 0x6a7   : > { %v6937_v30 = vadd.f32 %v2939_v41, %v2924_v24 }
 0x6a9   : > { %5116 = vtanh.f32 %v6937_v30 }
 0x6aa   : > { %v2941_v18 = vpop.permute.xlu0 %2940 }
 0x6ab   : > { %v6941_v26 = vadd.f32 %v2941_v18, %v2925_v25 }
 0x6ad   : > { %5118 = vtanh.f32 %v6941_v26 }
 0x6b6   : > { %v5117_v31 = vpop.eup %5116 }
 0x6b7   : > { %2950 = vrot.lane.b32.xlu1 %v5117_v31, %s5351_s30 }
 0x6b9   : > { %v3420_v29 = vpop.f32.mrf.mxu1  ;;  %v3461_v46 = vpop.f32.mrf.mxu0 }
 0x6ba   : > { %v5119_v51 = vpop.eup %5118  ;;  %v3472_v43 = vrot.slane %v3420_v29, 3  ;;  %v3474_v31 = vrot.slane %v3461_v46, 3 }
 0x6bb   : > { %2952 = vrot.lane.b32.xlu0 %v5119_v51, %s5351_s30  ;;  %v3422_v55 = vpop.f32.mrf.mxu1  ;;  %v3463_v33 = vpop.f32.mrf.mxu0 }
 0x6bc   : > { %v3480_v37 = vadd.f32 %v3472_v43, %v6415_v12  ;;  %v3473_v45 = vrot.slane %v3422_v55, 3  ;;  %v3475_v25 = vrot.slane %v3463_v33, 3  ;;  %v3482_v17 = vadd.f32 %v3474_v31, %v6455_v3 }
 0x6bd   : > { %v3424_v35 = vpop.f32.mrf.mxu1  ;;  %v3465_v39 = vpop.f32.mrf.mxu0 }
 0x6be   : > { %v4538_v28 = vmul.f32 -1.442695, %v3480_v37  ;;  %v3481_v49 = vadd.f32 %v3473_v45, %v6417_v32  ;;  %v3483_v18 = vadd.f32 %v3475_v25, %v6457_v20 }
 0x6bf   : > { %v3425_v24 = vpop.f32.mrf.mxu1  ;;  %v3466_v41 = vpop.f32.mrf.mxu0 }
 0x6c0   : > { %5120 = vpow2.f32 %v4538_v28  ;;  %v4539_v6 = vmul.f32 -1.442695, %v3481_v49  ;;  %v4540_v51 = vmul.f32 -1.442695, %v3483_v18  ;;  %v3504_v28 = vrot.slane %v6883_v34, 7 }
 0x6c2   : > { %5122 = vpow2.f32 %v4539_v6 }
 0x6c3   : > { %5124 = vpow2.f32 %v4540_v51 }
 0x6cd   : > { %v5121_v29 = vpop.eup %5120 }
 0x6ce   : > { %v3487_v43 = vadd.f32 1.0, %v5121_v29 }
 0x6cf   : > { %v5123_v55 = vpop.eup %5122 }
 0x6d0   : > { %5126 = vrcp.f32 %v3487_v43  ;;  %v3493_v37 = vadd.f32 1.0, %v5123_v55  ;;  %v5125_v45 = vpop.eup %5124 }
 0x6d1   : > { %5128 = vtanh.f32 %v3482_v17  ;;  %v3500_v49 = vadd.f32 1.0, %v5125_v45 }
 0x6d2   : > { %5130 = vrcp.f32 %v3493_v37 }
 0x6d3   : > { %5132 = vrcp.f32 %v3500_v49 }
 0x6dd   : > { %v5127_v35 = vpop.eup %5126 }
 0x6de   : > { %v5129_v39 = vpop.eup %5128 }
 0x6df   : > { %v5131_v33 = vpop.eup %5130  ;;  %v3507_v24 = vmul.f32 %v5129_v39, %v5127_v35 }
 0x6e0   : > { %v3506_v46 = vmul.f32 %v5131_v33, %v3504_v28  ;;  %v5133_v6 = vpop.eup %5132 }
 0x6e2   : > { %v6951_v41 = vadd.f32 %v3507_v24, %v3506_v46 }
 0x6e4   : > { %5134 = vtanh.f32 %v6951_v41  ;;  %v3717_v46 = vrot.slane %v6951_v41, 7 }
 0x6f1   : > { %v5135_v25 = vpop.eup %5134 }
 0x6f2   : > { %v6954_v18 = vmul.f32 %v5135_v25, %v5133_v6 }
 0x6f4   : > { %v3593_v17 = vpack.c.bf16 %v6954_v18, %v6954_v18 }
 0x6f6   : > { %v3595_v31 = vshrl.u32 %v3593_v17, 16 }
 0x6f8   : > { %v3597_v51 = vrot.slane %v3595_v31, 2 }
 0x6fa   : > { %3632 = vmatmul.mubr.bf16.vlgmr.msra.gmra.mxu1 %v3597_v51  ;;  %3673 = vmatmul.mubr.bf16.vlgmr.msra.gmra.mxu0 %v3597_v51 }
 0x6fb   : > { %3811 = vmatpush1.bf16.msra.mxu1 %v6673_v53  ;;  %3852 = vmatpush1.bf16.msra.mxu0 %v6679_v47 }
 0x6fc   : > { %3812 = vmatprep.subr.bf16.mxu1 %v6685_v48  ;;  %3853 = vmatprep.subr.bf16.mxu0 %v6691_v50 }
 0x6fd   : > { %3842 = vmatprep.mubr.bf16.mxu1 %v7239_v15  ;;  %3883 = vmatprep.mubr.bf16.mxu0 %v7239_v15 }
 0x6ff   : > { %3813 = vmatpush1.bf16.msra.mxu1 %v6699_v52  ;;  %3854 = vmatpush1.bf16.msra.mxu0 %v6705_v54 }
 0x700   : > { %3814 = vmatprep.subr.bf16.mxu1 %v6711_v56  ;;  %3855 = vmatprep.subr.bf16.mxu0 %v6717_v57  ;;  %v6998_v56 = vld [vmem:[%s7211_s14] sm:$0x3] }
 0x701   : > { %v3103_v57 = vrot.slane %v6998_v56, 6 }
 0x703   : > { %3815 = vmatpush1.bf16.msra.mxu1 %v6723_v58  ;;  %3856 = vmatpush1.bf16.msra.mxu0 %v6729_v59 }
 0x704   : > { %3816 = vmatprep.subr.bf16.mxu1 %v6735_v60  ;;  %3857 = vmatprep.subr.bf16.mxu0 %v6741_v61 }
 0x707   : > { %3817 = vmatpush1.bf16.msra.mxu1 %v6747_v62  ;;  %3858 = vmatpush1.bf16.msra.mxu0 %v6753_v63  ;;  %v7245_v63 = vrot.slane %v6427_v36, 7 }
 0x708   : > { %3818 = vmatprep.subr.bf16.mxu1 %v6759_v0  ;;  %3859 = vmatprep.subr.bf16.mxu0 %v6765_v1 }
 0x70b   : > { %3819 = vmatpush1.bf16.msra.mxu1 %v6771_v10  ;;  %3860 = vmatpush1.bf16.msra.mxu0 %v6777_v19 }
 0x70c   : > { %3820 = vmatprep.subr.bf16.mxu1 %v6783_v8  ;;  %3861 = vmatprep.subr.bf16.mxu0 %v6789_v14 }
 0x70f   : > { %3821 = vmatpush1.bf16.msra.mxu1 %v6795_v9  ;;  %3862 = vmatpush1.bf16.msra.mxu0 %v6801_v23 }
 0x710   : > { %3822 = vmatprep.subr.bf16.mxu1 %v6807_v7  ;;  %3863 = vmatprep.subr.bf16.mxu0 %v6813_v2 }
 0x713   : > { %3823 = vmatpush1.bf16.msra.mxu1 %v6819_v38  ;;  %3864 = vmatpush1.bf16.msra.mxu0 %v6825_v16 }
 0x714   : > { %3824 = vmatprep.subr.bf16.mxu1 %v6831_v44  ;;  %3865 = vmatprep.subr.bf16.mxu0 %v6837_v27 }
 0x717   : > { %3825 = vmatpush1.bf16.msra.mxu1 %v6843_v21  ;;  %3866 = vmatpush1.bf16.msra.mxu0 %v6849_v42 }
 0x729   : > { %v2951_v15 = vpop.permute.xlu1 %2950 }
 0x72a   : > { %v2956_v53 = vmul.f32 %v6926_v40, %v2951_v15 }
 0x72c   : > { %3095 = vperm.xlu1 %4655, %v2956_v53   ;;  %v4076_v50 = vrot.slane %v2956_v53, 2 }
 0x72d   : > { %v2953_v47 = vpop.permute.xlu0 %2952 }
 0x72e   : > { %v2957_v48 = vmul.f32 %v6930_v5, %v2953_v47 }
 0x730   : > { %v4077_v52 = vrot.slane %v2957_v48, 1  ;;  %3100 = vperm.xlu0 %4654, %v2957_v48  }
 0x732   : > { %v6993_v54 = vsel %vm2657_vm2, %v4077_v52, %v4076_v50 }
 0x7a7   : > { %v3096_v58 = vpop.permute.xlu1 %3095 }
 0x7a8   : > { %v3105_v59 = vmul.f32 %v3103_v57, %v3096_v58 }
 0x7aa   : > { %v3109_v60 = vrot.slane %v3105_v59, 7 }
 0x7ab   : > { %v3101_v61 = vpop.permute.xlu0 %3100 }
 0x7ac   : > { %v3113_v62 = vadd.f32 %v3109_v60, %v6438_v13  ;;  %v3106_v0 = vmul.f32 %v3101_v61, %v7245_v63 }
 0x7ae   : > { %5136 = vtanh.f32 %v3113_v62  ;;  %v3110_v1 = vrot.slane %v3106_v0, 7  ;;  %v4531_v41 = vmul.f32 -1.442695, %v3113_v62 }
 0x7b0   : > { %v3114_v10 = vadd.f32 %v3110_v1, %v6436_v11 }
 0x7b2   : > { %5138 = vtanh.f32 %v3114_v10  ;;  %v4532_v52 = vmul.f32 -1.442695, %v3114_v10  ;;  %v3131_v10 = vrot.slane %v6937_v30, 7 }
 0x7ba   : > { %v3633_v8 = vpop.f32.mrf.mxu1  ;;  %v3674_v14 = vpop.f32.mrf.mxu0 }
 0x7bb   : > { %v5137_v19 = vpop.eup %5136  ;;  %v3685_v9 = vrot.slane %v3633_v8, 2  ;;  %v3687_v43 = vrot.slane %v3674_v14, 2 }
 0x7bc   : > { %3139 = vrot.lane.b32.xlu1 %v5137_v19, %s5348_s16  ;;  %v3635_v23 = vpop.f32.mrf.mxu1  ;;  %v3676_v7 = vpop.f32.mrf.mxu0 }
 0x7bd   : > { %v3693_v2 = vadd.f32 %v3685_v9, %v6415_v12  ;;  %v3686_v38 = vrot.slane %v3635_v23, 2  ;;  %v3688_v5 = vrot.slane %v3676_v7, 2  ;;  %v3695_v35 = vadd.f32 %v3687_v43, %v6455_v3 }
 0x7be   : > { %v3637_v44 = vpop.f32.mrf.mxu1  ;;  %v3678_v36 = vpop.f32.mrf.mxu0  ;;  %v3132_v23 = vrot.slane %v6941_v26, 7 }
 0x7bf   : > { %v5139_v16 = vpop.eup %5138  ;;  %v4543_v27 = vmul.f32 -1.442695, %v3693_v2  ;;  %v3694_v21 = vadd.f32 %v3686_v38, %v6417_v32  ;;  %v3696_v29 = vadd.f32 %v3688_v5, %v6457_v20 }
 0x7c0   : > { %3141 = vrot.lane.b32.xlu0 %v5139_v16, %s5348_s16  ;;  %v3638_v42 = vpop.f32.mrf.mxu1  ;;  %v3679_v34 = vpop.f32.mrf.mxu0 }
 0x7c1   : > { %5140 = vpow2.f32 %v4543_v27  ;;  %v4544_v40 = vmul.f32 -1.442695, %v3694_v21  ;;  %v4545_v55 = vmul.f32 -1.442695, %v3696_v29 }
 0x7c3   : > { %5142 = vpow2.f32 %v4544_v40 }
 0x7c4   : > { %5144 = vpow2.f32 %v4545_v55 }
 0x7ce   : > { %v5141_v37 = vpop.eup %5140 }
 0x7cf   : > { %v3700_v45 = vadd.f32 1.0, %v5141_v37 }
 0x7d0   : > { %v5143_v39 = vpop.eup %5142 }
 0x7d1   : > { %5146 = vrcp.f32 %v3700_v45  ;;  %v3706_v28 = vadd.f32 1.0, %v5143_v39  ;;  %v5145_v33 = vpop.eup %5144 }
 0x7d2   : > { %5148 = vtanh.f32 %v3695_v35  ;;  %v3713_v25 = vadd.f32 1.0, %v5145_v33 }
 0x7d3   : > { %5150 = vrcp.f32 %v3706_v28 }
 0x7d4   : > { %5152 = vrcp.f32 %v3713_v25 }
 0x7de   : > { %v5147_v49 = vpop.eup %5146 }
 0x7df   : > { %v5149_v24 = vpop.eup %5148 }
 0x7e0   : > { %v5151_v6 = vpop.eup %5150  ;;  %v3720_v17 = vmul.f32 %v5149_v24, %v5147_v49 }
 0x7e1   : > { %v3719_v31 = vmul.f32 %v5151_v6, %v3717_v46  ;;  %v5153_v15 = vpop.eup %5152 }
 0x7e3   : > { %v7014_v51 = vadd.f32 %v3720_v17, %v3719_v31 }
 0x7e5   : > { %5154 = vtanh.f32 %v7014_v51 }
 0x7e6   : > { %5156 = vpow2.f32 %v4531_v41 }
 0x7e7   : > { %5158 = vpow2.f32 %v4532_v52 }
 0x7f2   : > { %v5155_v53 = vpop.eup %5154 }
 0x7f3   : > { %v7017_v47 = vmul.f32 %v5155_v53, %v5153_v15  ;;  %v5157_v58 = vpop.eup %5156  ;;  %v3928_v53 = vrot.slane %v7014_v51, 7 }
 0x7f4   : > { %v3121_v59 = vadd.f32 1.0, %v5157_v58  ;;  %v5159_v60 = vpop.eup %5158 }
 0x7f5   : > { %v3806_v48 = vpack.c.bf16 %v7017_v47, %v7017_v47  ;;  %v3122_v61 = vadd.f32 1.0, %v5159_v60 }
 0x7f6   : > { %5160 = vrcp.f32 %v3121_v59 }
 0x7f7   : > { %v3808_v50 = vrot.slane %v3806_v48, 3  ;;  %5162 = vrcp.f32 %v3122_v61 }
 0x7f9   : > { %3843 = vmatmul.mubr.bf16.vlgmr.msra.gmra.mxu1 %v3808_v50  ;;  %3884 = vmatmul.mubr.bf16.vlgmr.msra.gmra.mxu0 %v3808_v50 }
 0x803   : > { %v7021_v63 = vpop.eup %5160 }
 0x804   : > { %v7025_v19 = vpop.eup %5162  ;;  %v3135_v14 = vmul.f32 %v7021_v63, %v3131_v10 }
 0x805   : > { %v3136_v2 = vmul.f32 %v7025_v19, %v3132_v23 }
 0x82e   : > { %v3140_v0 = vpop.permute.xlu1 %3139 }
 0x82f   : > { %v3145_v1 = vmul.f32 %v7021_v63, %v3140_v0 }
 0x831   : > { %3149 = vrot.lane.b32.xlu1 %v3145_v1, %s5349_s28 }
 0x832   : > { %v3142_v8 = vpop.permute.xlu0 %3141 }
 0x833   : > { %v3146_v62 = vmul.f32 %v7025_v19, %v3142_v8 }
 0x835   : > { %3151 = vrot.lane.b32.xlu0 %v3146_v62, %s5349_s28  ;;  %v3316_v62 = vrot.slane %v6998_v56, 5 }
 0x8a3   : > { %v3150_v9 = vpop.permute.xlu1 %3149 }
 0x8a4   : > { %v7032_v7 = vadd.f32 %v3150_v9, %v3135_v14 }
 0x8a6   : > { %5164 = vtanh.f32 %v7032_v7 }
 0x8a7   : > { %v3152_v38 = vpop.permute.xlu0 %3151 }
 0x8a8   : > { %v7036_v16 = vadd.f32 %v3152_v38, %v3136_v2 }
 0x8aa   : > { %5166 = vtanh.f32 %v7036_v16 }
 0x8b3   : > { %v5165_v44 = vpop.eup %5164 }
 0x8b4   : > { %3161 = vrot.lane.b32.xlu1 %v5165_v44, %s5351_s30 }
 0x8b7   : > { %v5167_v30 = vpop.eup %5166 }
 0x8b8   : > { %3163 = vrot.lane.b32.xlu0 %v5167_v30, %s5351_s30 }
 0x8b9   : > { %v3844_v36 = vpop.f32.mrf.mxu1  ;;  %v3885_v27 = vpop.f32.mrf.mxu0 }
 0x8ba   : > { %v3896_v26 = vrot.slane %v3844_v36, 1  ;;  %v3898_v28 = vrot.slane %v3885_v27, 1 }
 0x8bb   : > { %v3846_v21 = vpop.f32.mrf.mxu1  ;;  %v3887_v42 = vpop.f32.mrf.mxu0 }
 0x8bc   : > { %v3904_v34 = vadd.f32 %v3896_v26, %v6415_v12  ;;  %v3897_v40 = vrot.slane %v3846_v21, 1  ;;  %v3899_v39 = vrot.slane %v3887_v42, 1  ;;  %v3906_v49 = vadd.f32 %v3898_v28, %v6455_v3 }
 0x8bd   : > { %v3848_v5 = vpop.f32.mrf.mxu1  ;;  %v3889_v29 = vpop.f32.mrf.mxu0 }
 0x8be   : > { %v4548_v43 = vmul.f32 -1.442695, %v3904_v34  ;;  %v3905_v55 = vadd.f32 %v3897_v40, %v6417_v32  ;;  %v3907_v33 = vadd.f32 %v3899_v39, %v6457_v20  ;;  %v3345_v39 = vrot.slane %v7036_v16, 7 }
 0x8bf   : > { %v3849_v37 = vpop.f32.mrf.mxu1  ;;  %v3890_v45 = vpop.f32.mrf.mxu0 }
 0x8c0   : > { %5168 = vpow2.f32 %v4548_v43  ;;  %v4549_v35 = vmul.f32 -1.442695, %v3905_v55  ;;  %v4550_v24 = vmul.f32 -1.442695, %v3907_v33  ;;  %v3344_v37 = vrot.slane %v7032_v7, 7 }
 0x8c2   : > { %5170 = vpow2.f32 %v4549_v35 }
 0x8c3   : > { %5172 = vtanh.f32 %v3906_v49 }
 0x8c4   : > { %5174 = vpow2.f32 %v4550_v24 }
 0x8cd   : > { %v5169_v46 = vpop.eup %5168 }
 0x8ce   : > { %v3911_v12 = vadd.f32 1.0, %v5169_v46 }
 0x8cf   : > { %v5171_v6 = vpop.eup %5170 }
 0x8d0   : > { %5176 = vrcp.f32 %v3911_v12  ;;  %v3917_v25 = vadd.f32 1.0, %v5171_v6  ;;  %v5173_v32 = vpop.eup %5172 }
 0x8d1   : > { %v5175_v17 = vpop.eup %5174 }
 0x8d2   : > { %5178 = vrcp.f32 %v3917_v25  ;;  %v3924_v50 = vadd.f32 1.0, %v5175_v17 }
 0x8d4   : > { %5180 = vrcp.f32 %v3924_v50 }
 0x8dd   : > { %v5177_v31 = vpop.eup %5176 }
 0x8de   : > { %v3931_v15 = vmul.f32 %v5177_v31, %v5173_v32 }
 0x8df   : > { %v5179_v48 = vpop.eup %5178 }
 0x8e0   : > { %v3930_v20 = vmul.f32 %v5179_v48, %v3928_v53 }
 0x8e1   : > { %v5181_v3 = vpop.eup %5180 }
 0x8e2   : > { %v3932_v41 = vadd.f32 %v3931_v15, %v3930_v20  ;;  %v3527_v15 = vrot.slane %v6998_v56, 4 }
 0x8e4   : > { %5182 = vtanh.f32 %v3932_v41 }
 0x8f1   : > { %v5183_v52 = vpop.eup %5182 }
 0x8f2   : > { %v7046_v58 = vmul.f32 %v5183_v52, %v5181_v3 }
 0x926   : > { %v3162_v59 = vpop.permute.xlu1 %3161 }
 0x927   : > { %v3167_v60 = vmul.f32 %v7021_v63, %v3162_v59 }
 0x929   : > { %3308 = vperm.xlu1 %4655, %v3167_v60   ;;  %v4082_v1 = vrot.slane %v3167_v60, 3 }
 0x92a   : > { %v3164_v61 = vpop.permute.xlu0 %3163 }
 0x92b   : > { %v3168_v0 = vmul.f32 %v7025_v19, %v3164_v61 }
 0x92d   : > { %v4083_v8 = vrot.slane %v3168_v0, 2  ;;  %3313 = vperm.xlu0 %4654, %v3168_v0  }
 0x92f   : > { %v7051_v51 = vsel %vm2657_vm2, %v4083_v8, %v4082_v1 }
 0x9a4   : > { %v3309_v10 = vpop.permute.xlu1 %3308 }
 0x9a5   : > { %v3318_v14 = vmul.f32 %v3316_v62, %v3309_v10 }
 0x9a7   : > { %v3322_v9 = vrot.slane %v3318_v14, 7 }
 0x9a8   : > { %v3314_v23 = vpop.permute.xlu0 %3313 }
 0x9a9   : > { %v3326_v2 = vadd.f32 %v3322_v9, %v6438_v13  ;;  %v3319_v63 = vmul.f32 %v3314_v23, %v3103_v57 }
 0x9ab   : > { %5184 = vtanh.f32 %v3326_v2  ;;  %v3323_v38 = vrot.slane %v3319_v63, 7  ;;  %v4536_v36 = vmul.f32 -1.442695, %v3326_v2 }
 0x9ad   : > { %v3327_v19 = vadd.f32 %v3323_v38, %v6436_v11 }
 0x9af   : > { %5186 = vtanh.f32 %v3327_v19  ;;  %v4537_v27 = vmul.f32 -1.442695, %v3327_v19 }
 0x9b0   : > { %5188 = vpow2.f32 %v4536_v36 }
 0x9b1   : > { %5190 = vpow2.f32 %v4537_v27 }
 0x9b8   : > { %v5185_v44 = vpop.eup %5184 }
 0x9b9   : > { %3352 = vrot.lane.b32.xlu1 %v5185_v44, %s5348_s16 }
 0x9bc   : > { %v5187_v30 = vpop.eup %5186 }
 0x9bd   : > { %3354 = vrot.lane.b32.xlu0 %v5187_v30, %s5348_s16  ;;  %v5189_v26 = vpop.eup %5188 }
 0x9be   : > { %v3334_v21 = vadd.f32 1.0, %v5189_v26  ;;  %v5191_v42 = vpop.eup %5190 }
 0x9bf   : > { %v3335_v57 = vadd.f32 1.0, %v5191_v42 }
 0x9c0   : > { %5192 = vrcp.f32 %v3334_v21 }
 0x9c1   : > { %5194 = vrcp.f32 %v3335_v57 }
 0x9cd   : > { %v5193_v34 = vpop.eup %5192 }
 0x9ce   : > { %v5195_v29 = vpop.eup %5194  ;;  %v3348_v45 = vmul.f32 %v5193_v34, %v3344_v37 }
 0x9cf   : > { %v3349_v33 = vmul.f32 %v5195_v29, %v3345_v39  ;;  %v3740_v39 = vrot.slane %v6998_v56, 3 }
 0xa2b   : > { %v3353_v40 = vpop.permute.xlu1 %3352 }
 0xa2c   : > { %v3358_v5 = vmul.f32 %v5193_v34, %v3353_v40 }
 0xa2e   : > { %3362 = vrot.lane.b32.xlu1 %v3358_v5, %s5349_s28 }
 0xa2f   : > { %v3355_v43 = vpop.permute.xlu0 %3354 }
 0xa30   : > { %v3359_v55 = vmul.f32 %v5195_v29, %v3355_v43 }
 0xa32   : > { %3364 = vrot.lane.b32.xlu0 %v3359_v55, %s5349_s28 }
 0xaa0   : > { %v3363_v35 = vpop.permute.xlu1 %3362 }
 0xaa1   : > { %v3368_v28 = vadd.f32 %v3363_v35, %v3348_v45 }
 0xaa3   : > { %5196 = vtanh.f32 %v3368_v28  ;;  %v3555_v44 = vrot.slane %v3368_v28, 7 }
 0xaa4   : > { %v3365_v49 = vpop.permute.xlu0 %3364 }
 0xaa5   : > { %v3369_v24 = vadd.f32 %v3365_v49, %v3349_v33 }
 0xaa7   : > { %5198 = vtanh.f32 %v3369_v24  ;;  %v3556_v27 = vrot.slane %v3369_v24, 7 }
 0xab0   : > { %v5197_v46 = vpop.eup %5196 }
 0xab1   : > { %3374 = vrot.lane.b32.xlu1 %v5197_v46, %s5351_s30 }
 0xab4   : > { %v5199_v12 = vpop.eup %5198 }
 0xab5   : > { %3376 = vrot.lane.b32.xlu0 %v5199_v12, %s5351_s30 }
 0xb23   : > { %v3375_v6 = vpop.permute.xlu1 %3374 }
 0xb24   : > { %v3380_v25 = vmul.f32 %v5193_v34, %v3375_v6 }
 0xb26   : > { %3519 = vperm.xlu1 %4655, %v3380_v25   ;;  %v4086_v17 = vrot.slane %v3380_v25, 4 }
 0xb27   : > { %v3377_v7 = vpop.permute.xlu0 %3376 }
 0xb28   : > { %v3381_v32 = vmul.f32 %v5195_v29, %v3377_v7 }
 0xb2a   : > { %v4087_v31 = vrot.slane %v3381_v32, 3  ;;  %3524 = vperm.xlu0 %4654, %v3381_v32  }
 0xb2c   : > { %v7067_v16 = vsel %vm2657_vm2, %v4087_v31, %v4086_v17 }
 0xba1   : > { %v3520_v53 = vpop.permute.xlu1 %3519 }
 0xba2   : > { %v3529_v48 = vmul.f32 %v3527_v15, %v3520_v53 }
 0xba4   : > { %v3533_v50 = vrot.slane %v3529_v48, 7 }
 0xba5   : > { %v3525_v20 = vpop.permute.xlu0 %3524 }
 0xba6   : > { %v3537_v41 = vadd.f32 %v3533_v50, %v6438_v13  ;;  %v3530_v3 = vmul.f32 %v3525_v20, %v3316_v62 }
 0xba8   : > { %5200 = vtanh.f32 %v3537_v41  ;;  %v3534_v52 = vrot.slane %v3530_v3, 7  ;;  %v4541_v0 = vmul.f32 -1.442695, %v3537_v41 }
 0xbaa   : > { %v3538_v59 = vadd.f32 %v3534_v52, %v6436_v11 }
 0xbac   : > { %5202 = vtanh.f32 %v3538_v59  ;;  %v4542_v1 = vmul.f32 -1.442695, %v3538_v59 }
 0xbad   : > { %5204 = vpow2.f32 %v4541_v0 }
 0xbae   : > { %5206 = vpow2.f32 %v4542_v1 }
 0xbb5   : > { %v5201_v60 = vpop.eup %5200 }
 0xbb6   : > { %3563 = vrot.lane.b32.xlu1 %v5201_v60, %s5348_s16 }
 0xbb9   : > { %v5203_v61 = vpop.eup %5202 }
 0xbba   : > { %3565 = vrot.lane.b32.xlu0 %v5203_v61, %s5348_s16  ;;  %v5205_v8 = vpop.eup %5204 }
 0xbbb   : > { %v3545_v10 = vadd.f32 1.0, %v5205_v8  ;;  %v5207_v14 = vpop.eup %5206 }
 0xbbc   : > { %v3546_v62 = vadd.f32 1.0, %v5207_v14 }
 0xbbd   : > { %5208 = vrcp.f32 %v3545_v10 }
 0xbbe   : > { %5210 = vrcp.f32 %v3546_v62 }
 0xbca   : > { %v5209_v9 = vpop.eup %5208 }
 0xbcb   : > { %v5211_v63 = vpop.eup %5210  ;;  %v3559_v30 = vmul.f32 %v5209_v9, %v3555_v44 }
 0xbcc   : > { %v3560_v21 = vmul.f32 %v5211_v63, %v3556_v27 }
 0xc28   : > { %v3564_v23 = vpop.permute.xlu1 %3563 }
 0xc29   : > { %v3569_v2 = vmul.f32 %v5209_v9, %v3564_v23 }
 0xc2b   : > { %3573 = vrot.lane.b32.xlu1 %v3569_v2, %s5349_s28 }
 0xc2c   : > { %v3566_v38 = vpop.permute.xlu0 %3565 }
 0xc2d   : > { %v3570_v19 = vmul.f32 %v5211_v63, %v3566_v38 }
 0xc2f   : > { %3575 = vrot.lane.b32.xlu0 %v3570_v19, %s5349_s28 }
 0xc9d   : > { %v3574_v36 = vpop.permute.xlu1 %3573 }
 0xc9e   : > { %v3579_v26 = vadd.f32 %v3574_v36, %v3559_v30 }
 0xca0   : > { %5212 = vtanh.f32 %v3579_v26  ;;  %v3768_v61 = vrot.slane %v3579_v26, 7  ;;  %v3951_v26 = vrot.slane %v6998_v56, 2 }
 0xca1   : > { %v3576_v42 = vpop.permute.xlu0 %3575 }
 0xca2   : > { %v3580_v57 = vadd.f32 %v3576_v42, %v3560_v21 }
 0xca4   : > { %5214 = vtanh.f32 %v3580_v57  ;;  %v3769_v8 = vrot.slane %v3580_v57, 7 }
 0xcad   : > { %v5213_v34 = vpop.eup %5212 }
 0xcae   : > { %3585 = vrot.lane.b32.xlu1 %v5213_v34, %s5351_s30 }
 0xcb1   : > { %v5215_v40 = vpop.eup %5214 }
 0xcb2   : > { %3587 = vrot.lane.b32.xlu0 %v5215_v40, %s5351_s30 }
 0xd20   : > { %v3586_v5 = vpop.permute.xlu1 %3585 }
 0xd21   : > { %v3591_v29 = vmul.f32 %v5209_v9, %v3586_v5 }
 0xd23   : > { %3732 = vperm.xlu1 %4655, %v3591_v29   ;;  %v4092_v37 = vrot.slane %v3591_v29, 5 }
 0xd24   : > { %v3588_v43 = vpop.permute.xlu0 %3587 }
 0xd25   : > { %v3592_v55 = vmul.f32 %v5211_v63, %v3588_v43 }
 0xd27   : > { %v4093_v45 = vrot.slane %v3592_v55, 4  ;;  %3737 = vperm.xlu0 %4654, %v3592_v55  }
 0xd29   : > { %v7079_v35 = vsel %vm2657_vm2, %v4093_v45, %v4092_v37 }
 0xd9e   : > { %v3733_v28 = vpop.permute.xlu1 %3732 }
 0xd9f   : > { %v3742_v33 = vmul.f32 %v3740_v39, %v3733_v28 }
 0xda1   : > { %v3746_v49 = vrot.slane %v3742_v33, 7 }
 0xda2   : > { %v3738_v24 = vpop.permute.xlu0 %3737 }
 0xda3   : > { %v3750_v46 = vadd.f32 %v3746_v49, %v6438_v13  ;;  %v3743_v12 = vmul.f32 %v3738_v24, %v3527_v15 }
 0xda5   : > { %5216 = vtanh.f32 %v3750_v46  ;;  %v3747_v6 = vrot.slane %v3743_v12, 7  ;;  %v4546_v17 = vmul.f32 -1.442695, %v3750_v46 }
 0xda7   : > { %v3751_v25 = vadd.f32 %v3747_v6, %v6436_v11 }
 0xda9   : > { %5218 = vtanh.f32 %v3751_v25  ;;  %v4547_v31 = vmul.f32 -1.442695, %v3751_v25  ;;  %v2191_v25 = vld [vmem:[%s7205_s8] sm:$0x1] }
 0xdaa   : > { %5220 = vpow2.f32 %v4546_v17  ;;  %v7246_v17 = vld [vmem:[#allocation12_spill] sm:$0xff] }
 0xdab   : > { %5222 = vpow2.f32 %v4547_v31  ;;  %v2463_v31 = vmul.f32 %v7246_v17, %v2191_v25 }
 0xdb2   : > { %v5217_v7 = vpop.eup %5216 }
 0xdb3   : > { %3776 = vrot.lane.b32.xlu1 %v5217_v7, %s5348_s16  ;;  %v2654_v7 = vrot.slane %v2191_v25, %v6386_v4  ;;  %v7251_v25 = vld [vmem:[#allocation16_spill] sm:$0xff] }
 0xdb6   : > { %v5219_v32 = vpop.eup %5218 }
 0xdb7   : > { %3778 = vrot.lane.b32.xlu0 %v5219_v32, %s5348_s16  ;;  %v5221_v53 = vpop.eup %5220  ;;  %v2656_v32 = vmul.f32 %v2654_v7, %v6530_v22  ;;  %v3511_v22 = vmul.f32 %v6954_v18, %v2654_v7 }
 0xdb8   : > { %v3758_v48 = vadd.f32 1.0, %v5221_v53  ;;  %v5223_v50 = vpop.eup %5222 }
 0xdb9   : > { %v3759_v15 = vadd.f32 1.0, %v5223_v50  ;;  %v2658_v53 = vsel %vm2657_vm2, %v2656_v32, 0.0 }
 0xdba   : > { %5224 = vrcp.f32 %v3758_v48  ;;  %v7247_v48 = vld [vmem:[#allocation14_spill] sm:$0xff] }
 0xdbb   : > { %5226 = vrcp.f32 %v3759_v15  ;;  %v2876_v50 = vmul.f32 %v7247_v48, %v2654_v7  ;;  %v2465_v15 = vsel %vm2464_vm3, %v2463_v31, 0.0 }
 0xdc7   : > { %v5225_v20 = vpop.eup %5224 }
 0xdc8   : > { %v5227_v52 = vpop.eup %5226  ;;  %v3772_v0 = vmul.f32 %v5225_v20, %v3768_v61 }
 0xdc9   : > { %v3773_v14 = vmul.f32 %v5227_v52, %v3769_v8  ;;  %v3935_v8 = vmul.f32 %v7046_v58, %v2654_v7 }
 0xe25   : > { %v3777_v41 = vpop.permute.xlu1 %3776 }
 0xe26   : > { %v3782_v3 = vmul.f32 %v5225_v20, %v3777_v41 }
 0xe28   : > { %3786 = vrot.lane.b32.xlu1 %v3782_v3, %s5349_s28  ;;  %v2878_v3 = vsel %vm2877_vm4, %v2876_v50, 0.0 }
 0xe29   : > { %v3779_v59 = vpop.permute.xlu0 %3778 }
 0xe2a   : > { %v3783_v60 = vmul.f32 %v5227_v52, %v3779_v59 }
 0xe2c   : > { %3788 = vrot.lane.b32.xlu0 %v3783_v60, %s5349_s28 }
 0xe9a   : > { %v3787_v1 = vpop.permute.xlu1 %3786 }
 0xe9b   : > { %v7088_v10 = vadd.f32 %v3787_v1, %v3772_v0  ;;  %v3724_v0 = vmul.f32 %v7017_v47, %v2654_v7  ;;  %v3513_v1 = vsel %vm3512_vm7, %v3511_v22, 0.0 }
 0xe9d   : > { %5228 = vtanh.f32 %v7088_v10 }
 0xe9e   : > { %v3789_v62 = vpop.permute.xlu0 %3788 }
 0xe9f   : > { %v7091_v9 = vadd.f32 %v3789_v62, %v3773_v14  ;;  %v3726_v14 = vsel %vm3725_vm8, %v3724_v0, 0.0  ;;  %v3937_v62 = vsel %vm3936_vm9, %v3935_v8, 0.0 }
 0xea1   : > { %5230 = vtanh.f32 %v7091_v9 }
 0xeaa   : > { %v5229_v23 = vpop.eup %5228 }
 0xeab   : > { %3798 = vrot.lane.b32.xlu1 %v5229_v23, %s5351_s30  ;;  %v3979_v23 = vrot.slane %v7088_v10, 7 }
 0xeae   : > { %v5231_v2 = vpop.eup %5230 }
 0xeaf   : > { %3800 = vrot.lane.b32.xlu0 %v5231_v2, %s5351_s30 }
 0xf1d   : > { %v3799_v63 = vpop.permute.xlu1 %3798 }
 0xf1e   : > { %v3804_v38 = vmul.f32 %v5225_v20, %v3799_v63  ;;  %v7248_v20 = vld [vmem:[#allocation15_spill] sm:$0xff]  ;;  %v3980_v63 = vrot.slane %v7091_v9, 7 }
 0xf1f   : > { %v3087_v41 = vmul.f32 %v7248_v20, %v2654_v7 }
 0xf20   : > { %3943 = vperm.xlu1 %4655, %v3804_v38   ;;  %v4098_v30 = vrot.slane %v3804_v38, 6 }
 0xf21   : > { %v3801_v19 = vpop.permute.xlu0 %3800  ;;  %v3089_v60 = vsel %vm3088_vm5, %v3087_v41, 0.0 }
 0xf22   : > { %v3805_v44 = vmul.f32 %v5227_v52, %v3801_v19  ;;  %v7249_v52 = vld [vmem:[#allocation17_spill] sm:$0xff] }
 0xf23   : > { %v3300_v59 = vmul.f32 %v7249_v52, %v2654_v7 }
 0xf24   : > { %v4099_v36 = vrot.slane %v3805_v44, 5  ;;  %3948 = vperm.xlu0 %4654, %v3805_v44  }
 0xf25   : > { %v3302_v61 = vsel %vm3301_vm6, %v3300_v59, 0.0 }
 0xf26   : > { %v7097_v27 = vsel %vm2657_vm2, %v4099_v36, %v4098_v30  ;;  %v7131_v36 = vld [vmem:[#allocation2] sm:$0x1] }
 0xf27   : > { %v2665_v10 = vrot.slane %v7131_v36, %v6386_v4 }
 0xf9b   : > { %v3944_v21 = vpop.permute.xlu1 %3943 }
 0xf9c   : > { %v3953_v42 = vmul.f32 %v3951_v26, %v3944_v21 }
 0xf9e   : > { %v3957_v57 = vrot.slane %v3953_v42, 7 }
 0xf9f   : > { %v3949_v34 = vpop.permute.xlu0 %3948 }
 0xfa0   : > { %v3961_v40 = vadd.f32 %v3957_v57, %v6438_v13  ;;  %v3954_v5 = vmul.f32 %v3949_v34, %v3740_v39 }
 0xfa2   : > { %5232 = vtanh.f32 %v3961_v40  ;;  %v3958_v29 = vrot.slane %v3954_v5, 7  ;;  %v4551_v45 = vmul.f32 -1.442695, %v3961_v40 }
 0xfa4   : > { %v3962_v43 = vadd.f32 %v3958_v29, %v6436_v11 }
 0xfa6   : > { %5234 = vtanh.f32 %v3962_v43  ;;  %v4552_v56 = vmul.f32 -1.442695, %v3962_v43 }
 0xfa7   : > { %5236 = vpow2.f32 %v4551_v45 }
 0xfa8   : > { %5238 = vpow2.f32 %v4552_v56 }
 0xfaf   : > { %v5233_v55 = vpop.eup %5232 }
 0xfb0   : > { %3987 = vrot.lane.b32.xlu1 %v5233_v55, %s5348_s16 }
 0xfb3   : > { %v5235_v37 = vpop.eup %5234 }
 0xfb4   : > { %3989 = vrot.lane.b32.xlu0 %v5235_v37, %s5348_s16  ;;  %v5237_v28 = vpop.eup %5236 }
 0xfb5   : > { %v3969_v33 = vadd.f32 1.0, %v5237_v28  ;;  %v5239_v49 = vpop.eup %5238 }
 0xfb6   : > { %v3970_v13 = vadd.f32 1.0, %v5239_v49 }
 0xfb7   : > { %5240 = vrcp.f32 %v3969_v33 }
 0xfb8   : > { %5242 = vrcp.f32 %v3970_v13 }
 0xfc4   : > { %v7104_v39 = vpop.eup %5240 }
 0xfc5   : > { %v7108_v46 = vpop.eup %5242  ;;  %v3983_v18 = vmul.f32 %v7104_v39, %v3979_v23 }
 0xfc6   : > { %v3984_v47 = vmul.f32 %v7108_v46, %v3980_v63 }
0x1022   : > { %v3988_v11 = vpop.permute.xlu1 %3987 }
0x1023   : > { %v3993_v24 = vmul.f32 %v7104_v39, %v3988_v11 }
0x1025   : > { %3997 = vrot.lane.b32.xlu1 %v3993_v24, %s5349_s28 }
0x1026   : > { %v3990_v12 = vpop.permute.xlu0 %3989 }
0x1027   : > { %v3994_v6 = vmul.f32 %v7108_v46, %v3990_v12 }
0x1029   : > { %3999 = vrot.lane.b32.xlu0 %v3994_v6, %s5349_s28  ;;  %v7250_v6 = vld [vmem:[#allocation13_spill] sm:$0xff] }
0x1048   : > { %2659 = vadd.xlane.f32.xlu0 %v2658_v53 }
0x1049   : > { %2466 = vadd.xlane.f32.xlu1 %v2465_v15 }
0x104c   : > { %2879 = vadd.xlane.f32.xlu0 %v2878_v3 }
0x104d   : > { %3090 = vadd.xlane.f32.xlu1 %v3089_v60 }
0x1050   : > { %3303 = vadd.xlane.f32.xlu0 %v3302_v61 }
0x1051   : > { %3514 = vadd.xlane.f32.xlu1 %v3513_v1 }
0x1054   : > { %3727 = vadd.xlane.f32.xlu0 %v3726_v14 }
0x1055   : > { %3938 = vadd.xlane.f32.xlu1 %v3937_v62 }
0x1097   : > { %v3998_v2 = vpop.permute.xlu1 %3997 }
0x1098   : > { %v4003_v38 = vadd.f32 %v3998_v2, %v3983_v18 }
0x109a   : > { %5244 = vtanh.f32 %v4003_v38 }
0x109b   : > { %v4000_v19 = vpop.permute.xlu0 %3999 }
0x109c   : > { %v4004_v44 = vadd.f32 %v4000_v19, %v3984_v47 }
0x109e   : > { %5246 = vtanh.f32 %v4004_v44 }
0x10a7   : > { %v5245_v58 = vpop.eup %5244 }
0x10a8   : > { %4009 = vrot.lane.b32.xlu0 %v5245_v58, %s5351_s30 }
0x10ab   : > { %v5247_v30 = vpop.eup %5246 }
0x10ac   : > { %4011 = vrot.lane.b32.xlu1 %v5247_v30, %s5351_s30 }
0x10d1   : > { %v2660_v26 = vpop.xlane.xlu0 %2659 }
0x10d2   : > { %v2667_v9 = vadd.f32 %v2665_v10, %v2660_v26  ;;  %v2467_v21 = vpop.xlane.xlu1 %2466  ;;  %v4128_v26 = vld [vmem:[%s588_s29] sm:$0x1] }
0x10d4   : > { %v4018_v42 = vrot.slane %v2667_v9, 1 }
0x10d5   : > { %v2880_v57 = vpop.xlane.xlu0 %2879 }
0x10d6   : > { %v2881_v34 = vadd.f32 %v2880_v57, %v2665_v10  ;;  %4019 = vrot.lane.b32.xlu1 %v4018_v42, %s5349_s28  ;;  %v3091_v40 = vpop.xlane.xlu1 %3090 }
0x10d7   : > { %v3092_v5 = vadd.f32 %v3091_v40, %v2665_v10 }
0x10d8   : > { %v4023_v29 = vrot.slane %v2881_v34, 2 }
0x10d9   : > { %v4028_v43 = vrot.slane %v3092_v5, 3  ;;  %v3304_v55 = vpop.xlane.xlu0 %3303 }
0x10da   : > { %v3305_v37 = vadd.f32 %v3304_v55, %v2665_v10  ;;  %4024 = vrot.lane.b32.xlu0 %v4023_v29, %s5351_s30  ;;  %v3515_v45 = vpop.xlane.xlu1 %3514 }
0x10db   : > { %v3516_v56 = vadd.f32 %v3515_v45, %v2665_v10  ;;  %4029 = vrot.lane.b32.xlu1 %v4028_v43, %s5352_s0 }
0x10dc   : > { %v4033_v4 = vrot.slane %v3305_v37, 4 }
0x10dd   : > { %v4038_v28 = vrot.slane %v3516_v56, 5  ;;  %v3728_v33 = vpop.xlane.xlu0 %3727 }
0x10de   : > { %v3729_v49 = vadd.f32 %v3728_v33, %v2665_v10  ;;  %4034 = vrot.lane.b32.xlu0 %v4033_v4, %s5353_s26  ;;  %v3939_v13 = vpop.xlane.xlu1 %3938 }
0x10df   : > { %v3940_v11 = vadd.f32 %v3939_v13, %v2665_v10  ;;  %4039 = vrot.lane.b32.xlu1 %v4038_v28, %s5354_s25  ;;  %s4553_s25 = sshll.u32 %s5469_s9, 4 }
0x10e0   : > { %v4043_v24 = vrot.slane %v3729_v49, 6 }
0x10e1   : > { %v4048_v12 = vrot.slane %v3940_v11, 7 }
0x10e2   : > { %4044 = vrot.lane.b32.xlu0 %v4043_v24, %s5355_s23 }
0x10e3   : > { %4049 = vrot.lane.b32.xlu1 %v4048_v12, %s5356_s19 }
0x10e6   : > { %4068 = vrot.lane.b32.xlu0 %v7250_v6, %s5357_s20  ;;  %s4158_s20 = scalar_lea.hbm %s7212_s15, %s4553_s25 }
0x10e7   : > { %4073 = vrot.lane.b32.xlu1 %v7251_v25, %s5348_s16 }
0x10ea   : > { %4079 = vrot.lane.b32.xlu0 %v6993_v54, %s5358_s18 }
0x10eb   : > { %4089 = vrot.lane.b32.xlu1 %v7067_v16, %s5349_s28 }
0x10ee   : > { %4095 = vrot.lane.b32.xlu0 %v7079_v35, %s5351_s30  ;;  %s585_s30 = scalar_lea.vmem %s7200_s3, %s5606_s21 }
0x10ef   : > { %4101 = vrot.lane.b32.xlu1 %v7097_v27, %s5352_s0  ;;  %s563_s0 = sand.u32 1, %s5333_s24  }
0x10f0   : > { %s4145_s16 = scalar_lea.sflag [#allocation4], %s563_s0 }
0x111a   : > { %v4010_v7 = vpop.permute.xlu0 %4009 }
0x111b   : > { %v4015_v32 = vmul.f32 %v7104_v39, %v4010_v7  ;;  %v2468_v39 = vadd.f32 %v2467_v21, %v7131_v36  ;;  %v4119_v36 = vld [vmem:[%s585_s30] sm:$0x1]  ;;  %s5359_s30 = smov [#allocation3]  }
0x111c   : > { %s5285_s22 = sshll.u32 %s5359_s30, 4  ;;  %s5286_s22 = int_to_ptr.vmem [resolvable:$false] %s5285_s22 }
0x111d   : > { %v4106_v53 = vrot.slane %v4015_v32, 7  ;;  %s5287_s27 = scalar_lea.vmem %s5286_s22, 32 }
0x111e   : > { %v4012_v17 = vpop.permute.xlu1 %4011 }
0x111f   : > { %v4016_v31 = vmul.f32 %v7108_v46, %v4012_v17 }
0x1121   : > { %v4107_v48 = vrot.slane %v4016_v31, 6 }
0x1123   : > { %v4108_v50 = vsel %vm2657_vm2, %v4107_v48, %v4106_v53 }
0x1124   : > { %4109 = vrot.lane.b32.xlu0 %v4108_v50, %s5353_s26  ;;  %s564_s26 = scalar_lea.vmem [#allocation3], %s563_s0 }
0x1125   : > { %s4160_s18 = sshll.u32 %s564_s26, 4  ;;  %s4161_s18 = int_to_ptr.vmem [resolvable:$true] %s4160_s18 }
0x1126   : > { %s5281_s28 = scalar_lea.vmem %s4161_s18, 16  ;;  %p5288_p0 = scmp.lt.s32.totalorder %s4161_s18, %s5286_s22 }
0x1127   : > { %p5282_p11 = scmp.ne.s32.totalorder %s4161_s18, %s5281_s28  ;;  %p5289_p1 = scmp.lt.s32.totalorder %s5287_s27, %s5281_s28 }
0x1129   : > { %p5283_p12 = pnand %p5282_p11, %p5486_p5  ;;  %p5290_p2 = por %p5289_p1, %p5288_p0 }
0x112b   : > { %p5284_p13 = pneg %p5283_p12 }
0x112d   : > { %p5291_p3 = pnand %p5290_p2, %p5284_p13 }
0x1148   : > { %v4020_v54 = vpop.permute.xlu1 %4019 }
0x1149   : > { %v4053_v22 = vsel %vm4052_vm10, %v2468_v39, %v4020_v54 }
0x114c   : > { %v4025_v15 = vpop.permute.xlu0 %4024 }
0x114d   : > { %v4030_v20 = vpop.permute.xlu1 %4029  ;;  %v4055_v61 = vsel %vm4054_vm11, %v4053_v22, %v4025_v15 }
0x114e   : > { %v4057_v8 = vsel %vm4056_vm12, %v4055_v61, %v4030_v20 }
0x1150   : > { %v4035_v16 = vpop.permute.xlu0 %4034 }
0x1151   : > { %v4040_v41 = vpop.permute.xlu1 %4039  ;;  %v4059_v14 = vsel %vm4058_vm13, %v4057_v8, %v4035_v16 }
0x1152   : > { %v4061_v18 = vsel %vm4060_vm14, %v4059_v14, %v4040_v41 }
0x1154   : > { %v4045_v3 = vpop.permute.xlu0 %4044 }
0x1155   : > { %v4050_v35 = vpop.permute.xlu1 %4049  ;;  %v4063_v38 = vsel %vm4062_vm15, %v4061_v18, %v4045_v3 }
0x1158   : > { %v4069_v52 = vpop.permute.xlu0 %4068 }
0x1159   : > { %v4074_v27 = vpop.permute.xlu1 %4073 }
0x115a   : > { %v4112_v46 = vsel %vm4052_vm10, %v4069_v52, %v4074_v27 }
0x115c   : > { %v4080_v59 = vpop.permute.xlu0 %4079 }
0x115d   : > { %v4113_v60 = vsel %vm4054_vm11, %v4112_v46, %v4080_v59  ;;  %v4090_v1 = vpop.permute.xlu1 %4089 }
0x115e   : > { %v4114_v0 = vsel %vm4056_vm12, %v4113_v60, %v7051_v51  ;;  %v4065_v51 = vsel %vm4064_vm0, %v4063_v38, %v4050_v35 }
0x115f   : > { %v4115_v62 = vsel %vm4058_vm13, %v4114_v0, %v4090_v1 }
0x1160   : > { %v4096_v23 = vpop.permute.xlu0 %4095 }
0x1161   : > { %v4116_v2 = vsel %vm4060_vm14, %v4115_v62, %v4096_v23  ;;  %v4102_v63 = vpop.permute.xlu1 %4101 }
0x1162   : > { %v4117_v47 = vsel %vm4062_vm15, %v4116_v2, %v4102_v63 }
0x1196   : > { %v4110_v19 = vpop.permute.xlu0 %4109 }
0x1197   : > { %v4118_v44 = vsel %vm4064_vm0, %v4117_v47, %v4110_v19 }
0x1198   : > { %v4120_v58 = vadd.f32 %v4118_v44, %v4065_v51  ;;  %v4122_v30 = vrot.slane %v4118_v44, 1 }
0x119a   : > { %v4124_v10 = vadd.f32 %v4122_v30, %v4120_v58 }
0x119c   : > { %v4125_v9 = vmul.f32 %v4124_v10, %v4119_v36 }
0x119e   : > { %v4129_v21 = vsub.f32 %v4125_v9, %v4128_v26  ;;  %4127 = vst.msk [vmem:[%s564_s26] sm:$0x1] %vm4126_vm1, %v4125_v9 }
0x11a0   : > { %v4130_v42 = vmul.f32 %v4129_v21, %v4129_v21 }
0x11a2   : > { %v4131_v57 = vsel %vm4126_vm1, %v4130_v42, 0.0 }
0x11a3   : > { %4132 = vadd.xlane.f32.xlu1 %v4131_v57 }
0x11a4   : > { %5294 = shalt.err (!%p5291_p3)
}
0x11a5   : > { %s5295_s9 = scalar_lea.hbm %s4158_s20, 16  ;;  %s5299_s26 = scalar_lea.hbm %s7212_s15, 32 }
0x11a6   : > { %p5296_p4 = scmp.ne.s32.totalorder %s4158_s20, %s5295_s9  ;;  %p5300_p9 = scmp.lt.s32.totalorder %s4158_s20, %s7212_s15 }
0x11a7   : > { %p5301_p10 = scmp.lt.s32.totalorder %s5299_s26, %s5295_s9 }
0x11a8   : > { %p5297_p7 = pnand %p5296_p4, %p5486_p5 }
0x11a9   : > { %p5302_p11 = por %p5301_p10, %p5300_p9 }
0x11aa   : > { %p5298_p8 = pneg %p5297_p7 }
0x11ac   : > { %p5303_p12 = pnand %p5302_p11, %p5298_p8 }
0x11ae   : > { %5306 = shalt.err (!%p5303_p12)
}
0x11af   : > { %4596 = dma.vmem_to_hbm [thread:$0]  (%p5486_p5), %s4161_s18, 16, %s4158_s20, %s4145_s16  }
0x11b0   : > { %s7252_s30 = sld [smem:[#allocation19_spill]] }
0x11b6   : > { %s591_s22 = scalar_lea.vmem %s7252_s30, %s5606_s21 }
0x122c   : > { %v4133_v34 = vpop.xlane.xlu1 %4132 }
0x122d   : > { %v4134_v40 = vrot.slane %v4133_v34, 4 }
0x122f   : > { %v4135_v5 = vadd.f32 %v4134_v40, %v4133_v34 }
0x1231   : > { %v4136_v29 = vrot.slane %v4135_v5, 2 }
0x1233   : > { %v4137_v43 = vadd.f32 %v4136_v29, %v4135_v5 }
0x1235   : > { %v4138_v55 = vrot.slane %v4137_v43, 1 }
0x1237   : > { %v4139_v37 = vadd.f32 %v4138_v55, %v4137_v43 }
0x1239   : > { %4594 = vpush %v4139_v37 }
0x126a   : > { %s4595_s27 = spop %4594 }
0x126b   : > { %v4141_v45 = vstv %s4595_s27 }
0x126c   : > { %4143 = vst [vmem:[%s591_s22] sm:$0x1] %v4141_v45 }
0x126d PF: > { %s7253_s9 = sld [smem:[#allocation8_spill]] }
0x126e   : > { %s7254_s17 = sld [smem:[#allocation6_spill]] }
0x1273   : > { %p4602_p5 = scmp.ge.s32.totalorder %s7253_s9, 2 }
0x1274   : > { %s4175_s20 = sand.u32 1, %s7254_s17  }
0x1275   : > { %p4599_p13 = pnand %p4602_p5, %p5490_p6  ;;  %s4176_s18 = scalar_lea.sflag [#allocation4], %s4175_s20 }
0x1277   : > { %p4600_p0 = pneg %p4599_p13 }
0x1279   : > { %5324 = dma.done.wait (%p4600_p0), %s4176_s18, 16  }
0x127a   : > { %5326 = vsyncadd (%p4600_p0), %s4176_s18, 4294967280  ;;  %s7256_s26 = sld [smem:[#allocation9_spill]]  ;;  %s7259_s23 = smov %s5333_s24 }
0x127b   : > { %s7257_s16 = sld [smem:[#allocation7_spill]] }
0x127c   : > { %s7258_s25 = sld [smem:[#allocation10_spill]] }
0x1280   : > { %p29_p1 = scmp.ge.s32.totalorder %s7256_s26, 4  }
0x1281   : > { %s7260_s24 = smov %s7257_s16 }
0x1282   :  { %31 = sbr.rel (!%p29_p1) target bundleno = 6 (0x6), region = 139 }
0x1287   :  { %4186 = vsyncpa [#allocation4], 1 }
0x1288   :  { %4188 = vsyncpa [#allocation4 + $0x1], 1 }

</bundles_post_ra>
